<compile_context>
chip_gen: v7x
topology: tpu7x:2x2x1
jax: 0.10.0
libtpu: 0.0.40
codegen_flags: <defaults>
</compile_context>

<pallas_src>
import functools

import jax
import jax.numpy as jnp
from jax.experimental import pallas as pl
from jax.experimental.pallas import tpu as pltpu


def make_kernel(hw_valid, eps):
    inv_n = 1.0 / float(hw_valid)

    def kernel(patch_ref, w_ref, gamma_ref, beta_ref, res_ref, out_ref):
        # patch_ref : (HWp, K*K*Cin) bf16   im2col patches (pad rows are exactly zero)
        # w_ref     : (K*K*Cin, TC)  bf16   conv weight tile for this Cout block
        # gamma_ref, beta_ref : (1, TC) f32
        # res_ref   : (HWp, TC) f32         residual (x108), flattened HWC
        # out_ref   : (HWp, TC) f32
        acc = jnp.dot(patch_ref[...], w_ref[...],
                      preferred_element_type=jnp.float32)        # (HWp, TC) f32
        # BatchNorm2d training-mode forward: biased per-channel stats over the HW valid rows.
        # Pad rows of `acc` are exactly zero, so plain sums divided by hw_valid are correct.
        s = jnp.sum(acc, axis=0, keepdims=True)                  # (1, TC)
        ss = jnp.sum(acc * acc, axis=0, keepdims=True)           # (1, TC)
        mean = s * inv_n
        var = ss * inv_n - mean * mean
        inv = jax.lax.rsqrt(var + eps)
        scale = gamma_ref[...] * inv
        shift = beta_ref[...] - mean * scale
        out_ref[...] = (acc * scale + shift + res_ref[...]).astype(out_ref.dtype)

    return kernel


def prepare_weights(w):
    """(Cout, Cin, K, K) OIHW -> (K*K*Cin, Cout) bf16, tap-major then Cin.
    Done once, outside the per-call hot path (no repeated 9.4 MB f32 transpose)."""
    Cout, Cin, K, _ = w.shape
    return jnp.transpose(w.astype(jnp.bfloat16), (2, 3, 1, 0)).reshape(K * K * Cin, Cout)


@functools.partial(jax.jit, static_argnames=("eps",))
def conv_bn_add(x111, x108, w_mat, gamma, beta, eps=1e-5):
    """x111, x108: (1, C, H, W) f32 NCHW.  w_mat: (K*K*Cin, Cout) bf16 from prepare_weights."""
    N, Cin, H, W = x111.shape
    KKC, Cout = w_mat.shape
    K = 3
    assert N == 1 and KKC == K * K * Cin
    HW = H * W
    HWp = ((HW + 7) // 8) * 8            # sublane-align rows: 49 -> 56
    TC = 128                              # lane-dense Cout tile
    assert Cout % TC == 0

    # --- glue (fused into this jit): im2col + layout conversion, all tiny vs weight DMA ---
    xpad = jnp.pad(x111[0], ((0, 0), (1, 1), (1, 1)))               # (Cin, H+2, W+2)
    xpad_hwc = jnp.transpose(xpad, (1, 2, 0)).astype(jnp.bfloat16)  # (H+2, W+2, Cin)
    taps = [xpad_hwc[dy:dy + H, dx:dx + W, :].reshape(HW, Cin)
            for dy in range(K) for dx in range(K)]
    patch = jnp.concatenate(taps, axis=1)                           # (HW, K*K*Cin)
    patch = jnp.pad(patch, ((0, HWp - HW), (0, 0)))                 # zero pad rows

    res = jnp.transpose(x108[0], (1, 2, 0)).reshape(HW, Cout)
    res = jnp.pad(res, ((0, HWp - HW), (0, 0))).astype(jnp.float32)
    gamma2 = gamma.reshape(1, Cout).astype(jnp.float32)
    beta2 = beta.reshape(1, Cout).astype(jnp.float32)

    out_flat = pl.pallas_call(
        make_kernel(HW, eps),
        out_shape=jax.ShapeDtypeStruct((HWp, Cout), jnp.float32),
        grid_spec=pltpu.PrefetchScalarGridSpec(
            num_scalar_prefetch=0,
            grid=(Cout // TC,),
            in_specs=[
                pl.BlockSpec((HWp, KKC), lambda j: (0, 0)),   # same patch block every step
                pl.BlockSpec((KKC, TC), lambda j: (0, j)),    # per-tile weights (pipelined DMA)
                pl.BlockSpec((1, TC), lambda j: (0, j)),
                pl.BlockSpec((1, TC), lambda j: (0, j)),
                pl.BlockSpec((HWp, TC), lambda j: (0, j)),
            ],
            out_specs=pl.BlockSpec((HWp, TC), lambda j: (0, j)),
        ),
        compiler_params=pltpu.CompilerParams(
            dimension_semantics=("parallel",),           # independent Cout tiles -> megacore
            vmem_limit_bytes=32 * 1024 * 1024),          # v7x-safe (64 MiB physical per TC)
    )(patch, w_mat, gamma2, beta2, res)

    # drop pad rows, back to NCHW
    return jnp.transpose(out_flat[:HW].reshape(H, W, Cout), (2, 0, 1))[None]


def ref_forward(x111, x108, w, gamma, beta, eps=1e-5):
    """Pure-JAX reference matching the PyTorch module semantics (training-mode BN)."""
    y = jax.lax.conv_general_dilated(
        x111, w, window_strides=(1, 1), padding=((1, 1), (1, 1)),
        dimension_numbers=('NCHW', 'OIHW', 'NCHW'))
    mean = jnp.mean(y, axis=(0, 2, 3), keepdims=True)
    var = jnp.mean((y - mean) ** 2, axis=(0, 2, 3), keepdims=True)
    yn = (y - mean) * jax.lax.rsqrt(var + eps) * gamma.reshape(1, -1, 1, 1) \
        + beta.reshape(1, -1, 1, 1)
    return yn + x108


if __name__ == "__main__":
    key = jax.random.PRNGKey(0)
    k_x1, k_x0, k_w, k_g, k_b = jax.random.split(key, 5)

    N, C, H, W = 1, 512, 7, 7   # shapes implied by the module (Conv2d(512,512,3x3), 7x7 map)
    x111 = jax.random.normal(k_x1, (N, C, H, W), jnp.float32)
    x108 = jax.random.normal(k_x0, (N, C, H, W), jnp.float32)

    # deterministic synthetic parameters (shapes from module __init__)
    fan_in = C * 3 * 3
    w = jax.random.normal(k_w, (C, C, 3, 3), jnp.float32) * jnp.sqrt(2.0 / fan_in)
    gamma = 1.0 + 0.1 * jax.random.normal(k_g, (C,), jnp.float32)
    beta = 0.1 * jax.random.normal(k_b, (C,), jnp.float32)

    w_mat = prepare_weights(w)   # one-time weight layout transform (bf16), outside hot path
    out = jax.block_until_ready(conv_bn_add(x111, x108, w_mat, gamma, beta))

    ref = jax.block_until_ready(ref_forward(x111, x108, w, gamma, beta))
    assert out.shape == (N, C, H, W)
    # Kernel feeds the MXU bf16 operands (f32 accumulation), the standard TPU conv precision;
    # tolerance is sized for bf16 input rounding vs the reference conv.
    max_err = float(jnp.max(jnp.abs(out - ref)))
    assert jnp.allclose(out, ref, atol=2e-2, rtol=2e-2), max_err

    print("KERNEL_OK")
</pallas_src>

<mosaic_0001>
module attributes {stable_mosaic.version = 11 : i64} {
  func.func @kernel(%arg0: i32, %arg1: memref<56x4608xbf16, #tpu.memory_space<vmem>>, %arg2: memref<4608x128xbf16, #tpu.memory_space<vmem>>, %arg3: memref<1x128xf32, #tpu.memory_space<vmem>>, %arg4: memref<1x128xf32, #tpu.memory_space<vmem>>, %arg5: memref<56x128xf32, #tpu.memory_space<vmem>>, %arg6: memref<56x128xf32, #tpu.memory_space<vmem>>) attributes {dimension_semantics = [#tpu.dimension_semantics<parallel>], iteration_bounds = array<i64: 4>, scalar_prefetch = 0 : i64, scratch_operands = 0 : i64, tpu.core_type = #tpu.core_type<tc>, window_params = [{pipeline_mode = #tpu.pipeline_mode<synchronous>, transform_indices = @transform_0, window_bounds = array<i64: 56, 4608>}, {transform_indices = @transform_1, window_bounds = array<i64: 4608, 128>}, {transform_indices = @transform_2, window_bounds = array<i64: 1, 128>}, {transform_indices = @transform_3, window_bounds = array<i64: 1, 128>}, {transform_indices = @transform_4, window_bounds = array<i64: 56, 128>}, {transform_indices = @transform_5, window_bounds = array<i64: 56, 128>}]} {
    %c0 = arith.constant 0 : index
    %c0_0 = arith.constant 0 : index
    %0 = vector.load %arg1[%c0, %c0_0] : memref<56x4608xbf16, #tpu.memory_space<vmem>>, vector<56x4608xbf16>
    %c0_1 = arith.constant 0 : index
    %c0_2 = arith.constant 0 : index
    %1 = vector.load %arg2[%c0_1, %c0_2] : memref<4608x128xbf16, #tpu.memory_space<vmem>>, vector<4608x128xbf16>
    %cst = arith.constant dense<0.000000e+00> : vector<56x128xf32>
    %2 = tpu.matmul %0, %1, %cst {dimension_numbers = #tpu.dot_dimension_numbers<[1], [0], [0], [1], [0, 0, 1, 1], [], []>} : vector<56x4608xbf16>, vector<4608x128xbf16>, vector<56x128xf32> -> vector<56x128xf32>
    %cst_3 = arith.constant dense<0.000000e+00> : vector<128xf32>
    %3 = vector.multi_reduction <add>, %2, %cst_3 [0] : vector<56x128xf32> to vector<128xf32>
    %4 = vector.shape_cast %3 : vector<128xf32> to vector<1x128xf32>
    %5 = arith.mulf %2, %2 : vector<56x128xf32>
    %cst_4 = arith.constant dense<0.000000e+00> : vector<128xf32>
    %6 = vector.multi_reduction <add>, %5, %cst_4 [0] : vector<56x128xf32> to vector<128xf32>
    %7 = vector.shape_cast %6 : vector<128xf32> to vector<1x128xf32>
    %cst_5 = arith.constant 0.0204081628 : f32
    %8 = vector.broadcast %cst_5 : f32 to vector<1x128xf32>
    %9 = arith.mulf %4, %8 : vector<1x128xf32>
    %cst_6 = arith.constant 0.0204081628 : f32
    %10 = vector.broadcast %cst_6 : f32 to vector<1x128xf32>
    %11 = arith.mulf %7, %10 : vector<1x128xf32>
    %12 = arith.mulf %9, %9 : vector<1x128xf32>
    %13 = arith.subf %11, %12 : vector<1x128xf32>
    %cst_7 = arith.constant 9.99999974E-6 : f32
    %14 = vector.broadcast %cst_7 : f32 to vector<1x128xf32>
    %15 = arith.addf %13, %14 : vector<1x128xf32>
    %16 = math.rsqrt %15 : vector<1x128xf32>
    %c0_8 = arith.constant 0 : index
    %c0_9 = arith.constant 0 : index
    %17 = vector.load %arg3[%c0_8, %c0_9] : memref<1x128xf32, #tpu.memory_space<vmem>>, vector<1x128xf32>
    %18 = arith.mulf %17, %16 : vector<1x128xf32>
    %c0_10 = arith.constant 0 : index
    %c0_11 = arith.constant 0 : index
    %19 = vector.load %arg4[%c0_10, %c0_11] : memref<1x128xf32, #tpu.memory_space<vmem>>, vector<1x128xf32>
    %20 = arith.mulf %9, %18 : vector<1x128xf32>
    %21 = arith.subf %19, %20 : vector<1x128xf32>
    %22 = vector.broadcast %18 : vector<1x128xf32> to vector<56x128xf32>
    %23 = arith.mulf %2, %22 : vector<56x128xf32>
    %24 = vector.broadcast %21 : vector<1x128xf32> to vector<56x128xf32>
    %25 = arith.addf %23, %24 : vector<56x128xf32>
    %c0_12 = arith.constant 0 : index
    %c0_13 = arith.constant 0 : index
    %26 = vector.load %arg5[%c0_12, %c0_13] : memref<56x128xf32, #tpu.memory_space<vmem>>, vector<56x128xf32>
    %27 = arith.addf %25, %26 : vector<56x128xf32>
    %c0_14 = arith.constant 0 : index
    %c0_15 = arith.constant 0 : index
    %28 = vector.load %arg6[%c0_14, %c0_15] : memref<56x128xf32, #tpu.memory_space<vmem>>, vector<56x128xf32>
    tpu.vector_store %arg6[%c0_14, %c0_15], %27 {strides = array<i32>} : memref<56x128xf32, #tpu.memory_space<vmem>>, vector<56x128xf32>,
    return
  }
  func.func @transform_0(%arg0: i32) -> (i32, i32) {
    %c0_i32 = arith.constant 0 : i32
    %c0_i32_0 = arith.constant 0 : i32
    %c0_i32_1 = arith.constant 0 : i32
    return %c0_i32, %c0_i32_0 : i32, i32
  }
  func.func @transform_1(%arg0: i32) -> (i32, i32) {
    %c0_i32 = arith.constant 0 : i32
    %c0_i32_0 = arith.constant 0 : i32
    return %c0_i32, %arg0 : i32, i32
  }
  func.func @transform_2(%arg0: i32) -> (i32, i32) {
    %c0_i32 = arith.constant 0 : i32
    %c0_i32_0 = arith.constant 0 : i32
    return %c0_i32, %arg0 : i32, i32
  }
  func.func @transform_3(%arg0: i32) -> (i32, i32) {
    %c0_i32 = arith.constant 0 : i32
    %c0_i32_0 = arith.constant 0 : i32
    return %c0_i32, %arg0 : i32, i32
  }
  func.func @transform_4(%arg0: i32) -> (i32, i32) {
    %c0_i32 = arith.constant 0 : i32
    %c0_i32_0 = arith.constant 0 : i32
    return %c0_i32, %arg0 : i32, i32
  }
  func.func @transform_5(%arg0: i32) -> (i32, i32) {
    %c0_i32 = arith.constant 0 : i32
    %c0_i32_0 = arith.constant 0 : i32
    return %c0_i32, %arg0 : i32, i32
  }
}

</mosaic_0001>

<bundles_post_ra>
// kernel: conv_bn_add.1
= control target key start
LH: loop header
LB: loop body
LE: loop exit
PB: predicated region body
PF: predicated region fallthrough
CT: control target
= control target key end

     0   :  { %s11235_s18 = smov 0   ;;  %s11237_s19 = smov 0   ;;  %s13253_s0 = inlined_call_operand.vmem [shape: bf16[56,4608], index: 0, kind: input, shape index: {}]   ;;  %s13254_s1 = inlined_call_operand.vmem [shape: bf16[4608,512], index: 1, kind: input, shape index: {}]   ;;  %s13255_s2 = inlined_call_operand.vmem [shape: f32[1,512], index: 2, kind: input, shape index: {}]   ;;  %s13256_s3 = inlined_call_operand.vmem [shape: f32[1,512], index: 3, kind: input, shape index: {}]   ;;  %s13257_s4 = inlined_call_operand.vmem [shape: f32[56,512], index: 4, kind: input, shape index: {}]   ;;  %s13258_s5 = inlined_call_operand.vmem [shape: f32[56,512], index: 5, kind: output, shape index: {}]  }
   0x1   :  { %s11239_s20 = smov 0  }
   0x2 LB: > { %s11251_s21 = sadd.s32 4294967295, %s11203_s20   ;;  %s11254_s22 = sadd.s32 1, %s11203_s20   ;;  %s11203_s20 = sphi %s11239_s20, %s13263_s20   ;;  %s11199_s19 = sphi %s11237_s19, %s13262_s19   ;;  %s11195_s18 = sphi %s11235_s18, %s13261_s18  }
   0x3   : > { %s40_s23 = ssub.s32 %s11203_s20, %s11254_s22  ;;  %s43_s24 = sadd.s32 1, %s11199_s19 }
   0x4   : > { %p41_p0 = scmp.eq.s32.totalorder %s40_s23, 0  ;;  %p50_p1 = scmp.ne.s32.totalorder %s11199_s19, %s11195_s18 }
   0x5   : > { %p51_p2 = scmp.eq.s32.totalorder %s11203_s20, 0  ;;  %p158_p3 = scmp.eq.s32.totalorder %s11251_s21, 3 }
   0x6   : > { %s11264_s25 = scalar_select %p41_p0, %s11199_s19, %s43_s24  }
   0x7   : > { %p11266_p4 = por %p51_p2, %p50_p1  ;;  %p11270_p5 = por %p158_p3, %p50_p1 }
   0x8   : > { %p9506_p6 = scmp.ge.s32.totalorder %s11203_s20, 4 }
   0xa   : > { %183 = sbr.rel (%p9506_p6) target bundleno = 416 (0x1a0), region = 20 }
  0x11   : > { %186 = sbr.rel (!%p11266_p4) target bundleno = 405 (0x195), region = 24  ;;  %s188_s28 = sand.u32 (%p11266_p4), 1, %s11199_s19  }
  0x12   : > { %s9507_s29 = sshll.u32 (%p11266_p4), %s11203_s20, 2  ;;  %s10665_s30 = smul.u32 (%p11266_p4), 2304, %s188_s28 }
  0x13   : > { %s11282_s8 = scalar_lea.vmem (%p11266_p4), %s13254_s1, %s9507_s29 }
  0x14   : > { %v208_v0 = vld [vmem:[%s11282_s8] sm:$0xf] (%p11266_p4)  ;;  %v210_v1 = vld [vmem:[%s11282_s8 + $0x10] sm:$0xf] (%p11266_p4)  ;;  %s11289_s9 = scalar_lea.vmem (%p11266_p4), [#allocation2], %s10665_s30 }
  0x15   : > { %v212_v2 = vld [vmem:[%s11282_s8 + $0x20] sm:$0xf] (%p11266_p4)  ;;  %v214_v3 = vld [vmem:[%s11282_s8 + $0x30] sm:$0xf] (%p11266_p4)  ;;  %209 = vst [vmem:[%s11289_s9] sm:$0xf] (%p11266_p4), %v208_v0 }
  0x16   : > { %v216_v4 = vld [vmem:[%s11282_s8 + $0x40] sm:$0xf] (%p11266_p4)  ;;  %211 = vst [vmem:[%s11289_s9 + $0x4] sm:$0xf] (%p11266_p4), %v210_v1  ;;  %213 = vst [vmem:[%s11289_s9 + $0x8] sm:$0xf] (%p11266_p4), %v212_v2 }
  0x17   : > { %215 = vst [vmem:[%s11289_s9 + $0xc] sm:$0xf] (%p11266_p4), %v214_v3  ;;  %217 = vst [vmem:[%s11289_s9 + $0x10] sm:$0xf] (%p11266_p4), %v216_v4  ;;  %v218_v5 = vld [vmem:[%s11282_s8 + $0x50] sm:$0xf] (%p11266_p4) }
  0x18   : > { %v220_v6 = vld [vmem:[%s11282_s8 + $0x60] sm:$0xf]  ;;  %v222_v7 = vld [vmem:[%s11282_s8 + $0x70] sm:$0xf]  ;;  %219 = vst [vmem:[%s11289_s9 + $0x14] sm:$0xf] %v218_v5 }
  0x19   : > { %221 = vst [vmem:[%s11289_s9 + $0x18] sm:$0xf] %v220_v6  ;;  %223 = vst [vmem:[%s11289_s9 + $0x1c] sm:$0xf] %v222_v7  ;;  %v224_v8 = vld [vmem:[%s11282_s8 + $0x80] sm:$0xf] }
  0x1a   : > { %v226_v9 = vld [vmem:[%s11282_s8 + $0x90] sm:$0xf]  ;;  %v228_v10 = vld [vmem:[%s11282_s8 + $0xa0] sm:$0xf]  ;;  %225 = vst [vmem:[%s11289_s9 + $0x20] sm:$0xf] %v224_v8 }
  0x1b   : > { %227 = vst [vmem:[%s11289_s9 + $0x24] sm:$0xf] %v226_v9  ;;  %229 = vst [vmem:[%s11289_s9 + $0x28] sm:$0xf] %v228_v10  ;;  %v230_v11 = vld [vmem:[%s11282_s8 + $0xb0] sm:$0xf] }
  0x1c   : > { %v232_v12 = vld [vmem:[%s11282_s8 + $0xc0] sm:$0xf]  ;;  %v234_v13 = vld [vmem:[%s11282_s8 + $0xd0] sm:$0xf]  ;;  %231 = vst [vmem:[%s11289_s9 + $0x2c] sm:$0xf] %v230_v11 }
  0x1d   : > { %233 = vst [vmem:[%s11289_s9 + $0x30] sm:$0xf] %v232_v12  ;;  %235 = vst [vmem:[%s11289_s9 + $0x34] sm:$0xf] %v234_v13  ;;  %v236_v14 = vld [vmem:[%s11282_s8 + $0xe0] sm:$0xf] }
  0x1e   : > { %v238_v15 = vld [vmem:[%s11282_s8 + $0xf0] sm:$0xf]  ;;  %v240_v16 = vld [vmem:[%s11282_s8 + $0x100] sm:$0xf]  ;;  %237 = vst [vmem:[%s11289_s9 + $0x38] sm:$0xf] %v236_v14 }
  0x1f   : > { %239 = vst [vmem:[%s11289_s9 + $0x3c] sm:$0xf] %v238_v15  ;;  %241 = vst [vmem:[%s11289_s9 + $0x40] sm:$0xf] %v240_v16  ;;  %v242_v17 = vld [vmem:[%s11282_s8 + $0x110] sm:$0xf] }
  0x20   : > { %v244_v18 = vld [vmem:[%s11282_s8 + $0x120] sm:$0xf]  ;;  %v246_v19 = vld [vmem:[%s11282_s8 + $0x130] sm:$0xf]  ;;  %243 = vst [vmem:[%s11289_s9 + $0x44] sm:$0xf] %v242_v17 }
  0x21   : > { %245 = vst [vmem:[%s11289_s9 + $0x48] sm:$0xf] %v244_v18  ;;  %247 = vst [vmem:[%s11289_s9 + $0x4c] sm:$0xf] %v246_v19  ;;  %v248_v20 = vld [vmem:[%s11282_s8 + $0x140] sm:$0xf] }
  0x22   : > { %v250_v21 = vld [vmem:[%s11282_s8 + $0x150] sm:$0xf]  ;;  %v252_v22 = vld [vmem:[%s11282_s8 + $0x160] sm:$0xf]  ;;  %249 = vst [vmem:[%s11289_s9 + $0x50] sm:$0xf] %v248_v20 }
  0x23   : > { %251 = vst [vmem:[%s11289_s9 + $0x54] sm:$0xf] %v250_v21  ;;  %253 = vst [vmem:[%s11289_s9 + $0x58] sm:$0xf] %v252_v22  ;;  %v254_v23 = vld [vmem:[%s11282_s8 + $0x170] sm:$0xf] }
  0x24   : > { %v256_v24 = vld [vmem:[%s11282_s8 + $0x180] sm:$0xf]  ;;  %v258_v25 = vld [vmem:[%s11282_s8 + $0x190] sm:$0xf]  ;;  %255 = vst [vmem:[%s11289_s9 + $0x5c] sm:$0xf] %v254_v23 }
  0x25   : > { %257 = vst [vmem:[%s11289_s9 + $0x60] sm:$0xf] %v256_v24  ;;  %259 = vst [vmem:[%s11289_s9 + $0x64] sm:$0xf] %v258_v25  ;;  %v260_v26 = vld [vmem:[%s11282_s8 + $0x1a0] sm:$0xf] }
  0x26   : > { %v262_v27 = vld [vmem:[%s11282_s8 + $0x1b0] sm:$0xf]  ;;  %v264_v28 = vld [vmem:[%s11282_s8 + $0x1c0] sm:$0xf]  ;;  %261 = vst [vmem:[%s11289_s9 + $0x68] sm:$0xf] %v260_v26 }
  0x27   : > { %263 = vst [vmem:[%s11289_s9 + $0x6c] sm:$0xf] %v262_v27  ;;  %265 = vst [vmem:[%s11289_s9 + $0x70] sm:$0xf] %v264_v28  ;;  %v266_v29 = vld [vmem:[%s11282_s8 + $0x1d0] sm:$0xf] }
  0x28   : > { %v268_v30 = vld [vmem:[%s11282_s8 + $0x1e0] sm:$0xf]  ;;  %v270_v31 = vld [vmem:[%s11282_s8 + $0x1f0] sm:$0xf]  ;;  %267 = vst [vmem:[%s11289_s9 + $0x74] sm:$0xf] %v266_v29 }
  0x29   : > { %269 = vst [vmem:[%s11289_s9 + $0x78] sm:$0xf] %v268_v30  ;;  %271 = vst [vmem:[%s11289_s9 + $0x7c] sm:$0xf] %v270_v31  ;;  %v272_v32 = vld [vmem:[%s11282_s8 + $0x200] sm:$0xf] }
  0x2a   : > { %v274_v33 = vld [vmem:[%s11282_s8 + $0x210] sm:$0xf]  ;;  %v276_v34 = vld [vmem:[%s11282_s8 + $0x220] sm:$0xf]  ;;  %273 = vst [vmem:[%s11289_s9 + $0x80] sm:$0xf] %v272_v32 }
  0x2b   : > { %275 = vst [vmem:[%s11289_s9 + $0x84] sm:$0xf] %v274_v33  ;;  %277 = vst [vmem:[%s11289_s9 + $0x88] sm:$0xf] %v276_v34  ;;  %v278_v35 = vld [vmem:[%s11282_s8 + $0x230] sm:$0xf] }
  0x2c   : > { %v280_v36 = vld [vmem:[%s11282_s8 + $0x240] sm:$0xf]  ;;  %v282_v37 = vld [vmem:[%s11282_s8 + $0x250] sm:$0xf]  ;;  %279 = vst [vmem:[%s11289_s9 + $0x8c] sm:$0xf] %v278_v35 }
  0x2d   : > { %281 = vst [vmem:[%s11289_s9 + $0x90] sm:$0xf] %v280_v36  ;;  %283 = vst [vmem:[%s11289_s9 + $0x94] sm:$0xf] %v282_v37  ;;  %v284_v38 = vld [vmem:[%s11282_s8 + $0x260] sm:$0xf] }
  0x2e   : > { %v286_v39 = vld [vmem:[%s11282_s8 + $0x270] sm:$0xf]  ;;  %v288_v40 = vld [vmem:[%s11282_s8 + $0x280] sm:$0xf]  ;;  %285 = vst [vmem:[%s11289_s9 + $0x98] sm:$0xf] %v284_v38 }
  0x2f   : > { %287 = vst [vmem:[%s11289_s9 + $0x9c] sm:$0xf] %v286_v39  ;;  %289 = vst [vmem:[%s11289_s9 + $0xa0] sm:$0xf] %v288_v40  ;;  %v290_v41 = vld [vmem:[%s11282_s8 + $0x290] sm:$0xf] }
  0x30   : > { %v292_v42 = vld [vmem:[%s11282_s8 + $0x2a0] sm:$0xf]  ;;  %v294_v43 = vld [vmem:[%s11282_s8 + $0x2b0] sm:$0xf]  ;;  %291 = vst [vmem:[%s11289_s9 + $0xa4] sm:$0xf] %v290_v41 }
  0x31   : > { %293 = vst [vmem:[%s11289_s9 + $0xa8] sm:$0xf] %v292_v42  ;;  %295 = vst [vmem:[%s11289_s9 + $0xac] sm:$0xf] %v294_v43  ;;  %v296_v44 = vld [vmem:[%s11282_s8 + $0x2c0] sm:$0xf] }
  0x32   : > { %v298_v45 = vld [vmem:[%s11282_s8 + $0x2d0] sm:$0xf]  ;;  %v300_v46 = vld [vmem:[%s11282_s8 + $0x2e0] sm:$0xf]  ;;  %297 = vst [vmem:[%s11289_s9 + $0xb0] sm:$0xf] %v296_v44 }
  0x33   : > { %299 = vst [vmem:[%s11289_s9 + $0xb4] sm:$0xf] %v298_v45  ;;  %301 = vst [vmem:[%s11289_s9 + $0xb8] sm:$0xf] %v300_v46  ;;  %v302_v47 = vld [vmem:[%s11282_s8 + $0x2f0] sm:$0xf] }
  0x34   : > { %v304_v48 = vld [vmem:[%s11282_s8 + $0x300] sm:$0xf]  ;;  %v306_v49 = vld [vmem:[%s11282_s8 + $0x310] sm:$0xf]  ;;  %303 = vst [vmem:[%s11289_s9 + $0xbc] sm:$0xf] %v302_v47 }
  0x35   : > { %305 = vst [vmem:[%s11289_s9 + $0xc0] sm:$0xf] %v304_v48  ;;  %307 = vst [vmem:[%s11289_s9 + $0xc4] sm:$0xf] %v306_v49  ;;  %v308_v50 = vld [vmem:[%s11282_s8 + $0x320] sm:$0xf] }
  0x36   : > { %v310_v51 = vld [vmem:[%s11282_s8 + $0x330] sm:$0xf]  ;;  %v312_v52 = vld [vmem:[%s11282_s8 + $0x340] sm:$0xf]  ;;  %309 = vst [vmem:[%s11289_s9 + $0xc8] sm:$0xf] %v308_v50 }
  0x37   : > { %311 = vst [vmem:[%s11289_s9 + $0xcc] sm:$0xf] %v310_v51  ;;  %313 = vst [vmem:[%s11289_s9 + $0xd0] sm:$0xf] %v312_v52  ;;  %v314_v53 = vld [vmem:[%s11282_s8 + $0x350] sm:$0xf] }
  0x38   : > { %v316_v54 = vld [vmem:[%s11282_s8 + $0x360] sm:$0xf]  ;;  %v318_v55 = vld [vmem:[%s11282_s8 + $0x370] sm:$0xf]  ;;  %315 = vst [vmem:[%s11289_s9 + $0xd4] sm:$0xf] %v314_v53 }
  0x39   : > { %317 = vst [vmem:[%s11289_s9 + $0xd8] sm:$0xf] %v316_v54  ;;  %319 = vst [vmem:[%s11289_s9 + $0xdc] sm:$0xf] %v318_v55  ;;  %v320_v56 = vld [vmem:[%s11282_s8 + $0x380] sm:$0xf] }
  0x3a   : > { %v322_v57 = vld [vmem:[%s11282_s8 + $0x390] sm:$0xf]  ;;  %v324_v58 = vld [vmem:[%s11282_s8 + $0x3a0] sm:$0xf]  ;;  %321 = vst [vmem:[%s11289_s9 + $0xe0] sm:$0xf] %v320_v56 }
  0x3b   : > { %323 = vst [vmem:[%s11289_s9 + $0xe4] sm:$0xf] %v322_v57  ;;  %325 = vst [vmem:[%s11289_s9 + $0xe8] sm:$0xf] %v324_v58  ;;  %v326_v59 = vld [vmem:[%s11282_s8 + $0x3b0] sm:$0xf] }
  0x3c   : > { %v328_v60 = vld [vmem:[%s11282_s8 + $0x3c0] sm:$0xf]  ;;  %v330_v61 = vld [vmem:[%s11282_s8 + $0x3d0] sm:$0xf]  ;;  %327 = vst [vmem:[%s11289_s9 + $0xec] sm:$0xf] %v326_v59 }
  0x3d   : > { %329 = vst [vmem:[%s11289_s9 + $0xf0] sm:$0xf] %v328_v60  ;;  %331 = vst [vmem:[%s11289_s9 + $0xf4] sm:$0xf] %v330_v61  ;;  %v332_v62 = vld [vmem:[%s11282_s8 + $0x3e0] sm:$0xf] }
  0x3e   : > { %v334_v63 = vld [vmem:[%s11282_s8 + $0x3f0] sm:$0xf]  ;;  %v336_v0 = vld [vmem:[%s11282_s8 + $0x400] sm:$0xf]  ;;  %333 = vst [vmem:[%s11289_s9 + $0xf8] sm:$0xf] %v332_v62 }
  0x3f   : > { %335 = vst [vmem:[%s11289_s9 + $0xfc] sm:$0xf] %v334_v63  ;;  %337 = vst [vmem:[%s11289_s9 + $0x100] sm:$0xf] %v336_v0  ;;  %v338_v1 = vld [vmem:[%s11282_s8 + $0x410] sm:$0xf] }
  0x40   : > { %v340_v2 = vld [vmem:[%s11282_s8 + $0x420] sm:$0xf]  ;;  %v342_v3 = vld [vmem:[%s11282_s8 + $0x430] sm:$0xf]  ;;  %339 = vst [vmem:[%s11289_s9 + $0x104] sm:$0xf] %v338_v1 }
  0x41   : > { %341 = vst [vmem:[%s11289_s9 + $0x108] sm:$0xf] %v340_v2  ;;  %343 = vst [vmem:[%s11289_s9 + $0x10c] sm:$0xf] %v342_v3  ;;  %v344_v4 = vld [vmem:[%s11282_s8 + $0x440] sm:$0xf] }
  0x42   : > { %v346_v5 = vld [vmem:[%s11282_s8 + $0x450] sm:$0xf]  ;;  %v348_v6 = vld [vmem:[%s11282_s8 + $0x460] sm:$0xf]  ;;  %345 = vst [vmem:[%s11289_s9 + $0x110] sm:$0xf] %v344_v4 }
  0x43   : > { %347 = vst [vmem:[%s11289_s9 + $0x114] sm:$0xf] %v346_v5  ;;  %349 = vst [vmem:[%s11289_s9 + $0x118] sm:$0xf] %v348_v6  ;;  %v350_v7 = vld [vmem:[%s11282_s8 + $0x470] sm:$0xf] }
  0x44   : > { %v352_v8 = vld [vmem:[%s11282_s8 + $0x480] sm:$0xf]  ;;  %v354_v9 = vld [vmem:[%s11282_s8 + $0x490] sm:$0xf]  ;;  %351 = vst [vmem:[%s11289_s9 + $0x11c] sm:$0xf] %v350_v7 }
  0x45   : > { %353 = vst [vmem:[%s11289_s9 + $0x120] sm:$0xf] %v352_v8  ;;  %355 = vst [vmem:[%s11289_s9 + $0x124] sm:$0xf] %v354_v9  ;;  %v356_v10 = vld [vmem:[%s11282_s8 + $0x4a0] sm:$0xf] }
  0x46   : > { %v358_v11 = vld [vmem:[%s11282_s8 + $0x4b0] sm:$0xf]  ;;  %v360_v12 = vld [vmem:[%s11282_s8 + $0x4c0] sm:$0xf]  ;;  %357 = vst [vmem:[%s11289_s9 + $0x128] sm:$0xf] %v356_v10 }
  0x47   : > { %359 = vst [vmem:[%s11289_s9 + $0x12c] sm:$0xf] %v358_v11  ;;  %361 = vst [vmem:[%s11289_s9 + $0x130] sm:$0xf] %v360_v12  ;;  %v362_v13 = vld [vmem:[%s11282_s8 + $0x4d0] sm:$0xf] }
  0x48   : > { %v364_v14 = vld [vmem:[%s11282_s8 + $0x4e0] sm:$0xf]  ;;  %v366_v15 = vld [vmem:[%s11282_s8 + $0x4f0] sm:$0xf]  ;;  %363 = vst [vmem:[%s11289_s9 + $0x134] sm:$0xf] %v362_v13 }
  0x49   : > { %365 = vst [vmem:[%s11289_s9 + $0x138] sm:$0xf] %v364_v14  ;;  %367 = vst [vmem:[%s11289_s9 + $0x13c] sm:$0xf] %v366_v15  ;;  %v368_v16 = vld [vmem:[%s11282_s8 + $0x500] sm:$0xf] }
  0x4a   : > { %v370_v17 = vld [vmem:[%s11282_s8 + $0x510] sm:$0xf]  ;;  %v372_v18 = vld [vmem:[%s11282_s8 + $0x520] sm:$0xf]  ;;  %369 = vst [vmem:[%s11289_s9 + $0x140] sm:$0xf] %v368_v16 }
  0x4b   : > { %371 = vst [vmem:[%s11289_s9 + $0x144] sm:$0xf] %v370_v17  ;;  %373 = vst [vmem:[%s11289_s9 + $0x148] sm:$0xf] %v372_v18  ;;  %v374_v19 = vld [vmem:[%s11282_s8 + $0x530] sm:$0xf] }
  0x4c   : > { %v376_v20 = vld [vmem:[%s11282_s8 + $0x540] sm:$0xf]  ;;  %v378_v21 = vld [vmem:[%s11282_s8 + $0x550] sm:$0xf]  ;;  %375 = vst [vmem:[%s11289_s9 + $0x14c] sm:$0xf] %v374_v19 }
  0x4d   : > { %377 = vst [vmem:[%s11289_s9 + $0x150] sm:$0xf] %v376_v20  ;;  %379 = vst [vmem:[%s11289_s9 + $0x154] sm:$0xf] %v378_v21  ;;  %v380_v22 = vld [vmem:[%s11282_s8 + $0x560] sm:$0xf] }
  0x4e   : > { %v382_v23 = vld [vmem:[%s11282_s8 + $0x570] sm:$0xf]  ;;  %v384_v24 = vld [vmem:[%s11282_s8 + $0x580] sm:$0xf]  ;;  %381 = vst [vmem:[%s11289_s9 + $0x158] sm:$0xf] %v380_v22 }
  0x4f   : > { %383 = vst [vmem:[%s11289_s9 + $0x15c] sm:$0xf] %v382_v23  ;;  %385 = vst [vmem:[%s11289_s9 + $0x160] sm:$0xf] %v384_v24  ;;  %v386_v25 = vld [vmem:[%s11282_s8 + $0x590] sm:$0xf] }
  0x50   : > { %v388_v26 = vld [vmem:[%s11282_s8 + $0x5a0] sm:$0xf]  ;;  %v390_v27 = vld [vmem:[%s11282_s8 + $0x5b0] sm:$0xf]  ;;  %387 = vst [vmem:[%s11289_s9 + $0x164] sm:$0xf] %v386_v25 }
  0x51   : > { %389 = vst [vmem:[%s11289_s9 + $0x168] sm:$0xf] %v388_v26  ;;  %391 = vst [vmem:[%s11289_s9 + $0x16c] sm:$0xf] %v390_v27  ;;  %v392_v28 = vld [vmem:[%s11282_s8 + $0x5c0] sm:$0xf] }
  0x52   : > { %v394_v29 = vld [vmem:[%s11282_s8 + $0x5d0] sm:$0xf]  ;;  %v396_v30 = vld [vmem:[%s11282_s8 + $0x5e0] sm:$0xf]  ;;  %393 = vst [vmem:[%s11289_s9 + $0x170] sm:$0xf] %v392_v28 }
  0x53   : > { %395 = vst [vmem:[%s11289_s9 + $0x174] sm:$0xf] %v394_v29  ;;  %397 = vst [vmem:[%s11289_s9 + $0x178] sm:$0xf] %v396_v30  ;;  %v398_v31 = vld [vmem:[%s11282_s8 + $0x5f0] sm:$0xf] }
  0x54   : > { %v400_v32 = vld [vmem:[%s11282_s8 + $0x600] sm:$0xf]  ;;  %v402_v33 = vld [vmem:[%s11282_s8 + $0x610] sm:$0xf]  ;;  %399 = vst [vmem:[%s11289_s9 + $0x17c] sm:$0xf] %v398_v31 }
  0x55   : > { %401 = vst [vmem:[%s11289_s9 + $0x180] sm:$0xf] %v400_v32  ;;  %403 = vst [vmem:[%s11289_s9 + $0x184] sm:$0xf] %v402_v33  ;;  %v404_v34 = vld [vmem:[%s11282_s8 + $0x620] sm:$0xf] }
  0x56   : > { %v406_v35 = vld [vmem:[%s11282_s8 + $0x630] sm:$0xf]  ;;  %v408_v36 = vld [vmem:[%s11282_s8 + $0x640] sm:$0xf]  ;;  %405 = vst [vmem:[%s11289_s9 + $0x188] sm:$0xf] %v404_v34 }
  0x57   : > { %407 = vst [vmem:[%s11289_s9 + $0x18c] sm:$0xf] %v406_v35  ;;  %409 = vst [vmem:[%s11289_s9 + $0x190] sm:$0xf] %v408_v36  ;;  %v410_v37 = vld [vmem:[%s11282_s8 + $0x650] sm:$0xf] }
  0x58   : > { %v412_v38 = vld [vmem:[%s11282_s8 + $0x660] sm:$0xf]  ;;  %v414_v39 = vld [vmem:[%s11282_s8 + $0x670] sm:$0xf]  ;;  %411 = vst [vmem:[%s11289_s9 + $0x194] sm:$0xf] %v410_v37 }
  0x59   : > { %413 = vst [vmem:[%s11289_s9 + $0x198] sm:$0xf] %v412_v38  ;;  %415 = vst [vmem:[%s11289_s9 + $0x19c] sm:$0xf] %v414_v39  ;;  %v416_v40 = vld [vmem:[%s11282_s8 + $0x680] sm:$0xf] }
  0x5a   : > { %v418_v41 = vld [vmem:[%s11282_s8 + $0x690] sm:$0xf]  ;;  %v420_v42 = vld [vmem:[%s11282_s8 + $0x6a0] sm:$0xf]  ;;  %417 = vst [vmem:[%s11289_s9 + $0x1a0] sm:$0xf] %v416_v40 }
  0x5b   : > { %419 = vst [vmem:[%s11289_s9 + $0x1a4] sm:$0xf] %v418_v41  ;;  %421 = vst [vmem:[%s11289_s9 + $0x1a8] sm:$0xf] %v420_v42  ;;  %v422_v43 = vld [vmem:[%s11282_s8 + $0x6b0] sm:$0xf] }
  0x5c   : > { %v424_v44 = vld [vmem:[%s11282_s8 + $0x6c0] sm:$0xf]  ;;  %v426_v45 = vld [vmem:[%s11282_s8 + $0x6d0] sm:$0xf]  ;;  %423 = vst [vmem:[%s11289_s9 + $0x1ac] sm:$0xf] %v422_v43 }
  0x5d   : > { %425 = vst [vmem:[%s11289_s9 + $0x1b0] sm:$0xf] %v424_v44  ;;  %427 = vst [vmem:[%s11289_s9 + $0x1b4] sm:$0xf] %v426_v45  ;;  %v428_v46 = vld [vmem:[%s11282_s8 + $0x6e0] sm:$0xf] }
  0x5e   : > { %v430_v47 = vld [vmem:[%s11282_s8 + $0x6f0] sm:$0xf]  ;;  %v432_v48 = vld [vmem:[%s11282_s8 + $0x700] sm:$0xf]  ;;  %429 = vst [vmem:[%s11289_s9 + $0x1b8] sm:$0xf] %v428_v46 }
  0x5f   : > { %431 = vst [vmem:[%s11289_s9 + $0x1bc] sm:$0xf] %v430_v47  ;;  %433 = vst [vmem:[%s11289_s9 + $0x1c0] sm:$0xf] %v432_v48  ;;  %v434_v49 = vld [vmem:[%s11282_s8 + $0x710] sm:$0xf] }
  0x60   : > { %v436_v50 = vld [vmem:[%s11282_s8 + $0x720] sm:$0xf]  ;;  %v438_v51 = vld [vmem:[%s11282_s8 + $0x730] sm:$0xf]  ;;  %435 = vst [vmem:[%s11289_s9 + $0x1c4] sm:$0xf] %v434_v49 }
  0x61   : > { %437 = vst [vmem:[%s11289_s9 + $0x1c8] sm:$0xf] %v436_v50  ;;  %439 = vst [vmem:[%s11289_s9 + $0x1cc] sm:$0xf] %v438_v51  ;;  %v440_v52 = vld [vmem:[%s11282_s8 + $0x740] sm:$0xf] }
  0x62   : > { %v442_v53 = vld [vmem:[%s11282_s8 + $0x750] sm:$0xf]  ;;  %v444_v54 = vld [vmem:[%s11282_s8 + $0x760] sm:$0xf]  ;;  %441 = vst [vmem:[%s11289_s9 + $0x1d0] sm:$0xf] %v440_v52 }
  0x63   : > { %443 = vst [vmem:[%s11289_s9 + $0x1d4] sm:$0xf] %v442_v53  ;;  %445 = vst [vmem:[%s11289_s9 + $0x1d8] sm:$0xf] %v444_v54  ;;  %v446_v55 = vld [vmem:[%s11282_s8 + $0x770] sm:$0xf] }
  0x64   : > { %v448_v56 = vld [vmem:[%s11282_s8 + $0x780] sm:$0xf]  ;;  %v450_v57 = vld [vmem:[%s11282_s8 + $0x790] sm:$0xf]  ;;  %447 = vst [vmem:[%s11289_s9 + $0x1dc] sm:$0xf] %v446_v55 }
  0x65   : > { %449 = vst [vmem:[%s11289_s9 + $0x1e0] sm:$0xf] %v448_v56  ;;  %451 = vst [vmem:[%s11289_s9 + $0x1e4] sm:$0xf] %v450_v57  ;;  %v452_v58 = vld [vmem:[%s11282_s8 + $0x7a0] sm:$0xf] }
  0x66   : > { %v454_v59 = vld [vmem:[%s11282_s8 + $0x7b0] sm:$0xf]  ;;  %v456_v60 = vld [vmem:[%s11282_s8 + $0x7c0] sm:$0xf]  ;;  %453 = vst [vmem:[%s11289_s9 + $0x1e8] sm:$0xf] %v452_v58 }
  0x67   : > { %455 = vst [vmem:[%s11289_s9 + $0x1ec] sm:$0xf] %v454_v59  ;;  %457 = vst [vmem:[%s11289_s9 + $0x1f0] sm:$0xf] %v456_v60  ;;  %v458_v61 = vld [vmem:[%s11282_s8 + $0x7d0] sm:$0xf] }
  0x68   : > { %v460_v62 = vld [vmem:[%s11282_s8 + $0x7e0] sm:$0xf]  ;;  %v462_v63 = vld [vmem:[%s11282_s8 + $0x7f0] sm:$0xf]  ;;  %459 = vst [vmem:[%s11289_s9 + $0x1f4] sm:$0xf] %v458_v61 }
  0x69   : > { %461 = vst [vmem:[%s11289_s9 + $0x1f8] sm:$0xf] %v460_v62  ;;  %463 = vst [vmem:[%s11289_s9 + $0x1fc] sm:$0xf] %v462_v63  ;;  %v464_v0 = vld [vmem:[%s11282_s8 + $0x800] sm:$0xf] }
  0x6a   : > { %v466_v1 = vld [vmem:[%s11282_s8 + $0x810] sm:$0xf]  ;;  %v468_v2 = vld [vmem:[%s11282_s8 + $0x820] sm:$0xf]  ;;  %465 = vst [vmem:[%s11289_s9 + $0x200] sm:$0xf] %v464_v0 }
  0x6b   : > { %467 = vst [vmem:[%s11289_s9 + $0x204] sm:$0xf] %v466_v1  ;;  %469 = vst [vmem:[%s11289_s9 + $0x208] sm:$0xf] %v468_v2  ;;  %v470_v3 = vld [vmem:[%s11282_s8 + $0x830] sm:$0xf] }
  0x6c   : > { %v472_v4 = vld [vmem:[%s11282_s8 + $0x840] sm:$0xf]  ;;  %v474_v5 = vld [vmem:[%s11282_s8 + $0x850] sm:$0xf]  ;;  %471 = vst [vmem:[%s11289_s9 + $0x20c] sm:$0xf] %v470_v3 }
  0x6d   : > { %473 = vst [vmem:[%s11289_s9 + $0x210] sm:$0xf] %v472_v4  ;;  %475 = vst [vmem:[%s11289_s9 + $0x214] sm:$0xf] %v474_v5  ;;  %v476_v6 = vld [vmem:[%s11282_s8 + $0x860] sm:$0xf] }
  0x6e   : > { %v478_v7 = vld [vmem:[%s11282_s8 + $0x870] sm:$0xf]  ;;  %v480_v8 = vld [vmem:[%s11282_s8 + $0x880] sm:$0xf]  ;;  %477 = vst [vmem:[%s11289_s9 + $0x218] sm:$0xf] %v476_v6 }
  0x6f   : > { %479 = vst [vmem:[%s11289_s9 + $0x21c] sm:$0xf] %v478_v7  ;;  %481 = vst [vmem:[%s11289_s9 + $0x220] sm:$0xf] %v480_v8  ;;  %v482_v9 = vld [vmem:[%s11282_s8 + $0x890] sm:$0xf] }
  0x70   : > { %v484_v10 = vld [vmem:[%s11282_s8 + $0x8a0] sm:$0xf]  ;;  %v486_v11 = vld [vmem:[%s11282_s8 + $0x8b0] sm:$0xf]  ;;  %483 = vst [vmem:[%s11289_s9 + $0x224] sm:$0xf] %v482_v9 }
  0x71   : > { %485 = vst [vmem:[%s11289_s9 + $0x228] sm:$0xf] %v484_v10  ;;  %487 = vst [vmem:[%s11289_s9 + $0x22c] sm:$0xf] %v486_v11  ;;  %v488_v12 = vld [vmem:[%s11282_s8 + $0x8c0] sm:$0xf] }
  0x72   : > { %v490_v13 = vld [vmem:[%s11282_s8 + $0x8d0] sm:$0xf]  ;;  %v492_v14 = vld [vmem:[%s11282_s8 + $0x8e0] sm:$0xf]  ;;  %489 = vst [vmem:[%s11289_s9 + $0x230] sm:$0xf] %v488_v12 }
  0x73   : > { %491 = vst [vmem:[%s11289_s9 + $0x234] sm:$0xf] %v490_v13  ;;  %493 = vst [vmem:[%s11289_s9 + $0x238] sm:$0xf] %v492_v14  ;;  %v494_v15 = vld [vmem:[%s11282_s8 + $0x8f0] sm:$0xf] }
  0x74   : > { %v496_v16 = vld [vmem:[%s11282_s8 + $0x900] sm:$0xf]  ;;  %v498_v17 = vld [vmem:[%s11282_s8 + $0x910] sm:$0xf]  ;;  %495 = vst [vmem:[%s11289_s9 + $0x23c] sm:$0xf] %v494_v15 }
  0x75   : > { %497 = vst [vmem:[%s11289_s9 + $0x240] sm:$0xf] %v496_v16  ;;  %499 = vst [vmem:[%s11289_s9 + $0x244] sm:$0xf] %v498_v17  ;;  %v500_v18 = vld [vmem:[%s11282_s8 + $0x920] sm:$0xf] }
  0x76   : > { %v502_v19 = vld [vmem:[%s11282_s8 + $0x930] sm:$0xf]  ;;  %v504_v20 = vld [vmem:[%s11282_s8 + $0x940] sm:$0xf]  ;;  %501 = vst [vmem:[%s11289_s9 + $0x248] sm:$0xf] %v500_v18 }
  0x77   : > { %503 = vst [vmem:[%s11289_s9 + $0x24c] sm:$0xf] %v502_v19  ;;  %505 = vst [vmem:[%s11289_s9 + $0x250] sm:$0xf] %v504_v20  ;;  %v506_v21 = vld [vmem:[%s11282_s8 + $0x950] sm:$0xf] }
  0x78   : > { %v508_v22 = vld [vmem:[%s11282_s8 + $0x960] sm:$0xf]  ;;  %v510_v23 = vld [vmem:[%s11282_s8 + $0x970] sm:$0xf]  ;;  %507 = vst [vmem:[%s11289_s9 + $0x254] sm:$0xf] %v506_v21 }
  0x79   : > { %509 = vst [vmem:[%s11289_s9 + $0x258] sm:$0xf] %v508_v22  ;;  %511 = vst [vmem:[%s11289_s9 + $0x25c] sm:$0xf] %v510_v23  ;;  %v512_v24 = vld [vmem:[%s11282_s8 + $0x980] sm:$0xf] }
  0x7a   : > { %v514_v25 = vld [vmem:[%s11282_s8 + $0x990] sm:$0xf]  ;;  %v516_v26 = vld [vmem:[%s11282_s8 + $0x9a0] sm:$0xf]  ;;  %513 = vst [vmem:[%s11289_s9 + $0x260] sm:$0xf] %v512_v24 }
  0x7b   : > { %515 = vst [vmem:[%s11289_s9 + $0x264] sm:$0xf] %v514_v25  ;;  %517 = vst [vmem:[%s11289_s9 + $0x268] sm:$0xf] %v516_v26  ;;  %v518_v27 = vld [vmem:[%s11282_s8 + $0x9b0] sm:$0xf] }
  0x7c   : > { %v520_v28 = vld [vmem:[%s11282_s8 + $0x9c0] sm:$0xf]  ;;  %v522_v29 = vld [vmem:[%s11282_s8 + $0x9d0] sm:$0xf]  ;;  %519 = vst [vmem:[%s11289_s9 + $0x26c] sm:$0xf] %v518_v27 }
  0x7d   : > { %521 = vst [vmem:[%s11289_s9 + $0x270] sm:$0xf] %v520_v28  ;;  %523 = vst [vmem:[%s11289_s9 + $0x274] sm:$0xf] %v522_v29  ;;  %v524_v30 = vld [vmem:[%s11282_s8 + $0x9e0] sm:$0xf] }
  0x7e   : > { %v526_v31 = vld [vmem:[%s11282_s8 + $0x9f0] sm:$0xf]  ;;  %v528_v32 = vld [vmem:[%s11282_s8 + $0xa00] sm:$0xf]  ;;  %525 = vst [vmem:[%s11289_s9 + $0x278] sm:$0xf] %v524_v30 }
  0x7f   : > { %527 = vst [vmem:[%s11289_s9 + $0x27c] sm:$0xf] %v526_v31  ;;  %529 = vst [vmem:[%s11289_s9 + $0x280] sm:$0xf] %v528_v32  ;;  %v530_v33 = vld [vmem:[%s11282_s8 + $0xa10] sm:$0xf] }
  0x80   : > { %v532_v34 = vld [vmem:[%s11282_s8 + $0xa20] sm:$0xf]  ;;  %v534_v35 = vld [vmem:[%s11282_s8 + $0xa30] sm:$0xf]  ;;  %531 = vst [vmem:[%s11289_s9 + $0x284] sm:$0xf] %v530_v33 }
  0x81   : > { %533 = vst [vmem:[%s11289_s9 + $0x288] sm:$0xf] %v532_v34  ;;  %535 = vst [vmem:[%s11289_s9 + $0x28c] sm:$0xf] %v534_v35  ;;  %v536_v36 = vld [vmem:[%s11282_s8 + $0xa40] sm:$0xf] }
  0x82   : > { %v538_v37 = vld [vmem:[%s11282_s8 + $0xa50] sm:$0xf]  ;;  %v540_v38 = vld [vmem:[%s11282_s8 + $0xa60] sm:$0xf]  ;;  %537 = vst [vmem:[%s11289_s9 + $0x290] sm:$0xf] %v536_v36 }
  0x83   : > { %539 = vst [vmem:[%s11289_s9 + $0x294] sm:$0xf] %v538_v37  ;;  %541 = vst [vmem:[%s11289_s9 + $0x298] sm:$0xf] %v540_v38  ;;  %v542_v39 = vld [vmem:[%s11282_s8 + $0xa70] sm:$0xf] }
  0x84   : > { %v544_v40 = vld [vmem:[%s11282_s8 + $0xa80] sm:$0xf]  ;;  %v546_v41 = vld [vmem:[%s11282_s8 + $0xa90] sm:$0xf]  ;;  %543 = vst [vmem:[%s11289_s9 + $0x29c] sm:$0xf] %v542_v39 }
  0x85   : > { %545 = vst [vmem:[%s11289_s9 + $0x2a0] sm:$0xf] %v544_v40  ;;  %547 = vst [vmem:[%s11289_s9 + $0x2a4] sm:$0xf] %v546_v41  ;;  %v548_v42 = vld [vmem:[%s11282_s8 + $0xaa0] sm:$0xf] }
  0x86   : > { %v550_v43 = vld [vmem:[%s11282_s8 + $0xab0] sm:$0xf]  ;;  %v552_v44 = vld [vmem:[%s11282_s8 + $0xac0] sm:$0xf]  ;;  %549 = vst [vmem:[%s11289_s9 + $0x2a8] sm:$0xf] %v548_v42 }
  0x87   : > { %551 = vst [vmem:[%s11289_s9 + $0x2ac] sm:$0xf] %v550_v43  ;;  %553 = vst [vmem:[%s11289_s9 + $0x2b0] sm:$0xf] %v552_v44  ;;  %v554_v45 = vld [vmem:[%s11282_s8 + $0xad0] sm:$0xf] }
  0x88   : > { %v556_v46 = vld [vmem:[%s11282_s8 + $0xae0] sm:$0xf]  ;;  %v558_v47 = vld [vmem:[%s11282_s8 + $0xaf0] sm:$0xf]  ;;  %555 = vst [vmem:[%s11289_s9 + $0x2b4] sm:$0xf] %v554_v45 }
  0x89   : > { %557 = vst [vmem:[%s11289_s9 + $0x2b8] sm:$0xf] %v556_v46  ;;  %559 = vst [vmem:[%s11289_s9 + $0x2bc] sm:$0xf] %v558_v47  ;;  %v560_v48 = vld [vmem:[%s11282_s8 + $0xb00] sm:$0xf] }
  0x8a   : > { %v562_v49 = vld [vmem:[%s11282_s8 + $0xb10] sm:$0xf]  ;;  %v564_v50 = vld [vmem:[%s11282_s8 + $0xb20] sm:$0xf]  ;;  %561 = vst [vmem:[%s11289_s9 + $0x2c0] sm:$0xf] %v560_v48 }
  0x8b   : > { %563 = vst [vmem:[%s11289_s9 + $0x2c4] sm:$0xf] %v562_v49  ;;  %565 = vst [vmem:[%s11289_s9 + $0x2c8] sm:$0xf] %v564_v50  ;;  %v566_v51 = vld [vmem:[%s11282_s8 + $0xb30] sm:$0xf] }
  0x8c   : > { %v568_v52 = vld [vmem:[%s11282_s8 + $0xb40] sm:$0xf]  ;;  %v570_v53 = vld [vmem:[%s11282_s8 + $0xb50] sm:$0xf]  ;;  %567 = vst [vmem:[%s11289_s9 + $0x2cc] sm:$0xf] %v566_v51 }
  0x8d   : > { %569 = vst [vmem:[%s11289_s9 + $0x2d0] sm:$0xf] %v568_v52  ;;  %571 = vst [vmem:[%s11289_s9 + $0x2d4] sm:$0xf] %v570_v53  ;;  %v572_v54 = vld [vmem:[%s11282_s8 + $0xb60] sm:$0xf] }
  0x8e   : > { %v574_v55 = vld [vmem:[%s11282_s8 + $0xb70] sm:$0xf]  ;;  %v576_v56 = vld [vmem:[%s11282_s8 + $0xb80] sm:$0xf]  ;;  %573 = vst [vmem:[%s11289_s9 + $0x2d8] sm:$0xf] %v572_v54 }
  0x8f   : > { %575 = vst [vmem:[%s11289_s9 + $0x2dc] sm:$0xf] %v574_v55  ;;  %577 = vst [vmem:[%s11289_s9 + $0x2e0] sm:$0xf] %v576_v56  ;;  %v578_v57 = vld [vmem:[%s11282_s8 + $0xb90] sm:$0xf] }
  0x90   : > { %v580_v58 = vld [vmem:[%s11282_s8 + $0xba0] sm:$0xf]  ;;  %v582_v59 = vld [vmem:[%s11282_s8 + $0xbb0] sm:$0xf]  ;;  %579 = vst [vmem:[%s11289_s9 + $0x2e4] sm:$0xf] %v578_v57 }
  0x91   : > { %581 = vst [vmem:[%s11289_s9 + $0x2e8] sm:$0xf] %v580_v58  ;;  %583 = vst [vmem:[%s11289_s9 + $0x2ec] sm:$0xf] %v582_v59  ;;  %v584_v60 = vld [vmem:[%s11282_s8 + $0xbc0] sm:$0xf] }
  0x92   : > { %v586_v61 = vld [vmem:[%s11282_s8 + $0xbd0] sm:$0xf]  ;;  %v588_v62 = vld [vmem:[%s11282_s8 + $0xbe0] sm:$0xf]  ;;  %585 = vst [vmem:[%s11289_s9 + $0x2f0] sm:$0xf] %v584_v60 }
  0x93   : > { %587 = vst [vmem:[%s11289_s9 + $0x2f4] sm:$0xf] %v586_v61  ;;  %589 = vst [vmem:[%s11289_s9 + $0x2f8] sm:$0xf] %v588_v62  ;;  %v590_v63 = vld [vmem:[%s11282_s8 + $0xbf0] sm:$0xf] }
  0x94   : > { %v592_v0 = vld [vmem:[%s11282_s8 + $0xc00] sm:$0xf]  ;;  %v594_v1 = vld [vmem:[%s11282_s8 + $0xc10] sm:$0xf]  ;;  %591 = vst [vmem:[%s11289_s9 + $0x2fc] sm:$0xf] %v590_v63 }
  0x95   : > { %593 = vst [vmem:[%s11289_s9 + $0x300] sm:$0xf] %v592_v0  ;;  %595 = vst [vmem:[%s11289_s9 + $0x304] sm:$0xf] %v594_v1  ;;  %v596_v2 = vld [vmem:[%s11282_s8 + $0xc20] sm:$0xf] }
  0x96   : > { %v598_v3 = vld [vmem:[%s11282_s8 + $0xc30] sm:$0xf]  ;;  %v600_v4 = vld [vmem:[%s11282_s8 + $0xc40] sm:$0xf]  ;;  %597 = vst [vmem:[%s11289_s9 + $0x308] sm:$0xf] %v596_v2 }
  0x97   : > { %599 = vst [vmem:[%s11289_s9 + $0x30c] sm:$0xf] %v598_v3  ;;  %601 = vst [vmem:[%s11289_s9 + $0x310] sm:$0xf] %v600_v4  ;;  %v602_v5 = vld [vmem:[%s11282_s8 + $0xc50] sm:$0xf] }
  0x98   : > { %v604_v6 = vld [vmem:[%s11282_s8 + $0xc60] sm:$0xf]  ;;  %v606_v7 = vld [vmem:[%s11282_s8 + $0xc70] sm:$0xf]  ;;  %603 = vst [vmem:[%s11289_s9 + $0x314] sm:$0xf] %v602_v5 }
  0x99   : > { %605 = vst [vmem:[%s11289_s9 + $0x318] sm:$0xf] %v604_v6  ;;  %607 = vst [vmem:[%s11289_s9 + $0x31c] sm:$0xf] %v606_v7  ;;  %v608_v8 = vld [vmem:[%s11282_s8 + $0xc80] sm:$0xf] }
  0x9a   : > { %v610_v9 = vld [vmem:[%s11282_s8 + $0xc90] sm:$0xf]  ;;  %v612_v10 = vld [vmem:[%s11282_s8 + $0xca0] sm:$0xf]  ;;  %609 = vst [vmem:[%s11289_s9 + $0x320] sm:$0xf] %v608_v8 }
  0x9b   : > { %611 = vst [vmem:[%s11289_s9 + $0x324] sm:$0xf] %v610_v9  ;;  %613 = vst [vmem:[%s11289_s9 + $0x328] sm:$0xf] %v612_v10  ;;  %v614_v11 = vld [vmem:[%s11282_s8 + $0xcb0] sm:$0xf] }
  0x9c   : > { %v616_v12 = vld [vmem:[%s11282_s8 + $0xcc0] sm:$0xf]  ;;  %v618_v13 = vld [vmem:[%s11282_s8 + $0xcd0] sm:$0xf]  ;;  %615 = vst [vmem:[%s11289_s9 + $0x32c] sm:$0xf] %v614_v11 }
  0x9d   : > { %617 = vst [vmem:[%s11289_s9 + $0x330] sm:$0xf] %v616_v12  ;;  %619 = vst [vmem:[%s11289_s9 + $0x334] sm:$0xf] %v618_v13  ;;  %v620_v14 = vld [vmem:[%s11282_s8 + $0xce0] sm:$0xf] }
  0x9e   : > { %v622_v15 = vld [vmem:[%s11282_s8 + $0xcf0] sm:$0xf]  ;;  %v624_v16 = vld [vmem:[%s11282_s8 + $0xd00] sm:$0xf]  ;;  %621 = vst [vmem:[%s11289_s9 + $0x338] sm:$0xf] %v620_v14 }
  0x9f   : > { %623 = vst [vmem:[%s11289_s9 + $0x33c] sm:$0xf] %v622_v15  ;;  %625 = vst [vmem:[%s11289_s9 + $0x340] sm:$0xf] %v624_v16  ;;  %v626_v17 = vld [vmem:[%s11282_s8 + $0xd10] sm:$0xf] }
  0xa0   : > { %v628_v18 = vld [vmem:[%s11282_s8 + $0xd20] sm:$0xf]  ;;  %v630_v19 = vld [vmem:[%s11282_s8 + $0xd30] sm:$0xf]  ;;  %627 = vst [vmem:[%s11289_s9 + $0x344] sm:$0xf] %v626_v17 }
  0xa1   : > { %629 = vst [vmem:[%s11289_s9 + $0x348] sm:$0xf] %v628_v18  ;;  %631 = vst [vmem:[%s11289_s9 + $0x34c] sm:$0xf] %v630_v19  ;;  %v632_v20 = vld [vmem:[%s11282_s8 + $0xd40] sm:$0xf] }
  0xa2   : > { %v634_v21 = vld [vmem:[%s11282_s8 + $0xd50] sm:$0xf]  ;;  %v636_v22 = vld [vmem:[%s11282_s8 + $0xd60] sm:$0xf]  ;;  %633 = vst [vmem:[%s11289_s9 + $0x350] sm:$0xf] %v632_v20 }
  0xa3   : > { %635 = vst [vmem:[%s11289_s9 + $0x354] sm:$0xf] %v634_v21  ;;  %637 = vst [vmem:[%s11289_s9 + $0x358] sm:$0xf] %v636_v22  ;;  %v638_v23 = vld [vmem:[%s11282_s8 + $0xd70] sm:$0xf] }
  0xa4   : > { %v640_v24 = vld [vmem:[%s11282_s8 + $0xd80] sm:$0xf]  ;;  %v642_v25 = vld [vmem:[%s11282_s8 + $0xd90] sm:$0xf]  ;;  %639 = vst [vmem:[%s11289_s9 + $0x35c] sm:$0xf] %v638_v23 }
  0xa5   : > { %641 = vst [vmem:[%s11289_s9 + $0x360] sm:$0xf] %v640_v24  ;;  %643 = vst [vmem:[%s11289_s9 + $0x364] sm:$0xf] %v642_v25  ;;  %v644_v26 = vld [vmem:[%s11282_s8 + $0xda0] sm:$0xf] }
  0xa6   : > { %v646_v27 = vld [vmem:[%s11282_s8 + $0xdb0] sm:$0xf]  ;;  %v648_v28 = vld [vmem:[%s11282_s8 + $0xdc0] sm:$0xf]  ;;  %645 = vst [vmem:[%s11289_s9 + $0x368] sm:$0xf] %v644_v26 }
  0xa7   : > { %647 = vst [vmem:[%s11289_s9 + $0x36c] sm:$0xf] %v646_v27  ;;  %649 = vst [vmem:[%s11289_s9 + $0x370] sm:$0xf] %v648_v28  ;;  %v650_v29 = vld [vmem:[%s11282_s8 + $0xdd0] sm:$0xf] }
  0xa8   : > { %v652_v30 = vld [vmem:[%s11282_s8 + $0xde0] sm:$0xf]  ;;  %v654_v31 = vld [vmem:[%s11282_s8 + $0xdf0] sm:$0xf]  ;;  %651 = vst [vmem:[%s11289_s9 + $0x374] sm:$0xf] %v650_v29 }
  0xa9   : > { %653 = vst [vmem:[%s11289_s9 + $0x378] sm:$0xf] %v652_v30  ;;  %655 = vst [vmem:[%s11289_s9 + $0x37c] sm:$0xf] %v654_v31  ;;  %v656_v32 = vld [vmem:[%s11282_s8 + $0xe00] sm:$0xf] }
  0xaa   : > { %v658_v33 = vld [vmem:[%s11282_s8 + $0xe10] sm:$0xf]  ;;  %v660_v34 = vld [vmem:[%s11282_s8 + $0xe20] sm:$0xf]  ;;  %657 = vst [vmem:[%s11289_s9 + $0x380] sm:$0xf] %v656_v32 }
  0xab   : > { %659 = vst [vmem:[%s11289_s9 + $0x384] sm:$0xf] %v658_v33  ;;  %661 = vst [vmem:[%s11289_s9 + $0x388] sm:$0xf] %v660_v34  ;;  %v662_v35 = vld [vmem:[%s11282_s8 + $0xe30] sm:$0xf] }
  0xac   : > { %v664_v36 = vld [vmem:[%s11282_s8 + $0xe40] sm:$0xf]  ;;  %v666_v37 = vld [vmem:[%s11282_s8 + $0xe50] sm:$0xf]  ;;  %663 = vst [vmem:[%s11289_s9 + $0x38c] sm:$0xf] %v662_v35 }
  0xad   : > { %665 = vst [vmem:[%s11289_s9 + $0x390] sm:$0xf] %v664_v36  ;;  %667 = vst [vmem:[%s11289_s9 + $0x394] sm:$0xf] %v666_v37  ;;  %v668_v38 = vld [vmem:[%s11282_s8 + $0xe60] sm:$0xf] }
  0xae   : > { %v670_v39 = vld [vmem:[%s11282_s8 + $0xe70] sm:$0xf]  ;;  %v672_v40 = vld [vmem:[%s11282_s8 + $0xe80] sm:$0xf]  ;;  %669 = vst [vmem:[%s11289_s9 + $0x398] sm:$0xf] %v668_v38 }
  0xaf   : > { %671 = vst [vmem:[%s11289_s9 + $0x39c] sm:$0xf] %v670_v39  ;;  %673 = vst [vmem:[%s11289_s9 + $0x3a0] sm:$0xf] %v672_v40  ;;  %v674_v41 = vld [vmem:[%s11282_s8 + $0xe90] sm:$0xf] }
  0xb0   : > { %v676_v42 = vld [vmem:[%s11282_s8 + $0xea0] sm:$0xf]  ;;  %v678_v43 = vld [vmem:[%s11282_s8 + $0xeb0] sm:$0xf]  ;;  %675 = vst [vmem:[%s11289_s9 + $0x3a4] sm:$0xf] %v674_v41 }
  0xb1   : > { %677 = vst [vmem:[%s11289_s9 + $0x3a8] sm:$0xf] %v676_v42  ;;  %679 = vst [vmem:[%s11289_s9 + $0x3ac] sm:$0xf] %v678_v43  ;;  %v680_v44 = vld [vmem:[%s11282_s8 + $0xec0] sm:$0xf] }
  0xb2   : > { %v682_v45 = vld [vmem:[%s11282_s8 + $0xed0] sm:$0xf]  ;;  %v684_v46 = vld [vmem:[%s11282_s8 + $0xee0] sm:$0xf]  ;;  %681 = vst [vmem:[%s11289_s9 + $0x3b0] sm:$0xf] %v680_v44 }
  0xb3   : > { %683 = vst [vmem:[%s11289_s9 + $0x3b4] sm:$0xf] %v682_v45  ;;  %685 = vst [vmem:[%s11289_s9 + $0x3b8] sm:$0xf] %v684_v46  ;;  %v686_v47 = vld [vmem:[%s11282_s8 + $0xef0] sm:$0xf] }
  0xb4   : > { %v688_v48 = vld [vmem:[%s11282_s8 + $0xf00] sm:$0xf]  ;;  %v690_v49 = vld [vmem:[%s11282_s8 + $0xf10] sm:$0xf]  ;;  %687 = vst [vmem:[%s11289_s9 + $0x3bc] sm:$0xf] %v686_v47 }
  0xb5   : > { %689 = vst [vmem:[%s11289_s9 + $0x3c0] sm:$0xf] %v688_v48  ;;  %691 = vst [vmem:[%s11289_s9 + $0x3c4] sm:$0xf] %v690_v49  ;;  %v692_v50 = vld [vmem:[%s11282_s8 + $0xf20] sm:$0xf] }
  0xb6   : > { %v694_v51 = vld [vmem:[%s11282_s8 + $0xf30] sm:$0xf]  ;;  %v696_v52 = vld [vmem:[%s11282_s8 + $0xf40] sm:$0xf]  ;;  %693 = vst [vmem:[%s11289_s9 + $0x3c8] sm:$0xf] %v692_v50 }
  0xb7   : > { %695 = vst [vmem:[%s11289_s9 + $0x3cc] sm:$0xf] %v694_v51  ;;  %697 = vst [vmem:[%s11289_s9 + $0x3d0] sm:$0xf] %v696_v52  ;;  %v698_v53 = vld [vmem:[%s11282_s8 + $0xf50] sm:$0xf] }
  0xb8   : > { %v700_v54 = vld [vmem:[%s11282_s8 + $0xf60] sm:$0xf]  ;;  %v702_v55 = vld [vmem:[%s11282_s8 + $0xf70] sm:$0xf]  ;;  %699 = vst [vmem:[%s11289_s9 + $0x3d4] sm:$0xf] %v698_v53 }
  0xb9   : > { %701 = vst [vmem:[%s11289_s9 + $0x3d8] sm:$0xf] %v700_v54  ;;  %703 = vst [vmem:[%s11289_s9 + $0x3dc] sm:$0xf] %v702_v55  ;;  %v704_v56 = vld [vmem:[%s11282_s8 + $0xf80] sm:$0xf] }
  0xba   : > { %v706_v57 = vld [vmem:[%s11282_s8 + $0xf90] sm:$0xf]  ;;  %v708_v58 = vld [vmem:[%s11282_s8 + $0xfa0] sm:$0xf]  ;;  %705 = vst [vmem:[%s11289_s9 + $0x3e0] sm:$0xf] %v704_v56 }
  0xbb   : > { %707 = vst [vmem:[%s11289_s9 + $0x3e4] sm:$0xf] %v706_v57  ;;  %709 = vst [vmem:[%s11289_s9 + $0x3e8] sm:$0xf] %v708_v58  ;;  %v710_v59 = vld [vmem:[%s11282_s8 + $0xfb0] sm:$0xf] }
  0xbc   : > { %v712_v60 = vld [vmem:[%s11282_s8 + $0xfc0] sm:$0xf]  ;;  %v714_v61 = vld [vmem:[%s11282_s8 + $0xfd0] sm:$0xf]  ;;  %711 = vst [vmem:[%s11289_s9 + $0x3ec] sm:$0xf] %v710_v59 }
  0xbd   : > { %713 = vst [vmem:[%s11289_s9 + $0x3f0] sm:$0xf] %v712_v60  ;;  %715 = vst [vmem:[%s11289_s9 + $0x3f4] sm:$0xf] %v714_v61  ;;  %v716_v62 = vld [vmem:[%s11282_s8 + $0xfe0] sm:$0xf] }
  0xbe   : > { %v718_v63 = vld [vmem:[%s11282_s8 + $0xff0] sm:$0xf]  ;;  %v720_v0 = vld [vmem:[%s11282_s8 + $0x1000] sm:$0xf]  ;;  %717 = vst [vmem:[%s11289_s9 + $0x3f8] sm:$0xf] %v716_v62 }
  0xbf   : > { %719 = vst [vmem:[%s11289_s9 + $0x3fc] sm:$0xf] %v718_v63  ;;  %721 = vst [vmem:[%s11289_s9 + $0x400] sm:$0xf] %v720_v0  ;;  %v722_v1 = vld [vmem:[%s11282_s8 + $0x1010] sm:$0xf] }
  0xc0   : > { %v724_v2 = vld [vmem:[%s11282_s8 + $0x1020] sm:$0xf]  ;;  %v726_v3 = vld [vmem:[%s11282_s8 + $0x1030] sm:$0xf]  ;;  %723 = vst [vmem:[%s11289_s9 + $0x404] sm:$0xf] %v722_v1 }
  0xc1   : > { %725 = vst [vmem:[%s11289_s9 + $0x408] sm:$0xf] %v724_v2  ;;  %727 = vst [vmem:[%s11289_s9 + $0x40c] sm:$0xf] %v726_v3  ;;  %v728_v4 = vld [vmem:[%s11282_s8 + $0x1040] sm:$0xf] }
  0xc2   : > { %v730_v5 = vld [vmem:[%s11282_s8 + $0x1050] sm:$0xf]  ;;  %v732_v6 = vld [vmem:[%s11282_s8 + $0x1060] sm:$0xf]  ;;  %729 = vst [vmem:[%s11289_s9 + $0x410] sm:$0xf] %v728_v4 }
  0xc3   : > { %731 = vst [vmem:[%s11289_s9 + $0x414] sm:$0xf] %v730_v5  ;;  %733 = vst [vmem:[%s11289_s9 + $0x418] sm:$0xf] %v732_v6  ;;  %v734_v7 = vld [vmem:[%s11282_s8 + $0x1070] sm:$0xf] }
  0xc4   : > { %v736_v8 = vld [vmem:[%s11282_s8 + $0x1080] sm:$0xf]  ;;  %v738_v9 = vld [vmem:[%s11282_s8 + $0x1090] sm:$0xf]  ;;  %735 = vst [vmem:[%s11289_s9 + $0x41c] sm:$0xf] %v734_v7 }
  0xc5   : > { %737 = vst [vmem:[%s11289_s9 + $0x420] sm:$0xf] %v736_v8  ;;  %739 = vst [vmem:[%s11289_s9 + $0x424] sm:$0xf] %v738_v9  ;;  %v740_v10 = vld [vmem:[%s11282_s8 + $0x10a0] sm:$0xf] }
  0xc6   : > { %v742_v11 = vld [vmem:[%s11282_s8 + $0x10b0] sm:$0xf]  ;;  %v744_v12 = vld [vmem:[%s11282_s8 + $0x10c0] sm:$0xf]  ;;  %741 = vst [vmem:[%s11289_s9 + $0x428] sm:$0xf] %v740_v10 }
  0xc7   : > { %743 = vst [vmem:[%s11289_s9 + $0x42c] sm:$0xf] %v742_v11  ;;  %745 = vst [vmem:[%s11289_s9 + $0x430] sm:$0xf] %v744_v12  ;;  %v746_v13 = vld [vmem:[%s11282_s8 + $0x10d0] sm:$0xf] }
  0xc8   : > { %v748_v14 = vld [vmem:[%s11282_s8 + $0x10e0] sm:$0xf]  ;;  %v750_v15 = vld [vmem:[%s11282_s8 + $0x10f0] sm:$0xf]  ;;  %747 = vst [vmem:[%s11289_s9 + $0x434] sm:$0xf] %v746_v13 }
  0xc9   : > { %749 = vst [vmem:[%s11289_s9 + $0x438] sm:$0xf] %v748_v14  ;;  %751 = vst [vmem:[%s11289_s9 + $0x43c] sm:$0xf] %v750_v15  ;;  %v752_v16 = vld [vmem:[%s11282_s8 + $0x1100] sm:$0xf] }
  0xca   : > { %v754_v17 = vld [vmem:[%s11282_s8 + $0x1110] sm:$0xf]  ;;  %v756_v18 = vld [vmem:[%s11282_s8 + $0x1120] sm:$0xf]  ;;  %753 = vst [vmem:[%s11289_s9 + $0x440] sm:$0xf] %v752_v16 }
  0xcb   : > { %755 = vst [vmem:[%s11289_s9 + $0x444] sm:$0xf] %v754_v17  ;;  %757 = vst [vmem:[%s11289_s9 + $0x448] sm:$0xf] %v756_v18  ;;  %v758_v19 = vld [vmem:[%s11282_s8 + $0x1130] sm:$0xf] }
  0xcc   : > { %v760_v20 = vld [vmem:[%s11282_s8 + $0x1140] sm:$0xf]  ;;  %v762_v21 = vld [vmem:[%s11282_s8 + $0x1150] sm:$0xf]  ;;  %759 = vst [vmem:[%s11289_s9 + $0x44c] sm:$0xf] %v758_v19 }
  0xcd   : > { %761 = vst [vmem:[%s11289_s9 + $0x450] sm:$0xf] %v760_v20  ;;  %763 = vst [vmem:[%s11289_s9 + $0x454] sm:$0xf] %v762_v21  ;;  %v764_v22 = vld [vmem:[%s11282_s8 + $0x1160] sm:$0xf] }
  0xce   : > { %v766_v23 = vld [vmem:[%s11282_s8 + $0x1170] sm:$0xf]  ;;  %v768_v24 = vld [vmem:[%s11282_s8 + $0x1180] sm:$0xf]  ;;  %765 = vst [vmem:[%s11289_s9 + $0x458] sm:$0xf] %v764_v22 }
  0xcf   : > { %767 = vst [vmem:[%s11289_s9 + $0x45c] sm:$0xf] %v766_v23  ;;  %769 = vst [vmem:[%s11289_s9 + $0x460] sm:$0xf] %v768_v24  ;;  %v770_v25 = vld [vmem:[%s11282_s8 + $0x1190] sm:$0xf] }
  0xd0   : > { %v772_v26 = vld [vmem:[%s11282_s8 + $0x11a0] sm:$0xf]  ;;  %v774_v27 = vld [vmem:[%s11282_s8 + $0x11b0] sm:$0xf]  ;;  %771 = vst [vmem:[%s11289_s9 + $0x464] sm:$0xf] %v770_v25 }
  0xd1   : > { %773 = vst [vmem:[%s11289_s9 + $0x468] sm:$0xf] %v772_v26  ;;  %775 = vst [vmem:[%s11289_s9 + $0x46c] sm:$0xf] %v774_v27  ;;  %v776_v28 = vld [vmem:[%s11282_s8 + $0x11c0] sm:$0xf] }
  0xd2   : > { %v778_v29 = vld [vmem:[%s11282_s8 + $0x11d0] sm:$0xf]  ;;  %v780_v30 = vld [vmem:[%s11282_s8 + $0x11e0] sm:$0xf]  ;;  %777 = vst [vmem:[%s11289_s9 + $0x470] sm:$0xf] %v776_v28 }
  0xd3   : > { %779 = vst [vmem:[%s11289_s9 + $0x474] sm:$0xf] %v778_v29  ;;  %781 = vst [vmem:[%s11289_s9 + $0x478] sm:$0xf] %v780_v30  ;;  %v782_v31 = vld [vmem:[%s11282_s8 + $0x11f0] sm:$0xf] }
  0xd4   : > { %v784_v32 = vld [vmem:[%s11282_s8 + $0x1200] sm:$0xf]  ;;  %v786_v33 = vld [vmem:[%s11282_s8 + $0x1210] sm:$0xf]  ;;  %783 = vst [vmem:[%s11289_s9 + $0x47c] sm:$0xf] %v782_v31 }
  0xd5   : > { %785 = vst [vmem:[%s11289_s9 + $0x480] sm:$0xf] %v784_v32  ;;  %787 = vst [vmem:[%s11289_s9 + $0x484] sm:$0xf] %v786_v33  ;;  %v788_v34 = vld [vmem:[%s11282_s8 + $0x1220] sm:$0xf] }
  0xd6   : > { %v790_v35 = vld [vmem:[%s11282_s8 + $0x1230] sm:$0xf]  ;;  %v792_v36 = vld [vmem:[%s11282_s8 + $0x1240] sm:$0xf]  ;;  %789 = vst [vmem:[%s11289_s9 + $0x488] sm:$0xf] %v788_v34 }
  0xd7   : > { %791 = vst [vmem:[%s11289_s9 + $0x48c] sm:$0xf] %v790_v35  ;;  %793 = vst [vmem:[%s11289_s9 + $0x490] sm:$0xf] %v792_v36  ;;  %v794_v37 = vld [vmem:[%s11282_s8 + $0x1250] sm:$0xf] }
  0xd8   : > { %v796_v38 = vld [vmem:[%s11282_s8 + $0x1260] sm:$0xf]  ;;  %v798_v39 = vld [vmem:[%s11282_s8 + $0x1270] sm:$0xf]  ;;  %795 = vst [vmem:[%s11289_s9 + $0x494] sm:$0xf] %v794_v37 }
  0xd9   : > { %797 = vst [vmem:[%s11289_s9 + $0x498] sm:$0xf] %v796_v38  ;;  %799 = vst [vmem:[%s11289_s9 + $0x49c] sm:$0xf] %v798_v39  ;;  %v800_v40 = vld [vmem:[%s11282_s8 + $0x1280] sm:$0xf] }
  0xda   : > { %v802_v41 = vld [vmem:[%s11282_s8 + $0x1290] sm:$0xf]  ;;  %v804_v42 = vld [vmem:[%s11282_s8 + $0x12a0] sm:$0xf]  ;;  %801 = vst [vmem:[%s11289_s9 + $0x4a0] sm:$0xf] %v800_v40 }
  0xdb   : > { %803 = vst [vmem:[%s11289_s9 + $0x4a4] sm:$0xf] %v802_v41  ;;  %805 = vst [vmem:[%s11289_s9 + $0x4a8] sm:$0xf] %v804_v42  ;;  %v806_v43 = vld [vmem:[%s11282_s8 + $0x12b0] sm:$0xf] }
  0xdc   : > { %v808_v44 = vld [vmem:[%s11282_s8 + $0x12c0] sm:$0xf]  ;;  %v810_v45 = vld [vmem:[%s11282_s8 + $0x12d0] sm:$0xf]  ;;  %807 = vst [vmem:[%s11289_s9 + $0x4ac] sm:$0xf] %v806_v43 }
  0xdd   : > { %809 = vst [vmem:[%s11289_s9 + $0x4b0] sm:$0xf] %v808_v44  ;;  %811 = vst [vmem:[%s11289_s9 + $0x4b4] sm:$0xf] %v810_v45  ;;  %v812_v46 = vld [vmem:[%s11282_s8 + $0x12e0] sm:$0xf] }
  0xde   : > { %v814_v47 = vld [vmem:[%s11282_s8 + $0x12f0] sm:$0xf]  ;;  %v816_v48 = vld [vmem:[%s11282_s8 + $0x1300] sm:$0xf]  ;;  %813 = vst [vmem:[%s11289_s9 + $0x4b8] sm:$0xf] %v812_v46 }
  0xdf   : > { %815 = vst [vmem:[%s11289_s9 + $0x4bc] sm:$0xf] %v814_v47  ;;  %817 = vst [vmem:[%s11289_s9 + $0x4c0] sm:$0xf] %v816_v48  ;;  %v818_v49 = vld [vmem:[%s11282_s8 + $0x1310] sm:$0xf] }
  0xe0   : > { %v820_v50 = vld [vmem:[%s11282_s8 + $0x1320] sm:$0xf]  ;;  %v822_v51 = vld [vmem:[%s11282_s8 + $0x1330] sm:$0xf]  ;;  %819 = vst [vmem:[%s11289_s9 + $0x4c4] sm:$0xf] %v818_v49 }
  0xe1   : > { %821 = vst [vmem:[%s11289_s9 + $0x4c8] sm:$0xf] %v820_v50  ;;  %823 = vst [vmem:[%s11289_s9 + $0x4cc] sm:$0xf] %v822_v51  ;;  %v824_v52 = vld [vmem:[%s11282_s8 + $0x1340] sm:$0xf] }
  0xe2   : > { %v826_v53 = vld [vmem:[%s11282_s8 + $0x1350] sm:$0xf]  ;;  %v828_v54 = vld [vmem:[%s11282_s8 + $0x1360] sm:$0xf]  ;;  %825 = vst [vmem:[%s11289_s9 + $0x4d0] sm:$0xf] %v824_v52 }
  0xe3   : > { %827 = vst [vmem:[%s11289_s9 + $0x4d4] sm:$0xf] %v826_v53  ;;  %829 = vst [vmem:[%s11289_s9 + $0x4d8] sm:$0xf] %v828_v54  ;;  %v830_v55 = vld [vmem:[%s11282_s8 + $0x1370] sm:$0xf] }
  0xe4   : > { %v832_v56 = vld [vmem:[%s11282_s8 + $0x1380] sm:$0xf]  ;;  %v834_v57 = vld [vmem:[%s11282_s8 + $0x1390] sm:$0xf]  ;;  %831 = vst [vmem:[%s11289_s9 + $0x4dc] sm:$0xf] %v830_v55 }
  0xe5   : > { %833 = vst [vmem:[%s11289_s9 + $0x4e0] sm:$0xf] %v832_v56  ;;  %835 = vst [vmem:[%s11289_s9 + $0x4e4] sm:$0xf] %v834_v57  ;;  %v836_v58 = vld [vmem:[%s11282_s8 + $0x13a0] sm:$0xf] }
  0xe6   : > { %v838_v59 = vld [vmem:[%s11282_s8 + $0x13b0] sm:$0xf]  ;;  %v840_v60 = vld [vmem:[%s11282_s8 + $0x13c0] sm:$0xf]  ;;  %837 = vst [vmem:[%s11289_s9 + $0x4e8] sm:$0xf] %v836_v58 }
  0xe7   : > { %839 = vst [vmem:[%s11289_s9 + $0x4ec] sm:$0xf] %v838_v59  ;;  %841 = vst [vmem:[%s11289_s9 + $0x4f0] sm:$0xf] %v840_v60  ;;  %v842_v61 = vld [vmem:[%s11282_s8 + $0x13d0] sm:$0xf] }
  0xe8   : > { %v844_v62 = vld [vmem:[%s11282_s8 + $0x13e0] sm:$0xf]  ;;  %v846_v63 = vld [vmem:[%s11282_s8 + $0x13f0] sm:$0xf]  ;;  %843 = vst [vmem:[%s11289_s9 + $0x4f4] sm:$0xf] %v842_v61 }
  0xe9   : > { %845 = vst [vmem:[%s11289_s9 + $0x4f8] sm:$0xf] %v844_v62  ;;  %847 = vst [vmem:[%s11289_s9 + $0x4fc] sm:$0xf] %v846_v63  ;;  %v848_v0 = vld [vmem:[%s11282_s8 + $0x1400] sm:$0xf] }
  0xea   : > { %v850_v1 = vld [vmem:[%s11282_s8 + $0x1410] sm:$0xf]  ;;  %v852_v2 = vld [vmem:[%s11282_s8 + $0x1420] sm:$0xf]  ;;  %849 = vst [vmem:[%s11289_s9 + $0x500] sm:$0xf] %v848_v0 }
  0xeb   : > { %851 = vst [vmem:[%s11289_s9 + $0x504] sm:$0xf] %v850_v1  ;;  %853 = vst [vmem:[%s11289_s9 + $0x508] sm:$0xf] %v852_v2  ;;  %v854_v3 = vld [vmem:[%s11282_s8 + $0x1430] sm:$0xf] }
  0xec   : > { %v856_v4 = vld [vmem:[%s11282_s8 + $0x1440] sm:$0xf]  ;;  %v858_v5 = vld [vmem:[%s11282_s8 + $0x1450] sm:$0xf]  ;;  %855 = vst [vmem:[%s11289_s9 + $0x50c] sm:$0xf] %v854_v3 }
  0xed   : > { %857 = vst [vmem:[%s11289_s9 + $0x510] sm:$0xf] %v856_v4  ;;  %859 = vst [vmem:[%s11289_s9 + $0x514] sm:$0xf] %v858_v5  ;;  %v860_v6 = vld [vmem:[%s11282_s8 + $0x1460] sm:$0xf] }
  0xee   : > { %v862_v7 = vld [vmem:[%s11282_s8 + $0x1470] sm:$0xf]  ;;  %v864_v8 = vld [vmem:[%s11282_s8 + $0x1480] sm:$0xf]  ;;  %861 = vst [vmem:[%s11289_s9 + $0x518] sm:$0xf] %v860_v6 }
  0xef   : > { %863 = vst [vmem:[%s11289_s9 + $0x51c] sm:$0xf] %v862_v7  ;;  %865 = vst [vmem:[%s11289_s9 + $0x520] sm:$0xf] %v864_v8  ;;  %v866_v9 = vld [vmem:[%s11282_s8 + $0x1490] sm:$0xf] }
  0xf0   : > { %v868_v10 = vld [vmem:[%s11282_s8 + $0x14a0] sm:$0xf]  ;;  %v870_v11 = vld [vmem:[%s11282_s8 + $0x14b0] sm:$0xf]  ;;  %867 = vst [vmem:[%s11289_s9 + $0x524] sm:$0xf] %v866_v9 }
  0xf1   : > { %869 = vst [vmem:[%s11289_s9 + $0x528] sm:$0xf] %v868_v10  ;;  %871 = vst [vmem:[%s11289_s9 + $0x52c] sm:$0xf] %v870_v11  ;;  %v872_v12 = vld [vmem:[%s11282_s8 + $0x14c0] sm:$0xf] }
  0xf2   : > { %v874_v13 = vld [vmem:[%s11282_s8 + $0x14d0] sm:$0xf]  ;;  %v876_v14 = vld [vmem:[%s11282_s8 + $0x14e0] sm:$0xf]  ;;  %873 = vst [vmem:[%s11289_s9 + $0x530] sm:$0xf] %v872_v12 }
  0xf3   : > { %875 = vst [vmem:[%s11289_s9 + $0x534] sm:$0xf] %v874_v13  ;;  %877 = vst [vmem:[%s11289_s9 + $0x538] sm:$0xf] %v876_v14  ;;  %v878_v15 = vld [vmem:[%s11282_s8 + $0x14f0] sm:$0xf] }
  0xf4   : > { %v880_v16 = vld [vmem:[%s11282_s8 + $0x1500] sm:$0xf]  ;;  %v882_v17 = vld [vmem:[%s11282_s8 + $0x1510] sm:$0xf]  ;;  %879 = vst [vmem:[%s11289_s9 + $0x53c] sm:$0xf] %v878_v15 }
  0xf5   : > { %881 = vst [vmem:[%s11289_s9 + $0x540] sm:$0xf] %v880_v16  ;;  %883 = vst [vmem:[%s11289_s9 + $0x544] sm:$0xf] %v882_v17  ;;  %v884_v18 = vld [vmem:[%s11282_s8 + $0x1520] sm:$0xf] }
  0xf6   : > { %v886_v19 = vld [vmem:[%s11282_s8 + $0x1530] sm:$0xf]  ;;  %v888_v20 = vld [vmem:[%s11282_s8 + $0x1540] sm:$0xf]  ;;  %885 = vst [vmem:[%s11289_s9 + $0x548] sm:$0xf] %v884_v18 }
  0xf7   : > { %887 = vst [vmem:[%s11289_s9 + $0x54c] sm:$0xf] %v886_v19  ;;  %889 = vst [vmem:[%s11289_s9 + $0x550] sm:$0xf] %v888_v20  ;;  %v890_v21 = vld [vmem:[%s11282_s8 + $0x1550] sm:$0xf] }
  0xf8   : > { %v892_v22 = vld [vmem:[%s11282_s8 + $0x1560] sm:$0xf]  ;;  %v894_v23 = vld [vmem:[%s11282_s8 + $0x1570] sm:$0xf]  ;;  %891 = vst [vmem:[%s11289_s9 + $0x554] sm:$0xf] %v890_v21 }
  0xf9   : > { %893 = vst [vmem:[%s11289_s9 + $0x558] sm:$0xf] %v892_v22  ;;  %895 = vst [vmem:[%s11289_s9 + $0x55c] sm:$0xf] %v894_v23  ;;  %v896_v24 = vld [vmem:[%s11282_s8 + $0x1580] sm:$0xf] }
  0xfa   : > { %v898_v25 = vld [vmem:[%s11282_s8 + $0x1590] sm:$0xf]  ;;  %v900_v26 = vld [vmem:[%s11282_s8 + $0x15a0] sm:$0xf]  ;;  %897 = vst [vmem:[%s11289_s9 + $0x560] sm:$0xf] %v896_v24 }
  0xfb   : > { %899 = vst [vmem:[%s11289_s9 + $0x564] sm:$0xf] %v898_v25  ;;  %901 = vst [vmem:[%s11289_s9 + $0x568] sm:$0xf] %v900_v26  ;;  %v902_v27 = vld [vmem:[%s11282_s8 + $0x15b0] sm:$0xf] }
  0xfc   : > { %v904_v28 = vld [vmem:[%s11282_s8 + $0x15c0] sm:$0xf]  ;;  %v906_v29 = vld [vmem:[%s11282_s8 + $0x15d0] sm:$0xf]  ;;  %903 = vst [vmem:[%s11289_s9 + $0x56c] sm:$0xf] %v902_v27 }
  0xfd   : > { %905 = vst [vmem:[%s11289_s9 + $0x570] sm:$0xf] %v904_v28  ;;  %907 = vst [vmem:[%s11289_s9 + $0x574] sm:$0xf] %v906_v29  ;;  %v908_v30 = vld [vmem:[%s11282_s8 + $0x15e0] sm:$0xf] }
  0xfe   : > { %v910_v31 = vld [vmem:[%s11282_s8 + $0x15f0] sm:$0xf]  ;;  %v912_v32 = vld [vmem:[%s11282_s8 + $0x1600] sm:$0xf]  ;;  %909 = vst [vmem:[%s11289_s9 + $0x578] sm:$0xf] %v908_v30 }
  0xff   : > { %911 = vst [vmem:[%s11289_s9 + $0x57c] sm:$0xf] %v910_v31  ;;  %913 = vst [vmem:[%s11289_s9 + $0x580] sm:$0xf] %v912_v32  ;;  %v914_v33 = vld [vmem:[%s11282_s8 + $0x1610] sm:$0xf] }
 0x100   : > { %v916_v34 = vld [vmem:[%s11282_s8 + $0x1620] sm:$0xf]  ;;  %v918_v35 = vld [vmem:[%s11282_s8 + $0x1630] sm:$0xf]  ;;  %915 = vst [vmem:[%s11289_s9 + $0x584] sm:$0xf] %v914_v33 }
 0x101   : > { %917 = vst [vmem:[%s11289_s9 + $0x588] sm:$0xf] %v916_v34  ;;  %919 = vst [vmem:[%s11289_s9 + $0x58c] sm:$0xf] %v918_v35  ;;  %v920_v36 = vld [vmem:[%s11282_s8 + $0x1640] sm:$0xf] }
 0x102   : > { %v922_v37 = vld [vmem:[%s11282_s8 + $0x1650] sm:$0xf]  ;;  %v924_v38 = vld [vmem:[%s11282_s8 + $0x1660] sm:$0xf]  ;;  %921 = vst [vmem:[%s11289_s9 + $0x590] sm:$0xf] %v920_v36 }
 0x103   : > { %923 = vst [vmem:[%s11289_s9 + $0x594] sm:$0xf] %v922_v37  ;;  %925 = vst [vmem:[%s11289_s9 + $0x598] sm:$0xf] %v924_v38  ;;  %v926_v39 = vld [vmem:[%s11282_s8 + $0x1670] sm:$0xf] }
 0x104   : > { %v928_v40 = vld [vmem:[%s11282_s8 + $0x1680] sm:$0xf]  ;;  %v930_v41 = vld [vmem:[%s11282_s8 + $0x1690] sm:$0xf]  ;;  %927 = vst [vmem:[%s11289_s9 + $0x59c] sm:$0xf] %v926_v39 }
 0x105   : > { %929 = vst [vmem:[%s11289_s9 + $0x5a0] sm:$0xf] %v928_v40  ;;  %931 = vst [vmem:[%s11289_s9 + $0x5a4] sm:$0xf] %v930_v41  ;;  %v932_v42 = vld [vmem:[%s11282_s8 + $0x16a0] sm:$0xf] }
 0x106   : > { %v934_v43 = vld [vmem:[%s11282_s8 + $0x16b0] sm:$0xf]  ;;  %v936_v44 = vld [vmem:[%s11282_s8 + $0x16c0] sm:$0xf]  ;;  %933 = vst [vmem:[%s11289_s9 + $0x5a8] sm:$0xf] %v932_v42 }
 0x107   : > { %935 = vst [vmem:[%s11289_s9 + $0x5ac] sm:$0xf] %v934_v43  ;;  %937 = vst [vmem:[%s11289_s9 + $0x5b0] sm:$0xf] %v936_v44  ;;  %v938_v45 = vld [vmem:[%s11282_s8 + $0x16d0] sm:$0xf] }
 0x108   : > { %v940_v46 = vld [vmem:[%s11282_s8 + $0x16e0] sm:$0xf]  ;;  %v942_v47 = vld [vmem:[%s11282_s8 + $0x16f0] sm:$0xf]  ;;  %939 = vst [vmem:[%s11289_s9 + $0x5b4] sm:$0xf] %v938_v45 }
 0x109   : > { %941 = vst [vmem:[%s11289_s9 + $0x5b8] sm:$0xf] %v940_v46  ;;  %943 = vst [vmem:[%s11289_s9 + $0x5bc] sm:$0xf] %v942_v47  ;;  %v944_v48 = vld [vmem:[%s11282_s8 + $0x1700] sm:$0xf] }
 0x10a   : > { %v946_v49 = vld [vmem:[%s11282_s8 + $0x1710] sm:$0xf]  ;;  %v948_v50 = vld [vmem:[%s11282_s8 + $0x1720] sm:$0xf]  ;;  %945 = vst [vmem:[%s11289_s9 + $0x5c0] sm:$0xf] %v944_v48 }
 0x10b   : > { %947 = vst [vmem:[%s11289_s9 + $0x5c4] sm:$0xf] %v946_v49  ;;  %949 = vst [vmem:[%s11289_s9 + $0x5c8] sm:$0xf] %v948_v50  ;;  %v950_v51 = vld [vmem:[%s11282_s8 + $0x1730] sm:$0xf] }
 0x10c   : > { %v952_v52 = vld [vmem:[%s11282_s8 + $0x1740] sm:$0xf]  ;;  %v954_v53 = vld [vmem:[%s11282_s8 + $0x1750] sm:$0xf]  ;;  %951 = vst [vmem:[%s11289_s9 + $0x5cc] sm:$0xf] %v950_v51 }
 0x10d   : > { %953 = vst [vmem:[%s11289_s9 + $0x5d0] sm:$0xf] %v952_v52  ;;  %955 = vst [vmem:[%s11289_s9 + $0x5d4] sm:$0xf] %v954_v53  ;;  %v956_v54 = vld [vmem:[%s11282_s8 + $0x1760] sm:$0xf] }
 0x10e   : > { %v958_v55 = vld [vmem:[%s11282_s8 + $0x1770] sm:$0xf]  ;;  %v960_v56 = vld [vmem:[%s11282_s8 + $0x1780] sm:$0xf]  ;;  %957 = vst [vmem:[%s11289_s9 + $0x5d8] sm:$0xf] %v956_v54 }
 0x10f   : > { %959 = vst [vmem:[%s11289_s9 + $0x5dc] sm:$0xf] %v958_v55  ;;  %961 = vst [vmem:[%s11289_s9 + $0x5e0] sm:$0xf] %v960_v56  ;;  %v962_v57 = vld [vmem:[%s11282_s8 + $0x1790] sm:$0xf] }
 0x110   : > { %v964_v58 = vld [vmem:[%s11282_s8 + $0x17a0] sm:$0xf]  ;;  %v966_v59 = vld [vmem:[%s11282_s8 + $0x17b0] sm:$0xf]  ;;  %963 = vst [vmem:[%s11289_s9 + $0x5e4] sm:$0xf] %v962_v57 }
 0x111   : > { %965 = vst [vmem:[%s11289_s9 + $0x5e8] sm:$0xf] %v964_v58  ;;  %967 = vst [vmem:[%s11289_s9 + $0x5ec] sm:$0xf] %v966_v59  ;;  %v968_v60 = vld [vmem:[%s11282_s8 + $0x17c0] sm:$0xf] }
 0x112   : > { %v970_v61 = vld [vmem:[%s11282_s8 + $0x17d0] sm:$0xf]  ;;  %v972_v62 = vld [vmem:[%s11282_s8 + $0x17e0] sm:$0xf]  ;;  %969 = vst [vmem:[%s11289_s9 + $0x5f0] sm:$0xf] %v968_v60 }
 0x113   : > { %971 = vst [vmem:[%s11289_s9 + $0x5f4] sm:$0xf] %v970_v61  ;;  %973 = vst [vmem:[%s11289_s9 + $0x5f8] sm:$0xf] %v972_v62  ;;  %v974_v63 = vld [vmem:[%s11282_s8 + $0x17f0] sm:$0xf] }
 0x114   : > { %v976_v0 = vld [vmem:[%s11282_s8 + $0x1800] sm:$0xf]  ;;  %v978_v1 = vld [vmem:[%s11282_s8 + $0x1810] sm:$0xf]  ;;  %975 = vst [vmem:[%s11289_s9 + $0x5fc] sm:$0xf] %v974_v63 }
 0x115   : > { %977 = vst [vmem:[%s11289_s9 + $0x600] sm:$0xf] %v976_v0  ;;  %979 = vst [vmem:[%s11289_s9 + $0x604] sm:$0xf] %v978_v1  ;;  %v980_v2 = vld [vmem:[%s11282_s8 + $0x1820] sm:$0xf] }
 0x116   : > { %v982_v3 = vld [vmem:[%s11282_s8 + $0x1830] sm:$0xf]  ;;  %v984_v4 = vld [vmem:[%s11282_s8 + $0x1840] sm:$0xf]  ;;  %981 = vst [vmem:[%s11289_s9 + $0x608] sm:$0xf] %v980_v2 }
 0x117   : > { %983 = vst [vmem:[%s11289_s9 + $0x60c] sm:$0xf] %v982_v3  ;;  %985 = vst [vmem:[%s11289_s9 + $0x610] sm:$0xf] %v984_v4  ;;  %v986_v5 = vld [vmem:[%s11282_s8 + $0x1850] sm:$0xf] }
 0x118   : > { %v988_v6 = vld [vmem:[%s11282_s8 + $0x1860] sm:$0xf]  ;;  %v990_v7 = vld [vmem:[%s11282_s8 + $0x1870] sm:$0xf]  ;;  %987 = vst [vmem:[%s11289_s9 + $0x614] sm:$0xf] %v986_v5 }
 0x119   : > { %989 = vst [vmem:[%s11289_s9 + $0x618] sm:$0xf] %v988_v6  ;;  %991 = vst [vmem:[%s11289_s9 + $0x61c] sm:$0xf] %v990_v7  ;;  %v992_v8 = vld [vmem:[%s11282_s8 + $0x1880] sm:$0xf] }
 0x11a   : > { %v994_v9 = vld [vmem:[%s11282_s8 + $0x1890] sm:$0xf]  ;;  %v996_v10 = vld [vmem:[%s11282_s8 + $0x18a0] sm:$0xf]  ;;  %993 = vst [vmem:[%s11289_s9 + $0x620] sm:$0xf] %v992_v8 }
 0x11b   : > { %995 = vst [vmem:[%s11289_s9 + $0x624] sm:$0xf] %v994_v9  ;;  %997 = vst [vmem:[%s11289_s9 + $0x628] sm:$0xf] %v996_v10  ;;  %v998_v11 = vld [vmem:[%s11282_s8 + $0x18b0] sm:$0xf] }
 0x11c   : > { %v1000_v12 = vld [vmem:[%s11282_s8 + $0x18c0] sm:$0xf]  ;;  %v1002_v13 = vld [vmem:[%s11282_s8 + $0x18d0] sm:$0xf]  ;;  %999 = vst [vmem:[%s11289_s9 + $0x62c] sm:$0xf] %v998_v11 }
 0x11d   : > { %1001 = vst [vmem:[%s11289_s9 + $0x630] sm:$0xf] %v1000_v12  ;;  %1003 = vst [vmem:[%s11289_s9 + $0x634] sm:$0xf] %v1002_v13  ;;  %v1004_v14 = vld [vmem:[%s11282_s8 + $0x18e0] sm:$0xf] }
 0x11e   : > { %v1006_v15 = vld [vmem:[%s11282_s8 + $0x18f0] sm:$0xf]  ;;  %v1008_v16 = vld [vmem:[%s11282_s8 + $0x1900] sm:$0xf]  ;;  %1005 = vst [vmem:[%s11289_s9 + $0x638] sm:$0xf] %v1004_v14 }
 0x11f   : > { %1007 = vst [vmem:[%s11289_s9 + $0x63c] sm:$0xf] %v1006_v15  ;;  %1009 = vst [vmem:[%s11289_s9 + $0x640] sm:$0xf] %v1008_v16  ;;  %v1010_v17 = vld [vmem:[%s11282_s8 + $0x1910] sm:$0xf] }
 0x120   : > { %v1012_v18 = vld [vmem:[%s11282_s8 + $0x1920] sm:$0xf]  ;;  %v1014_v19 = vld [vmem:[%s11282_s8 + $0x1930] sm:$0xf]  ;;  %1011 = vst [vmem:[%s11289_s9 + $0x644] sm:$0xf] %v1010_v17 }
 0x121   : > { %1013 = vst [vmem:[%s11289_s9 + $0x648] sm:$0xf] %v1012_v18  ;;  %1015 = vst [vmem:[%s11289_s9 + $0x64c] sm:$0xf] %v1014_v19  ;;  %v1016_v20 = vld [vmem:[%s11282_s8 + $0x1940] sm:$0xf] }
 0x122   : > { %v1018_v21 = vld [vmem:[%s11282_s8 + $0x1950] sm:$0xf]  ;;  %v1020_v22 = vld [vmem:[%s11282_s8 + $0x1960] sm:$0xf]  ;;  %1017 = vst [vmem:[%s11289_s9 + $0x650] sm:$0xf] %v1016_v20 }
 0x123   : > { %1019 = vst [vmem:[%s11289_s9 + $0x654] sm:$0xf] %v1018_v21  ;;  %1021 = vst [vmem:[%s11289_s9 + $0x658] sm:$0xf] %v1020_v22  ;;  %v1022_v23 = vld [vmem:[%s11282_s8 + $0x1970] sm:$0xf] }
 0x124   : > { %v1024_v24 = vld [vmem:[%s11282_s8 + $0x1980] sm:$0xf]  ;;  %v1026_v25 = vld [vmem:[%s11282_s8 + $0x1990] sm:$0xf]  ;;  %1023 = vst [vmem:[%s11289_s9 + $0x65c] sm:$0xf] %v1022_v23 }
 0x125   : > { %1025 = vst [vmem:[%s11289_s9 + $0x660] sm:$0xf] %v1024_v24  ;;  %1027 = vst [vmem:[%s11289_s9 + $0x664] sm:$0xf] %v1026_v25  ;;  %v1028_v26 = vld [vmem:[%s11282_s8 + $0x19a0] sm:$0xf] }
 0x126   : > { %v1030_v27 = vld [vmem:[%s11282_s8 + $0x19b0] sm:$0xf]  ;;  %v1032_v28 = vld [vmem:[%s11282_s8 + $0x19c0] sm:$0xf]  ;;  %1029 = vst [vmem:[%s11289_s9 + $0x668] sm:$0xf] %v1028_v26 }
 0x127   : > { %1031 = vst [vmem:[%s11289_s9 + $0x66c] sm:$0xf] %v1030_v27  ;;  %1033 = vst [vmem:[%s11289_s9 + $0x670] sm:$0xf] %v1032_v28  ;;  %v1034_v29 = vld [vmem:[%s11282_s8 + $0x19d0] sm:$0xf] }
 0x128   : > { %v1036_v30 = vld [vmem:[%s11282_s8 + $0x19e0] sm:$0xf]  ;;  %v1038_v31 = vld [vmem:[%s11282_s8 + $0x19f0] sm:$0xf]  ;;  %1035 = vst [vmem:[%s11289_s9 + $0x674] sm:$0xf] %v1034_v29 }
 0x129   : > { %1037 = vst [vmem:[%s11289_s9 + $0x678] sm:$0xf] %v1036_v30  ;;  %1039 = vst [vmem:[%s11289_s9 + $0x67c] sm:$0xf] %v1038_v31  ;;  %v1040_v32 = vld [vmem:[%s11282_s8 + $0x1a00] sm:$0xf] }
 0x12a   : > { %v1042_v33 = vld [vmem:[%s11282_s8 + $0x1a10] sm:$0xf]  ;;  %v1044_v34 = vld [vmem:[%s11282_s8 + $0x1a20] sm:$0xf]  ;;  %1041 = vst [vmem:[%s11289_s9 + $0x680] sm:$0xf] %v1040_v32 }
 0x12b   : > { %1043 = vst [vmem:[%s11289_s9 + $0x684] sm:$0xf] %v1042_v33  ;;  %1045 = vst [vmem:[%s11289_s9 + $0x688] sm:$0xf] %v1044_v34  ;;  %v1046_v35 = vld [vmem:[%s11282_s8 + $0x1a30] sm:$0xf] }
 0x12c   : > { %v1048_v36 = vld [vmem:[%s11282_s8 + $0x1a40] sm:$0xf]  ;;  %v1050_v37 = vld [vmem:[%s11282_s8 + $0x1a50] sm:$0xf]  ;;  %1047 = vst [vmem:[%s11289_s9 + $0x68c] sm:$0xf] %v1046_v35 }
 0x12d   : > { %1049 = vst [vmem:[%s11289_s9 + $0x690] sm:$0xf] %v1048_v36  ;;  %1051 = vst [vmem:[%s11289_s9 + $0x694] sm:$0xf] %v1050_v37  ;;  %v1052_v38 = vld [vmem:[%s11282_s8 + $0x1a60] sm:$0xf] }
 0x12e   : > { %v1054_v39 = vld [vmem:[%s11282_s8 + $0x1a70] sm:$0xf]  ;;  %v1056_v40 = vld [vmem:[%s11282_s8 + $0x1a80] sm:$0xf]  ;;  %1053 = vst [vmem:[%s11289_s9 + $0x698] sm:$0xf] %v1052_v38 }
 0x12f   : > { %1055 = vst [vmem:[%s11289_s9 + $0x69c] sm:$0xf] %v1054_v39  ;;  %1057 = vst [vmem:[%s11289_s9 + $0x6a0] sm:$0xf] %v1056_v40  ;;  %v1058_v41 = vld [vmem:[%s11282_s8 + $0x1a90] sm:$0xf] }
 0x130   : > { %v1060_v42 = vld [vmem:[%s11282_s8 + $0x1aa0] sm:$0xf]  ;;  %v1062_v43 = vld [vmem:[%s11282_s8 + $0x1ab0] sm:$0xf]  ;;  %1059 = vst [vmem:[%s11289_s9 + $0x6a4] sm:$0xf] %v1058_v41 }
 0x131   : > { %1061 = vst [vmem:[%s11289_s9 + $0x6a8] sm:$0xf] %v1060_v42  ;;  %1063 = vst [vmem:[%s11289_s9 + $0x6ac] sm:$0xf] %v1062_v43  ;;  %v1064_v44 = vld [vmem:[%s11282_s8 + $0x1ac0] sm:$0xf] }
 0x132   : > { %v1066_v45 = vld [vmem:[%s11282_s8 + $0x1ad0] sm:$0xf]  ;;  %v1068_v46 = vld [vmem:[%s11282_s8 + $0x1ae0] sm:$0xf]  ;;  %1065 = vst [vmem:[%s11289_s9 + $0x6b0] sm:$0xf] %v1064_v44 }
 0x133   : > { %1067 = vst [vmem:[%s11289_s9 + $0x6b4] sm:$0xf] %v1066_v45  ;;  %1069 = vst [vmem:[%s11289_s9 + $0x6b8] sm:$0xf] %v1068_v46  ;;  %v1070_v47 = vld [vmem:[%s11282_s8 + $0x1af0] sm:$0xf] }
 0x134   : > { %v1072_v48 = vld [vmem:[%s11282_s8 + $0x1b00] sm:$0xf]  ;;  %v1074_v49 = vld [vmem:[%s11282_s8 + $0x1b10] sm:$0xf]  ;;  %1071 = vst [vmem:[%s11289_s9 + $0x6bc] sm:$0xf] %v1070_v47 }
 0x135   : > { %1073 = vst [vmem:[%s11289_s9 + $0x6c0] sm:$0xf] %v1072_v48  ;;  %1075 = vst [vmem:[%s11289_s9 + $0x6c4] sm:$0xf] %v1074_v49  ;;  %v1076_v50 = vld [vmem:[%s11282_s8 + $0x1b20] sm:$0xf] }
 0x136   : > { %v1078_v51 = vld [vmem:[%s11282_s8 + $0x1b30] sm:$0xf]  ;;  %v1080_v52 = vld [vmem:[%s11282_s8 + $0x1b40] sm:$0xf]  ;;  %1077 = vst [vmem:[%s11289_s9 + $0x6c8] sm:$0xf] %v1076_v50 }
 0x137   : > { %1079 = vst [vmem:[%s11289_s9 + $0x6cc] sm:$0xf] %v1078_v51  ;;  %1081 = vst [vmem:[%s11289_s9 + $0x6d0] sm:$0xf] %v1080_v52  ;;  %v1082_v53 = vld [vmem:[%s11282_s8 + $0x1b50] sm:$0xf] }
 0x138   : > { %v1084_v54 = vld [vmem:[%s11282_s8 + $0x1b60] sm:$0xf]  ;;  %v1086_v55 = vld [vmem:[%s11282_s8 + $0x1b70] sm:$0xf]  ;;  %1083 = vst [vmem:[%s11289_s9 + $0x6d4] sm:$0xf] %v1082_v53 }
 0x139   : > { %1085 = vst [vmem:[%s11289_s9 + $0x6d8] sm:$0xf] %v1084_v54  ;;  %1087 = vst [vmem:[%s11289_s9 + $0x6dc] sm:$0xf] %v1086_v55  ;;  %v1088_v56 = vld [vmem:[%s11282_s8 + $0x1b80] sm:$0xf] }
 0x13a   : > { %v1090_v57 = vld [vmem:[%s11282_s8 + $0x1b90] sm:$0xf]  ;;  %v1092_v58 = vld [vmem:[%s11282_s8 + $0x1ba0] sm:$0xf]  ;;  %1089 = vst [vmem:[%s11289_s9 + $0x6e0] sm:$0xf] %v1088_v56 }
 0x13b   : > { %1091 = vst [vmem:[%s11289_s9 + $0x6e4] sm:$0xf] %v1090_v57  ;;  %1093 = vst [vmem:[%s11289_s9 + $0x6e8] sm:$0xf] %v1092_v58  ;;  %v1094_v59 = vld [vmem:[%s11282_s8 + $0x1bb0] sm:$0xf] }
 0x13c   : > { %v1096_v60 = vld [vmem:[%s11282_s8 + $0x1bc0] sm:$0xf]  ;;  %v1098_v61 = vld [vmem:[%s11282_s8 + $0x1bd0] sm:$0xf]  ;;  %1095 = vst [vmem:[%s11289_s9 + $0x6ec] sm:$0xf] %v1094_v59 }
 0x13d   : > { %1097 = vst [vmem:[%s11289_s9 + $0x6f0] sm:$0xf] %v1096_v60  ;;  %1099 = vst [vmem:[%s11289_s9 + $0x6f4] sm:$0xf] %v1098_v61  ;;  %v1100_v62 = vld [vmem:[%s11282_s8 + $0x1be0] sm:$0xf] }
 0x13e   : > { %v1102_v63 = vld [vmem:[%s11282_s8 + $0x1bf0] sm:$0xf]  ;;  %v1104_v0 = vld [vmem:[%s11282_s8 + $0x1c00] sm:$0xf]  ;;  %1101 = vst [vmem:[%s11289_s9 + $0x6f8] sm:$0xf] %v1100_v62 }
 0x13f   : > { %1103 = vst [vmem:[%s11289_s9 + $0x6fc] sm:$0xf] %v1102_v63  ;;  %1105 = vst [vmem:[%s11289_s9 + $0x700] sm:$0xf] %v1104_v0  ;;  %v1106_v1 = vld [vmem:[%s11282_s8 + $0x1c10] sm:$0xf] }
 0x140   : > { %v1108_v2 = vld [vmem:[%s11282_s8 + $0x1c20] sm:$0xf]  ;;  %v1110_v3 = vld [vmem:[%s11282_s8 + $0x1c30] sm:$0xf]  ;;  %1107 = vst [vmem:[%s11289_s9 + $0x704] sm:$0xf] %v1106_v1 }
 0x141   : > { %1109 = vst [vmem:[%s11289_s9 + $0x708] sm:$0xf] %v1108_v2  ;;  %1111 = vst [vmem:[%s11289_s9 + $0x70c] sm:$0xf] %v1110_v3  ;;  %v1112_v4 = vld [vmem:[%s11282_s8 + $0x1c40] sm:$0xf] }
 0x142   : > { %v1114_v5 = vld [vmem:[%s11282_s8 + $0x1c50] sm:$0xf]  ;;  %v1116_v6 = vld [vmem:[%s11282_s8 + $0x1c60] sm:$0xf]  ;;  %1113 = vst [vmem:[%s11289_s9 + $0x710] sm:$0xf] %v1112_v4 }
 0x143   : > { %1115 = vst [vmem:[%s11289_s9 + $0x714] sm:$0xf] %v1114_v5  ;;  %1117 = vst [vmem:[%s11289_s9 + $0x718] sm:$0xf] %v1116_v6  ;;  %v1118_v7 = vld [vmem:[%s11282_s8 + $0x1c70] sm:$0xf] }
 0x144   : > { %v1120_v8 = vld [vmem:[%s11282_s8 + $0x1c80] sm:$0xf]  ;;  %v1122_v9 = vld [vmem:[%s11282_s8 + $0x1c90] sm:$0xf]  ;;  %1119 = vst [vmem:[%s11289_s9 + $0x71c] sm:$0xf] %v1118_v7 }
 0x145   : > { %1121 = vst [vmem:[%s11289_s9 + $0x720] sm:$0xf] %v1120_v8  ;;  %1123 = vst [vmem:[%s11289_s9 + $0x724] sm:$0xf] %v1122_v9  ;;  %v1124_v10 = vld [vmem:[%s11282_s8 + $0x1ca0] sm:$0xf] }
 0x146   : > { %v1126_v11 = vld [vmem:[%s11282_s8 + $0x1cb0] sm:$0xf]  ;;  %v1128_v12 = vld [vmem:[%s11282_s8 + $0x1cc0] sm:$0xf]  ;;  %1125 = vst [vmem:[%s11289_s9 + $0x728] sm:$0xf] %v1124_v10 }
 0x147   : > { %1127 = vst [vmem:[%s11289_s9 + $0x72c] sm:$0xf] %v1126_v11  ;;  %1129 = vst [vmem:[%s11289_s9 + $0x730] sm:$0xf] %v1128_v12  ;;  %v1130_v13 = vld [vmem:[%s11282_s8 + $0x1cd0] sm:$0xf] }
 0x148   : > { %v1132_v14 = vld [vmem:[%s11282_s8 + $0x1ce0] sm:$0xf]  ;;  %v1134_v15 = vld [vmem:[%s11282_s8 + $0x1cf0] sm:$0xf]  ;;  %1131 = vst [vmem:[%s11289_s9 + $0x734] sm:$0xf] %v1130_v13 }
 0x149   : > { %1133 = vst [vmem:[%s11289_s9 + $0x738] sm:$0xf] %v1132_v14  ;;  %1135 = vst [vmem:[%s11289_s9 + $0x73c] sm:$0xf] %v1134_v15  ;;  %v1136_v16 = vld [vmem:[%s11282_s8 + $0x1d00] sm:$0xf] }
 0x14a   : > { %v1138_v17 = vld [vmem:[%s11282_s8 + $0x1d10] sm:$0xf]  ;;  %v1140_v18 = vld [vmem:[%s11282_s8 + $0x1d20] sm:$0xf]  ;;  %1137 = vst [vmem:[%s11289_s9 + $0x740] sm:$0xf] %v1136_v16 }
 0x14b   : > { %1139 = vst [vmem:[%s11289_s9 + $0x744] sm:$0xf] %v1138_v17  ;;  %1141 = vst [vmem:[%s11289_s9 + $0x748] sm:$0xf] %v1140_v18  ;;  %v1142_v19 = vld [vmem:[%s11282_s8 + $0x1d30] sm:$0xf] }
 0x14c   : > { %v1144_v20 = vld [vmem:[%s11282_s8 + $0x1d40] sm:$0xf]  ;;  %v1146_v21 = vld [vmem:[%s11282_s8 + $0x1d50] sm:$0xf]  ;;  %1143 = vst [vmem:[%s11289_s9 + $0x74c] sm:$0xf] %v1142_v19 }
 0x14d   : > { %1145 = vst [vmem:[%s11289_s9 + $0x750] sm:$0xf] %v1144_v20  ;;  %1147 = vst [vmem:[%s11289_s9 + $0x754] sm:$0xf] %v1146_v21  ;;  %v1148_v22 = vld [vmem:[%s11282_s8 + $0x1d60] sm:$0xf] }
 0x14e   : > { %v1150_v23 = vld [vmem:[%s11282_s8 + $0x1d70] sm:$0xf]  ;;  %v1152_v24 = vld [vmem:[%s11282_s8 + $0x1d80] sm:$0xf]  ;;  %1149 = vst [vmem:[%s11289_s9 + $0x758] sm:$0xf] %v1148_v22 }
 0x14f   : > { %1151 = vst [vmem:[%s11289_s9 + $0x75c] sm:$0xf] %v1150_v23  ;;  %1153 = vst [vmem:[%s11289_s9 + $0x760] sm:$0xf] %v1152_v24  ;;  %v1154_v25 = vld [vmem:[%s11282_s8 + $0x1d90] sm:$0xf] }
 0x150   : > { %v1156_v26 = vld [vmem:[%s11282_s8 + $0x1da0] sm:$0xf]  ;;  %v1158_v27 = vld [vmem:[%s11282_s8 + $0x1db0] sm:$0xf]  ;;  %1155 = vst [vmem:[%s11289_s9 + $0x764] sm:$0xf] %v1154_v25 }
 0x151   : > { %1157 = vst [vmem:[%s11289_s9 + $0x768] sm:$0xf] %v1156_v26  ;;  %1159 = vst [vmem:[%s11289_s9 + $0x76c] sm:$0xf] %v1158_v27  ;;  %v1160_v28 = vld [vmem:[%s11282_s8 + $0x1dc0] sm:$0xf] }
 0x152   : > { %v1162_v29 = vld [vmem:[%s11282_s8 + $0x1dd0] sm:$0xf]  ;;  %v1164_v30 = vld [vmem:[%s11282_s8 + $0x1de0] sm:$0xf]  ;;  %1161 = vst [vmem:[%s11289_s9 + $0x770] sm:$0xf] %v1160_v28 }
 0x153   : > { %1163 = vst [vmem:[%s11289_s9 + $0x774] sm:$0xf] %v1162_v29  ;;  %1165 = vst [vmem:[%s11289_s9 + $0x778] sm:$0xf] %v1164_v30  ;;  %v1166_v31 = vld [vmem:[%s11282_s8 + $0x1df0] sm:$0xf] }
 0x154   : > { %v1168_v32 = vld [vmem:[%s11282_s8 + $0x1e00] sm:$0xf]  ;;  %v1170_v33 = vld [vmem:[%s11282_s8 + $0x1e10] sm:$0xf]  ;;  %1167 = vst [vmem:[%s11289_s9 + $0x77c] sm:$0xf] %v1166_v31 }
 0x155   : > { %1169 = vst [vmem:[%s11289_s9 + $0x780] sm:$0xf] %v1168_v32  ;;  %1171 = vst [vmem:[%s11289_s9 + $0x784] sm:$0xf] %v1170_v33  ;;  %v1172_v34 = vld [vmem:[%s11282_s8 + $0x1e20] sm:$0xf] }
 0x156   : > { %v1174_v35 = vld [vmem:[%s11282_s8 + $0x1e30] sm:$0xf]  ;;  %v1176_v36 = vld [vmem:[%s11282_s8 + $0x1e40] sm:$0xf]  ;;  %1173 = vst [vmem:[%s11289_s9 + $0x788] sm:$0xf] %v1172_v34 }
 0x157   : > { %1175 = vst [vmem:[%s11289_s9 + $0x78c] sm:$0xf] %v1174_v35  ;;  %1177 = vst [vmem:[%s11289_s9 + $0x790] sm:$0xf] %v1176_v36  ;;  %v1178_v37 = vld [vmem:[%s11282_s8 + $0x1e50] sm:$0xf] }
 0x158   : > { %v1180_v38 = vld [vmem:[%s11282_s8 + $0x1e60] sm:$0xf]  ;;  %v1182_v39 = vld [vmem:[%s11282_s8 + $0x1e70] sm:$0xf]  ;;  %1179 = vst [vmem:[%s11289_s9 + $0x794] sm:$0xf] %v1178_v37 }
 0x159   : > { %1181 = vst [vmem:[%s11289_s9 + $0x798] sm:$0xf] %v1180_v38  ;;  %1183 = vst [vmem:[%s11289_s9 + $0x79c] sm:$0xf] %v1182_v39  ;;  %v1184_v40 = vld [vmem:[%s11282_s8 + $0x1e80] sm:$0xf] }
 0x15a   : > { %v1186_v41 = vld [vmem:[%s11282_s8 + $0x1e90] sm:$0xf]  ;;  %v1188_v42 = vld [vmem:[%s11282_s8 + $0x1ea0] sm:$0xf]  ;;  %1185 = vst [vmem:[%s11289_s9 + $0x7a0] sm:$0xf] %v1184_v40 }
 0x15b   : > { %1187 = vst [vmem:[%s11289_s9 + $0x7a4] sm:$0xf] %v1186_v41  ;;  %1189 = vst [vmem:[%s11289_s9 + $0x7a8] sm:$0xf] %v1188_v42  ;;  %v1190_v43 = vld [vmem:[%s11282_s8 + $0x1eb0] sm:$0xf] }
 0x15c   : > { %v1192_v44 = vld [vmem:[%s11282_s8 + $0x1ec0] sm:$0xf]  ;;  %v1194_v45 = vld [vmem:[%s11282_s8 + $0x1ed0] sm:$0xf]  ;;  %1191 = vst [vmem:[%s11289_s9 + $0x7ac] sm:$0xf] %v1190_v43 }
 0x15d   : > { %1193 = vst [vmem:[%s11289_s9 + $0x7b0] sm:$0xf] %v1192_v44  ;;  %1195 = vst [vmem:[%s11289_s9 + $0x7b4] sm:$0xf] %v1194_v45  ;;  %v1196_v46 = vld [vmem:[%s11282_s8 + $0x1ee0] sm:$0xf] }
 0x15e   : > { %v1198_v47 = vld [vmem:[%s11282_s8 + $0x1ef0] sm:$0xf]  ;;  %v1200_v48 = vld [vmem:[%s11282_s8 + $0x1f00] sm:$0xf]  ;;  %1197 = vst [vmem:[%s11289_s9 + $0x7b8] sm:$0xf] %v1196_v46 }
 0x15f   : > { %1199 = vst [vmem:[%s11289_s9 + $0x7bc] sm:$0xf] %v1198_v47  ;;  %1201 = vst [vmem:[%s11289_s9 + $0x7c0] sm:$0xf] %v1200_v48  ;;  %v1202_v49 = vld [vmem:[%s11282_s8 + $0x1f10] sm:$0xf] }
 0x160   : > { %v1204_v50 = vld [vmem:[%s11282_s8 + $0x1f20] sm:$0xf]  ;;  %v1206_v51 = vld [vmem:[%s11282_s8 + $0x1f30] sm:$0xf]  ;;  %1203 = vst [vmem:[%s11289_s9 + $0x7c4] sm:$0xf] %v1202_v49 }
 0x161   : > { %1205 = vst [vmem:[%s11289_s9 + $0x7c8] sm:$0xf] %v1204_v50  ;;  %1207 = vst [vmem:[%s11289_s9 + $0x7cc] sm:$0xf] %v1206_v51  ;;  %v1208_v52 = vld [vmem:[%s11282_s8 + $0x1f40] sm:$0xf] }
 0x162   : > { %v1210_v53 = vld [vmem:[%s11282_s8 + $0x1f50] sm:$0xf]  ;;  %v1212_v54 = vld [vmem:[%s11282_s8 + $0x1f60] sm:$0xf]  ;;  %1209 = vst [vmem:[%s11289_s9 + $0x7d0] sm:$0xf] %v1208_v52 }
 0x163   : > { %1211 = vst [vmem:[%s11289_s9 + $0x7d4] sm:$0xf] %v1210_v53  ;;  %1213 = vst [vmem:[%s11289_s9 + $0x7d8] sm:$0xf] %v1212_v54  ;;  %v1214_v55 = vld [vmem:[%s11282_s8 + $0x1f70] sm:$0xf] }
 0x164   : > { %v1216_v56 = vld [vmem:[%s11282_s8 + $0x1f80] sm:$0xf]  ;;  %v1218_v57 = vld [vmem:[%s11282_s8 + $0x1f90] sm:$0xf]  ;;  %1215 = vst [vmem:[%s11289_s9 + $0x7dc] sm:$0xf] %v1214_v55 }
 0x165   : > { %1217 = vst [vmem:[%s11289_s9 + $0x7e0] sm:$0xf] %v1216_v56  ;;  %1219 = vst [vmem:[%s11289_s9 + $0x7e4] sm:$0xf] %v1218_v57  ;;  %v1220_v58 = vld [vmem:[%s11282_s8 + $0x1fa0] sm:$0xf] }
 0x166   : > { %v1222_v59 = vld [vmem:[%s11282_s8 + $0x1fb0] sm:$0xf]  ;;  %v1224_v60 = vld [vmem:[%s11282_s8 + $0x1fc0] sm:$0xf]  ;;  %1221 = vst [vmem:[%s11289_s9 + $0x7e8] sm:$0xf] %v1220_v58 }
 0x167   : > { %1223 = vst [vmem:[%s11289_s9 + $0x7ec] sm:$0xf] %v1222_v59  ;;  %1225 = vst [vmem:[%s11289_s9 + $0x7f0] sm:$0xf] %v1224_v60  ;;  %v1226_v61 = vld [vmem:[%s11282_s8 + $0x1fd0] sm:$0xf] }
 0x168   : > { %v1228_v62 = vld [vmem:[%s11282_s8 + $0x1fe0] sm:$0xf]  ;;  %v1230_v63 = vld [vmem:[%s11282_s8 + $0x1ff0] sm:$0xf]  ;;  %1227 = vst [vmem:[%s11289_s9 + $0x7f4] sm:$0xf] %v1226_v61 }
 0x169   : > { %1229 = vst [vmem:[%s11289_s9 + $0x7f8] sm:$0xf] %v1228_v62  ;;  %1231 = vst [vmem:[%s11289_s9 + $0x7fc] sm:$0xf] %v1230_v63  ;;  %v1232_v0 = vld [vmem:[%s11282_s8 + $0x2000] sm:$0xf] }
 0x16a   : > { %v1234_v1 = vld [vmem:[%s11282_s8 + $0x2010] sm:$0xf]  ;;  %v1236_v2 = vld [vmem:[%s11282_s8 + $0x2020] sm:$0xf]  ;;  %1233 = vst [vmem:[%s11289_s9 + $0x800] sm:$0xf] %v1232_v0 }
 0x16b   : > { %1235 = vst [vmem:[%s11289_s9 + $0x804] sm:$0xf] %v1234_v1  ;;  %1237 = vst [vmem:[%s11289_s9 + $0x808] sm:$0xf] %v1236_v2  ;;  %v1238_v3 = vld [vmem:[%s11282_s8 + $0x2030] sm:$0xf] }
 0x16c   : > { %v1240_v4 = vld [vmem:[%s11282_s8 + $0x2040] sm:$0xf]  ;;  %v1242_v5 = vld [vmem:[%s11282_s8 + $0x2050] sm:$0xf]  ;;  %1239 = vst [vmem:[%s11289_s9 + $0x80c] sm:$0xf] %v1238_v3 }
 0x16d   : > { %1241 = vst [vmem:[%s11289_s9 + $0x810] sm:$0xf] %v1240_v4  ;;  %1243 = vst [vmem:[%s11289_s9 + $0x814] sm:$0xf] %v1242_v5  ;;  %v1244_v6 = vld [vmem:[%s11282_s8 + $0x2060] sm:$0xf] }
 0x16e   : > { %v1246_v7 = vld [vmem:[%s11282_s8 + $0x2070] sm:$0xf]  ;;  %v1248_v8 = vld [vmem:[%s11282_s8 + $0x2080] sm:$0xf]  ;;  %1245 = vst [vmem:[%s11289_s9 + $0x818] sm:$0xf] %v1244_v6 }
 0x16f   : > { %1247 = vst [vmem:[%s11289_s9 + $0x81c] sm:$0xf] %v1246_v7  ;;  %1249 = vst [vmem:[%s11289_s9 + $0x820] sm:$0xf] %v1248_v8  ;;  %v1250_v9 = vld [vmem:[%s11282_s8 + $0x2090] sm:$0xf] }
 0x170   : > { %v1252_v10 = vld [vmem:[%s11282_s8 + $0x20a0] sm:$0xf]  ;;  %v1254_v11 = vld [vmem:[%s11282_s8 + $0x20b0] sm:$0xf]  ;;  %1251 = vst [vmem:[%s11289_s9 + $0x824] sm:$0xf] %v1250_v9 }
 0x171   : > { %1253 = vst [vmem:[%s11289_s9 + $0x828] sm:$0xf] %v1252_v10  ;;  %1255 = vst [vmem:[%s11289_s9 + $0x82c] sm:$0xf] %v1254_v11  ;;  %v1256_v12 = vld [vmem:[%s11282_s8 + $0x20c0] sm:$0xf] }
 0x172   : > { %v1258_v13 = vld [vmem:[%s11282_s8 + $0x20d0] sm:$0xf]  ;;  %v1260_v14 = vld [vmem:[%s11282_s8 + $0x20e0] sm:$0xf]  ;;  %1257 = vst [vmem:[%s11289_s9 + $0x830] sm:$0xf] %v1256_v12 }
 0x173   : > { %1259 = vst [vmem:[%s11289_s9 + $0x834] sm:$0xf] %v1258_v13  ;;  %1261 = vst [vmem:[%s11289_s9 + $0x838] sm:$0xf] %v1260_v14  ;;  %v1262_v15 = vld [vmem:[%s11282_s8 + $0x20f0] sm:$0xf] }
 0x174   : > { %v1264_v16 = vld [vmem:[%s11282_s8 + $0x2100] sm:$0xf]  ;;  %v1266_v17 = vld [vmem:[%s11282_s8 + $0x2110] sm:$0xf]  ;;  %1263 = vst [vmem:[%s11289_s9 + $0x83c] sm:$0xf] %v1262_v15 }
 0x175   : > { %1265 = vst [vmem:[%s11289_s9 + $0x840] sm:$0xf] %v1264_v16  ;;  %1267 = vst [vmem:[%s11289_s9 + $0x844] sm:$0xf] %v1266_v17  ;;  %v1268_v18 = vld [vmem:[%s11282_s8 + $0x2120] sm:$0xf] }
 0x176   : > { %v1270_v19 = vld [vmem:[%s11282_s8 + $0x2130] sm:$0xf]  ;;  %v1272_v20 = vld [vmem:[%s11282_s8 + $0x2140] sm:$0xf]  ;;  %1269 = vst [vmem:[%s11289_s9 + $0x848] sm:$0xf] %v1268_v18 }
 0x177   : > { %1271 = vst [vmem:[%s11289_s9 + $0x84c] sm:$0xf] %v1270_v19  ;;  %1273 = vst [vmem:[%s11289_s9 + $0x850] sm:$0xf] %v1272_v20  ;;  %v1274_v21 = vld [vmem:[%s11282_s8 + $0x2150] sm:$0xf] }
 0x178   : > { %v1276_v22 = vld [vmem:[%s11282_s8 + $0x2160] sm:$0xf]  ;;  %v1278_v23 = vld [vmem:[%s11282_s8 + $0x2170] sm:$0xf]  ;;  %1275 = vst [vmem:[%s11289_s9 + $0x854] sm:$0xf] %v1274_v21 }
 0x179   : > { %1277 = vst [vmem:[%s11289_s9 + $0x858] sm:$0xf] %v1276_v22  ;;  %1279 = vst [vmem:[%s11289_s9 + $0x85c] sm:$0xf] %v1278_v23  ;;  %v1280_v24 = vld [vmem:[%s11282_s8 + $0x2180] sm:$0xf] }
 0x17a   : > { %v1282_v25 = vld [vmem:[%s11282_s8 + $0x2190] sm:$0xf]  ;;  %v1284_v26 = vld [vmem:[%s11282_s8 + $0x21a0] sm:$0xf]  ;;  %1281 = vst [vmem:[%s11289_s9 + $0x860] sm:$0xf] %v1280_v24 }
 0x17b   : > { %1283 = vst [vmem:[%s11289_s9 + $0x864] sm:$0xf] %v1282_v25  ;;  %1285 = vst [vmem:[%s11289_s9 + $0x868] sm:$0xf] %v1284_v26  ;;  %v1286_v27 = vld [vmem:[%s11282_s8 + $0x21b0] sm:$0xf] }
 0x17c   : > { %v1288_v28 = vld [vmem:[%s11282_s8 + $0x21c0] sm:$0xf]  ;;  %v1290_v29 = vld [vmem:[%s11282_s8 + $0x21d0] sm:$0xf]  ;;  %1287 = vst [vmem:[%s11289_s9 + $0x86c] sm:$0xf] %v1286_v27 }
 0x17d   : > { %1289 = vst [vmem:[%s11289_s9 + $0x870] sm:$0xf] %v1288_v28  ;;  %1291 = vst [vmem:[%s11289_s9 + $0x874] sm:$0xf] %v1290_v29  ;;  %v1292_v30 = vld [vmem:[%s11282_s8 + $0x21e0] sm:$0xf] }
 0x17e   : > { %v1294_v31 = vld [vmem:[%s11282_s8 + $0x21f0] sm:$0xf]  ;;  %v1296_v32 = vld [vmem:[%s11282_s8 + $0x2200] sm:$0xf]  ;;  %1293 = vst [vmem:[%s11289_s9 + $0x878] sm:$0xf] %v1292_v30 }
 0x17f   : > { %1295 = vst [vmem:[%s11289_s9 + $0x87c] sm:$0xf] %v1294_v31  ;;  %1297 = vst [vmem:[%s11289_s9 + $0x880] sm:$0xf] %v1296_v32  ;;  %v1298_v33 = vld [vmem:[%s11282_s8 + $0x2210] sm:$0xf] }
 0x180   : > { %v1300_v34 = vld [vmem:[%s11282_s8 + $0x2220] sm:$0xf]  ;;  %v1302_v35 = vld [vmem:[%s11282_s8 + $0x2230] sm:$0xf]  ;;  %1299 = vst [vmem:[%s11289_s9 + $0x884] sm:$0xf] %v1298_v33 }
 0x181   : > { %1301 = vst [vmem:[%s11289_s9 + $0x888] sm:$0xf] %v1300_v34  ;;  %1303 = vst [vmem:[%s11289_s9 + $0x88c] sm:$0xf] %v1302_v35  ;;  %v1304_v36 = vld [vmem:[%s11282_s8 + $0x2240] sm:$0xf] }
 0x182   : > { %v1306_v37 = vld [vmem:[%s11282_s8 + $0x2250] sm:$0xf]  ;;  %v1308_v38 = vld [vmem:[%s11282_s8 + $0x2260] sm:$0xf]  ;;  %1305 = vst [vmem:[%s11289_s9 + $0x890] sm:$0xf] %v1304_v36 }
 0x183   : > { %1307 = vst [vmem:[%s11289_s9 + $0x894] sm:$0xf] %v1306_v37  ;;  %1309 = vst [vmem:[%s11289_s9 + $0x898] sm:$0xf] %v1308_v38  ;;  %v1310_v39 = vld [vmem:[%s11282_s8 + $0x2270] sm:$0xf] }
 0x184   : > { %v1312_v40 = vld [vmem:[%s11282_s8 + $0x2280] sm:$0xf]  ;;  %v1314_v41 = vld [vmem:[%s11282_s8 + $0x2290] sm:$0xf]  ;;  %1311 = vst [vmem:[%s11289_s9 + $0x89c] sm:$0xf] %v1310_v39 }
 0x185   : > { %1313 = vst [vmem:[%s11289_s9 + $0x8a0] sm:$0xf] %v1312_v40  ;;  %1315 = vst [vmem:[%s11289_s9 + $0x8a4] sm:$0xf] %v1314_v41  ;;  %v1316_v42 = vld [vmem:[%s11282_s8 + $0x22a0] sm:$0xf] }
 0x186   : > { %v1318_v43 = vld [vmem:[%s11282_s8 + $0x22b0] sm:$0xf]  ;;  %v1320_v44 = vld [vmem:[%s11282_s8 + $0x22c0] sm:$0xf]  ;;  %1317 = vst [vmem:[%s11289_s9 + $0x8a8] sm:$0xf] %v1316_v42 }
 0x187   : > { %1319 = vst [vmem:[%s11289_s9 + $0x8ac] sm:$0xf] %v1318_v43  ;;  %1321 = vst [vmem:[%s11289_s9 + $0x8b0] sm:$0xf] %v1320_v44  ;;  %v1322_v45 = vld [vmem:[%s11282_s8 + $0x22d0] sm:$0xf] }
 0x188   : > { %v1324_v46 = vld [vmem:[%s11282_s8 + $0x22e0] sm:$0xf]  ;;  %v1326_v47 = vld [vmem:[%s11282_s8 + $0x22f0] sm:$0xf]  ;;  %1323 = vst [vmem:[%s11289_s9 + $0x8b4] sm:$0xf] %v1322_v45 }
 0x189   : > { %1325 = vst [vmem:[%s11289_s9 + $0x8b8] sm:$0xf] %v1324_v46  ;;  %1327 = vst [vmem:[%s11289_s9 + $0x8bc] sm:$0xf] %v1326_v47  ;;  %v1328_v48 = vld [vmem:[%s11282_s8 + $0x2300] sm:$0xf] }
 0x18a   : > { %v1330_v49 = vld [vmem:[%s11282_s8 + $0x2310] sm:$0xf]  ;;  %v1332_v50 = vld [vmem:[%s11282_s8 + $0x2320] sm:$0xf]  ;;  %1329 = vst [vmem:[%s11289_s9 + $0x8c0] sm:$0xf] %v1328_v48 }
 0x18b   : > { %1331 = vst [vmem:[%s11289_s9 + $0x8c4] sm:$0xf] %v1330_v49  ;;  %1333 = vst [vmem:[%s11289_s9 + $0x8c8] sm:$0xf] %v1332_v50  ;;  %v1334_v51 = vld [vmem:[%s11282_s8 + $0x2330] sm:$0xf] }
 0x18c   : > { %v1336_v52 = vld [vmem:[%s11282_s8 + $0x2340] sm:$0xf]  ;;  %v1338_v53 = vld [vmem:[%s11282_s8 + $0x2350] sm:$0xf]  ;;  %1335 = vst [vmem:[%s11289_s9 + $0x8cc] sm:$0xf] %v1334_v51 }
 0x18d   : > { %1337 = vst [vmem:[%s11289_s9 + $0x8d0] sm:$0xf] %v1336_v52  ;;  %1339 = vst [vmem:[%s11289_s9 + $0x8d4] sm:$0xf] %v1338_v53  ;;  %v1340_v54 = vld [vmem:[%s11282_s8 + $0x2360] sm:$0xf] }
 0x18e   : > { %v1342_v55 = vld [vmem:[%s11282_s8 + $0x2370] sm:$0xf]  ;;  %v1344_v56 = vld [vmem:[%s11282_s8 + $0x2380] sm:$0xf]  ;;  %1341 = vst [vmem:[%s11289_s9 + $0x8d8] sm:$0xf] %v1340_v54 }
 0x18f   : > { %1343 = vst [vmem:[%s11289_s9 + $0x8dc] sm:$0xf] %v1342_v55  ;;  %1345 = vst [vmem:[%s11289_s9 + $0x8e0] sm:$0xf] %v1344_v56  ;;  %v1346_v57 = vld [vmem:[%s11282_s8 + $0x2390] sm:$0xf] }
 0x190   : > { %v1348_v58 = vld [vmem:[%s11282_s8 + $0x23a0] sm:$0xf]  ;;  %v1350_v59 = vld [vmem:[%s11282_s8 + $0x23b0] sm:$0xf]  ;;  %1347 = vst [vmem:[%s11289_s9 + $0x8e4] sm:$0xf] %v1346_v57 }
 0x191   : > { %1349 = vst [vmem:[%s11289_s9 + $0x8e8] sm:$0xf] %v1348_v58  ;;  %1351 = vst [vmem:[%s11289_s9 + $0x8ec] sm:$0xf] %v1350_v59  ;;  %v1352_v60 = vld [vmem:[%s11282_s8 + $0x23c0] sm:$0xf] }
 0x192   : > { %v1354_v61 = vld [vmem:[%s11282_s8 + $0x23d0] sm:$0xf]  ;;  %v1356_v62 = vld [vmem:[%s11282_s8 + $0x23e0] sm:$0xf]  ;;  %1353 = vst [vmem:[%s11289_s9 + $0x8f0] sm:$0xf] %v1352_v60 }
 0x193   : > { %1355 = vst [vmem:[%s11289_s9 + $0x8f4] sm:$0xf] %v1354_v61  ;;  %1357 = vst [vmem:[%s11289_s9 + $0x8f8] sm:$0xf] %v1356_v62  ;;  %v1358_v63 = vld [vmem:[%s11282_s8 + $0x23f0] sm:$0xf] }
 0x194   : > { %1359 = vst [vmem:[%s11289_s9 + $0x8fc] sm:$0xf] %v1358_v63 }
 0x195 PF: > { %4880 = sbr.rel (!%p11266_p4) target bundleno = 416 (0x1a0), region = 84  ;;  %s4882_s10 = sand.u32 (%p11266_p4), 1, %s11199_s19  }
 0x196   : > { %s9508_s11 = sshll.u32 (%p11266_p4), %s11203_s20, 3  ;;  %s10666_s12 = smul.u32 (%p11266_p4), 56, %s4882_s10 }
 0x197   : > { %s4886_s15 = scalar_lea.vmem (%p11266_p4), %s13257_s4, %s9508_s11 }
 0x198   : > { %v4926_v0 = vld [vmem:[%s4886_s15] sm:$0xff] (%p11266_p4)  ;;  %s4884_s16 = scalar_lea.vmem (%p11266_p4), [#allocation3], %s10666_s12 }
 0x199   : > { %v4928_v1 = vld [vmem:[%s4886_s15 + $0x20] sm:$0xff] (%p11266_p4)  ;;  %4927 = vst [vmem:[%s4884_s16] sm:$0xff] (%p11266_p4), %v4926_v0 }
 0x19a   : > { %v4930_v2 = vld [vmem:[%s4886_s15 + $0x40] sm:$0xff] (%p11266_p4)  ;;  %4929 = vst [vmem:[%s4884_s16 + $0x8] sm:$0xff] (%p11266_p4), %v4928_v1 }
 0x19b   : > { %v4932_v3 = vld [vmem:[%s4886_s15 + $0x60] sm:$0xff] (%p11266_p4)  ;;  %4931 = vst [vmem:[%s4884_s16 + $0x10] sm:$0xff] (%p11266_p4), %v4930_v2 }
 0x19c   : > { %v4934_v4 = vld [vmem:[%s4886_s15 + $0x80] sm:$0xff]  ;;  %4933 = vst [vmem:[%s4884_s16 + $0x18] sm:$0xff] %v4932_v3 }
 0x19d   : > { %v4936_v5 = vld [vmem:[%s4886_s15 + $0xa0] sm:$0xff]  ;;  %4935 = vst [vmem:[%s4884_s16 + $0x20] sm:$0xff] %v4934_v4 }
 0x19e   : > { %4937 = vst [vmem:[%s4884_s16 + $0x28] sm:$0xff] %v4936_v5  ;;  %v4938_v6 = vld [vmem:[%s4886_s15 + $0xc0] sm:$0xff] }
 0x19f   : > { %4939 = vst [vmem:[%s4884_s16 + $0x30] sm:$0xff] %v4938_v6 }
 0x1a0 PF: > { %p9509_p7 = scmp.ge.s32.totalorder %s11203_s20, 1  ;;  %p4944_p8 = scmp.lt.s32.totalorder %s11203_s20, 5 }
 0x1a2   : > { %p4945_p9 = pnand %p9509_p7, %p4944_p8 }
 0x1a3   : > { %s4951_s17 = sand.u32 (!%p4945_p9), 1, %s11195_s18   ;;  %v10727_v7 = vld [vmem:[%s13253_s0 + $0x4] ss:$144 sps:$4 sm:$0xff] (!%p4945_p9)   ;;  %v10730_v8 = vld [vmem:[%s13253_s0 + $0xc] ss:$144 sps:$4 sm:$0xff] (!%p4945_p9)   ;;  %p4994_p10 = scmp.lt.s32.totalorder (!%p4945_p9), %s11251_s21, 3 }
 0x1a4   : > { %4948 = sbr.rel (%p4945_p9) target bundleno = 1057 (0x421), region = 122  ;;  %8129 = vmatprep.mubr.bf16.mxu0 (!%p4945_p9), %v10727_v7  ;;  %8193 = vmatprep.mubr.bf16.mxu1 (!%p4945_p9), %v10730_v8  ;;  %v10725_v39 = vld [vmem:[%s13253_s0] ss:$144 sps:$4 sm:$0xff] (!%p4945_p9)   ;;  %v10728_v41 = vld [vmem:[%s13253_s0 + $0x8] ss:$144 sps:$4 sm:$0xff] (!%p4945_p9)  }
 0x1a5   : > { %s10667_s23 = smul.u32 (!%p4945_p9), 2304, %s4951_s17  ;;  %v10739_v43 = vld [vmem:[%s13253_s0 + $0x124] ss:$144 sps:$4 sm:$0xff] (!%p4945_p9)   ;;  %v10741_v52 = vld [vmem:[%s13253_s0 + $0x12c] ss:$144 sps:$4 sm:$0xff] (!%p4945_p9)  }
 0x1a6   : > { %v10743_v53 = vld [vmem:[%s13253_s0 + $0x120] ss:$144 sps:$4 sm:$0xff] (!%p4945_p9)   ;;  %v10744_v54 = vld [vmem:[%s13253_s0 + $0x128] ss:$144 sps:$4 sm:$0xff] (!%p4945_p9)   ;;  %v10753_v63 = vld [vmem:[%s13253_s0 + $0x244] ss:$144 sps:$4 sm:$0xff] (!%p4945_p9)  }
 0x1a7   : > { %s12456_s30 = scalar_lea.vmem (!%p4945_p9), [#allocation2], %s10667_s23  ;;  %v10755_v0 = vld [vmem:[%s13253_s0 + $0x24c] ss:$144 sps:$4 sm:$0xff] (!%p4945_p9)   ;;  %v10757_v1 = vld [vmem:[%s13253_s0 + $0x240] ss:$144 sps:$4 sm:$0xff] (!%p4945_p9)   ;;  %s13229_s28 = smul.u32 (!%p4945_p9), 56, %s4951_s17 }
 0x1a8   : > { %v10693_v9 = vld [vmem:[%s12456_s30 + $0x40] sm:$0xff] (!%p4945_p9)   ;;  %v10697_v13 = vld [vmem:[%s12456_s30 + $0x48] sm:$0xff] (!%p4945_p9)   ;;  %v10701_v17 = vld [vmem:[%s12456_s30 + $0x50] sm:$0xff] (!%p4945_p9)  }
 0x1a9   : > { %v10694_v10 = vld [vmem:[%s12456_s30 + $0xc0] sm:$0xff] (!%p4945_p9)   ;;  %9945 = vmatprep.subr.bf16.mxu0 (!%p4945_p9), %v10693_v9  ;;  %v10698_v14 = vld [vmem:[%s12456_s30 + $0xc8] sm:$0xff] (!%p4945_p9)   ;;  %v10702_v18 = vld [vmem:[%s12456_s30 + $0xd0] sm:$0xff] (!%p4945_p9)   ;;  %s4960_s18 = scalar_lea.vmem (!%p4945_p9), [#allocation3], %s13229_s28  ;;  %s4993_s17 = scalar_lea.vmem (!%p4945_p9), [#allocation4], %s13229_s28 }
 0x1aa   : > { %v10695_v11 = vld [vmem:[%s12456_s30] sm:$0xff] (!%p4945_p9)   ;;  %9985 = vmatprep.subr.bf16.mxu1 (!%p4945_p9), %v10694_v10  ;;  %v10699_v15 = vld [vmem:[%s12456_s30 + $0x8] sm:$0xff] (!%p4945_p9)   ;;  %v10703_v19 = vld [vmem:[%s12456_s30 + $0x10] sm:$0xff] (!%p4945_p9)  }
 0x1ab   : > { %v10696_v12 = vld [vmem:[%s12456_s30 + $0x80] sm:$0xff]   ;;  %9946 = vmatpush3.bf16.msra.mxu0 %v10695_v11  ;;  %v10700_v16 = vld [vmem:[%s12456_s30 + $0x88] sm:$0xff]   ;;  %v10704_v20 = vld [vmem:[%s12456_s30 + $0x90] sm:$0xff]   ;;  %s4995_s13 = scalar_select %p4994_p10, %s11251_s21, 3 }
 0x1ac   : > { %9986 = vmatpush3.bf16.msra.mxu1 %v10696_v12  ;;  %9947 = vmatprep.subr.bf16.mxu0 %v10697_v13  ;;  %v10705_v21 = vld [vmem:[%s12456_s30 + $0x58] sm:$0xff]   ;;  %v10709_v25 = vld [vmem:[%s12456_s30 + $0x60] sm:$0xff]   ;;  %v10713_v29 = vld [vmem:[%s12456_s30 + $0x68] sm:$0xff]   ;;  %s9942_s29 = sshll.u32 (%p11270_p5), %s11251_s21, 3 }
 0x1ad   : > { %9987 = vmatprep.subr.bf16.mxu1 %v10698_v14  ;;  %v10706_v22 = vld [vmem:[%s12456_s30 + $0xd8] sm:$0xff]   ;;  %v10710_v26 = vld [vmem:[%s12456_s30 + $0xe0] sm:$0xff]   ;;  %v10714_v30 = vld [vmem:[%s12456_s30 + $0xe8] sm:$0xff]   ;;  %s4996_s16 = scalar_lea.vmem %s13255_s2, %s4995_s13  ;;  %s4999_s26 = scalar_lea.vmem %s13256_s3, %s4995_s13 }
 0x1ae   : > { %v10707_v23 = vld [vmem:[%s12456_s30 + $0x18] sm:$0xff]   ;;  %v10711_v27 = vld [vmem:[%s12456_s30 + $0x20] sm:$0xff]   ;;  %v10715_v31 = vld [vmem:[%s12456_s30 + $0x28] sm:$0xff]   ;;  %s9346_s7 = scalar_lea.vmem (%p11270_p5), %s13258_s5, %s9942_s29 }
 0x1af   : > { %9948 = vmatpush3.bf16.msra.mxu0 %v10699_v15  ;;  %v10708_v24 = vld [vmem:[%s12456_s30 + $0x98] sm:$0xff]   ;;  %v10712_v28 = vld [vmem:[%s12456_s30 + $0xa0] sm:$0xff]   ;;  %v10716_v32 = vld [vmem:[%s12456_s30 + $0xa8] sm:$0xff]  }
 0x1b0   : > { %9988 = vmatpush3.bf16.msra.mxu1 %v10700_v16  ;;  %9949 = vmatprep.subr.bf16.mxu0 %v10701_v17  ;;  %v10717_v33 = vld [vmem:[%s12456_s30 + $0x70] sm:$0xff]   ;;  %v10721_v37 = vld [vmem:[%s12456_s30 + $0x78] sm:$0xff]   ;;  %v10731_v44 = vld [vmem:[%s12456_s30 + $0x140] sm:$0xff]  }
 0x1b1   : > { %9989 = vmatprep.subr.bf16.mxu1 %v10702_v18  ;;  %v10718_v34 = vld [vmem:[%s12456_s30 + $0xf0] sm:$0xff]   ;;  %v10722_v38 = vld [vmem:[%s12456_s30 + $0xf8] sm:$0xff]   ;;  %v10732_v45 = vld [vmem:[%s12456_s30 + $0x1c0] sm:$0xff]  }
 0x1b2   : > { %v10719_v35 = vld [vmem:[%s12456_s30 + $0x30] sm:$0xff]   ;;  %v10723_v40 = vld [vmem:[%s12456_s30 + $0x38] sm:$0xff]   ;;  %v10733_v46 = vld [vmem:[%s12456_s30 + $0x100] sm:$0xff]  }
 0x1b3   : > { %9950 = vmatpush3.bf16.msra.mxu0 %v10703_v19  ;;  %v10720_v36 = vld [vmem:[%s12456_s30 + $0xb0] sm:$0xff]   ;;  %v10724_v42 = vld [vmem:[%s12456_s30 + $0xb8] sm:$0xff]   ;;  %v10734_v47 = vld [vmem:[%s12456_s30 + $0x180] sm:$0xff]  }
 0x1b4   : > { %9990 = vmatpush3.bf16.msra.mxu1 %v10704_v20  ;;  %9951 = vmatprep.subr.bf16.mxu0 %v10705_v21  ;;  %v10735_v48 = vld [vmem:[%s12456_s30 + $0x148] sm:$0xff]   ;;  %v10745_v55 = vld [vmem:[%s12456_s30 + $0x150] sm:$0xff]   ;;  %v10749_v59 = vld [vmem:[%s12456_s30 + $0x158] sm:$0xff]  }
 0x1b5   : > { %9991 = vmatprep.subr.bf16.mxu1 %v10706_v22  ;;  %v10736_v49 = vld [vmem:[%s12456_s30 + $0x1c8] sm:$0xff]   ;;  %v10746_v56 = vld [vmem:[%s12456_s30 + $0x1d0] sm:$0xff]   ;;  %v10750_v60 = vld [vmem:[%s12456_s30 + $0x1d8] sm:$0xff]  }
 0x1b6   : > { %v10737_v50 = vld [vmem:[%s12456_s30 + $0x108] sm:$0xff]   ;;  %v10747_v57 = vld [vmem:[%s12456_s30 + $0x110] sm:$0xff]   ;;  %v10751_v61 = vld [vmem:[%s12456_s30 + $0x118] sm:$0xff]  }
 0x1b7   : > { %9952 = vmatpush3.bf16.msra.mxu0 %v10707_v23  ;;  %v10738_v51 = vld [vmem:[%s12456_s30 + $0x188] sm:$0xff]   ;;  %v10748_v58 = vld [vmem:[%s12456_s30 + $0x190] sm:$0xff]   ;;  %v10752_v62 = vld [vmem:[%s12456_s30 + $0x198] sm:$0xff]  }
 0x1b8   : > { %9992 = vmatpush3.bf16.msra.mxu1 %v10708_v24  ;;  %9953 = vmatprep.subr.bf16.mxu0 %v10709_v25  ;;  %v10758_v2 = vld [vmem:[%s13253_s0 + $0x248] ss:$144 sps:$4 sm:$0xff]   ;;  %v10759_v3 = vld [vmem:[%s12456_s30 + $0x160] sm:$0xff]   ;;  %v10771_v17 = vld [vmem:[%s12456_s30 + $0x170] sm:$0xff]  }
 0x1b9   : > { %9993 = vmatprep.subr.bf16.mxu1 %v10710_v26  ;;  %v10760_v4 = vld [vmem:[%s12456_s30 + $0x1e0] sm:$0xff]   ;;  %v10763_v7 = vld [vmem:[%s12456_s30 + $0x168] sm:$0xff]   ;;  %v10772_v18 = vld [vmem:[%s12456_s30 + $0x1f0] sm:$0xff]  }
 0x1ba   : > { %v10761_v5 = vld [vmem:[%s12456_s30 + $0x120] sm:$0xff]   ;;  %v10764_v8 = vld [vmem:[%s12456_s30 + $0x1e8] sm:$0xff]   ;;  %v10773_v19 = vld [vmem:[%s12456_s30 + $0x130] sm:$0xff]  }
 0x1bb   : > { %9954 = vmatpush3.bf16.msra.mxu0 %v10711_v27  ;;  %v10762_v6 = vld [vmem:[%s12456_s30 + $0x1a0] sm:$0xff]   ;;  %v10765_v9 = vld [vmem:[%s12456_s30 + $0x128] sm:$0xff]   ;;  %v10774_v20 = vld [vmem:[%s12456_s30 + $0x1b0] sm:$0xff]  }
 0x1bc   : > { %9994 = vmatpush3.bf16.msra.mxu1 %v10712_v28  ;;  %9955 = vmatprep.subr.bf16.mxu0 %v10713_v29  ;;  %v10766_v10 = vld [vmem:[%s12456_s30 + $0x1a8] sm:$0xff]   ;;  %v5109_v11 = vld [vmem:[%s13253_s0 + $0x360] sm:$0xff]  ;;  %v10775_v21 = vld [vmem:[%s12456_s30 + $0x178] sm:$0xff]  }
 0x1bd   : > { %9995 = vmatprep.subr.bf16.mxu1 %v10714_v30  ;;  %v5110_v12 = vld [vmem:[%s13253_s0 + $0x368] sm:$0xff]  ;;  %v9619_v13 = vcombine.high %v5109_v11, %v5109_v11  ;;  %v9618_v15 = vcombine.low %v5109_v11, %v5109_v11  ;;  %v10776_v22 = vld [vmem:[%s12456_s30 + $0x1f8] sm:$0xff]   ;;  %v10779_v25 = vld [vmem:[%s13253_s0 + $0x10] ss:$144 sps:$4 sm:$0xff]  }
 0x1be   : > { %v9621_v14 = vcombine.high %v5110_v12, %v5110_v12  ;;  %v9620_v16 = vcombine.low %v5110_v12, %v5110_v12  ;;  %v10777_v23 = vld [vmem:[%s12456_s30 + $0x138] sm:$0xff]   ;;  %v10781_v26 = vld [vmem:[%s13253_s0 + $0x14] ss:$144 sps:$4 sm:$0xff]   ;;  %v10833_v11 = vld [vmem:[%s13253_s0 + $0x20] ss:$144 sps:$4 sm:$0xff]  }
 0x1bf   : > { %9956 = vmatpush3.bf16.msra.mxu0 %v10715_v31  ;;  %v10778_v24 = vld [vmem:[%s12456_s30 + $0x1b8] sm:$0xff]   ;;  %v10785_v29 = vld [vmem:[%s12456_s30 + $0x240] sm:$0xff]  }
 0x1c0   : > { %9996 = vmatpush3.bf16.msra.mxu1 %v10716_v32  ;;  %9957 = vmatprep.subr.bf16.mxu0 %v10717_v33  ;;  %v10782_v27 = vld [vmem:[%s13253_s0 + $0x18] ss:$144 sps:$4 sm:$0xff]   ;;  %v10784_v28 = vld [vmem:[%s13253_s0 + $0x1c] ss:$144 sps:$4 sm:$0xff]   ;;  %v10786_v30 = vld [vmem:[%s12456_s30 + $0x2c0] sm:$0xff]  }
 0x1c1   : > { %9997 = vmatprep.subr.bf16.mxu1 %v10718_v34  ;;  %v10787_v31 = vld [vmem:[%s12456_s30 + $0x200] sm:$0xff]   ;;  %v10789_v33 = vld [vmem:[%s12456_s30 + $0x248] sm:$0xff]  }
 0x1c2   : > { %v10788_v32 = vld [vmem:[%s12456_s30 + $0x280] sm:$0xff]   ;;  %v10790_v34 = vld [vmem:[%s12456_s30 + $0x2c8] sm:$0xff]  }
 0x1c3   : > { %9958 = vmatpush3.bf16.msra.mxu0 %v10719_v35  ;;  %v10791_v35 = vld [vmem:[%s12456_s30 + $0x208] sm:$0xff]   ;;  %v10835_v12 = vld [vmem:[%s13253_s0 + $0x24] ss:$144 sps:$4 sm:$0xff]  }
 0x1c4   : > { %9998 = vmatpush3.bf16.msra.mxu1 %v10720_v36  ;;  %9959 = vmatprep.subr.bf16.mxu0 %v10721_v37  ;;  %v10792_v36 = vld [vmem:[%s12456_s30 + $0x288] sm:$0xff]   ;;  %v10793_v37 = vld [vmem:[%s13253_s0 + $0x134] ss:$144 sps:$4 sm:$0xff]  }
 0x1c5   : > { %9999 = vmatprep.subr.bf16.mxu1 %v10722_v38  ;;  %v10795_v38 = vld [vmem:[%s13253_s0 + $0x13c] ss:$144 sps:$4 sm:$0xff]  }
 0x1c7   : > { %9960 = vmatpush3.bf16.msra.mxu0 %v10723_v40  ;;  %v10798_v40 = vld [vmem:[%s13253_s0 + $0x138] ss:$144 sps:$4 sm:$0xff]  }
 0x1c8   : > { %10000 = vmatpush3.bf16.msra.mxu1 %v10724_v42  ;;  %10025 = vmatprep.subr.bf16.mxu0 %v10731_v44  ;;  %v10800_v42 = vld [vmem:[%s12456_s30 + $0x2d0] sm:$0xff]  }
 0x1c9   : > { %10065 = vmatprep.subr.bf16.mxu1 %v10732_v45  ;;  %v10802_v44 = vld [vmem:[%s12456_s30 + $0x290] sm:$0xff]   ;;  %v10803_v45 = vld [vmem:[%s12456_s30 + $0x258] sm:$0xff]  }
 0x1ca   : > { %8130 = vmatmul.mubr.bf16.vlgmr.msra.gmra.mrb[0].mxu0 %v10725_v39  ;;  %v10797_v39 = vld [vmem:[%s13253_s0 + $0x130] ss:$144 sps:$4 sm:$0xff]  }
 0x1cb   : > { %8194 = vmatmul.mubr.bf16.vlgmr.msra.gmra.mrb[0].mxu1 %v10728_v41  ;;  %10026 = vmatpush3.bf16.msra.mxu0 %v10733_v46  ;;  %v10799_v41 = vld [vmem:[%s12456_s30 + $0x250] sm:$0xff]   ;;  %v10804_v46 = vld [vmem:[%s12456_s30 + $0x2d8] sm:$0xff]  }
 0x1cc   : > { %10066 = vmatpush3.bf16.msra.mxu1 %v10734_v47  ;;  %8137 = vmatprep.mubr.bf16.mxu0 %v10739_v43  ;;  %v10801_v43 = vld [vmem:[%s12456_s30 + $0x210] sm:$0xff]   ;;  %v10805_v47 = vld [vmem:[%s12456_s30 + $0x218] sm:$0xff]  }
 0x1cd   : > { %10027 = vmatprep.subr.bf16.mxu0 %v10735_v48  ;;  %10067 = vmatprep.subr.bf16.mxu1 %v10736_v49  ;;  %v10806_v48 = vld [vmem:[%s12456_s30 + $0x298] sm:$0xff]   ;;  %v10807_v49 = vld [vmem:[%s13253_s0 + $0x254] ss:$144 sps:$4 sm:$0xff]  }
 0x1ce   : > { %8201 = vmatprep.mubr.bf16.mxu1 %v10741_v52  ;;  %v10812_v52 = vld [vmem:[%s13253_s0 + $0x258] ss:$144 sps:$4 sm:$0xff]  }
 0x1cf   : > { %10028 = vmatpush3.bf16.msra.mxu0 %v10737_v50  ;;  %v10809_v50 = vld [vmem:[%s13253_s0 + $0x25c] ss:$144 sps:$4 sm:$0xff]  }
 0x1d0   : > { %10068 = vmatpush3.bf16.msra.mxu1 %v10738_v51  ;;  %10029 = vmatprep.subr.bf16.mxu0 %v10745_v55  ;;  %v10811_v51 = vld [vmem:[%s13253_s0 + $0x250] ss:$144 sps:$4 sm:$0xff]  }
 0x1d1   : > { %10069 = vmatprep.subr.bf16.mxu1 %v10746_v56  ;;  %v10815_v55 = vld [vmem:[%s12456_s30 + $0x220] sm:$0xff]  }
 0x1d2   : > { %8138 = vmatmul.mubr.bf16.gmra.mrb[4].mxu0 %v10743_v53  ;;  %v10813_v53 = vld [vmem:[%s12456_s30 + $0x260] sm:$0xff]  }
 0x1d3   : > { %8202 = vmatmul.mubr.bf16.gmra.mrb[4].mxu1 %v10744_v54  ;;  %10030 = vmatpush3.bf16.msra.mxu0 %v10747_v57  ;;  %v10814_v54 = vld [vmem:[%s12456_s30 + $0x2e0] sm:$0xff]   ;;  %v10817_v57 = vld [vmem:[%s12456_s30 + $0x268] sm:$0xff]  }
 0x1d4   : > { %10070 = vmatpush3.bf16.msra.mxu1 %v10748_v58  ;;  %10031 = vmatprep.subr.bf16.mxu0 %v10749_v59  ;;  %v10816_v56 = vld [vmem:[%s12456_s30 + $0x2a0] sm:$0xff]   ;;  %v10818_v58 = vld [vmem:[%s12456_s30 + $0x2e8] sm:$0xff]  }
 0x1d5   : > { %10071 = vmatprep.subr.bf16.mxu1 %v10750_v60  ;;  %8145 = vmatprep.mubr.bf16.mxu0 %v10753_v63  ;;  %v10819_v59 = vld [vmem:[%s12456_s30 + $0x228] sm:$0xff]   ;;  %v5112_v63 = vld [vmem:[%s13253_s0 + $0x378] sm:$0xff] }
 0x1d6   : > { %8209 = vmatprep.mubr.bf16.mxu1 %v10755_v0  ;;  %v10820_v60 = vld [vmem:[%s12456_s30 + $0x2a8] sm:$0xff]  }
 0x1d7   : > { %10032 = vmatpush3.bf16.msra.mxu0 %v10751_v61  ;;  %v5111_v61 = vld [vmem:[%s13253_s0 + $0x370] sm:$0xff] }
 0x1d8   : > { %10072 = vmatpush3.bf16.msra.mxu1 %v10752_v62  ;;  %10033 = vmatprep.subr.bf16.mxu0 %v10759_v3  ;;  %v9623_v62 = vcombine.high %v5111_v61, %v5111_v61  ;;  %v9622_v0 = vcombine.low %v5111_v61, %v5111_v61  ;;  %v10825_v3 = vld [vmem:[%s12456_s30 + $0x270] sm:$0xff]  }
 0x1d9   : > { %10073 = vmatprep.subr.bf16.mxu1 %v10760_v4  ;;  %v10826_v4 = vld [vmem:[%s12456_s30 + $0x2f0] sm:$0xff]  }
 0x1da   : > { %8146 = vmatmul.mubr.bf16.gmra.mrb[8].mxu0 %v10757_v1  ;;  %v9625_v1 = vcombine.high %v5112_v63, %v5112_v63  ;;  %v10887_v61 = vld [vmem:[%s13253_s0 + $0x30] ss:$144 sps:$4 sm:$0xff]  }
 0x1db   : > { %8210 = vmatmul.mubr.bf16.gmra.mrb[8].mxu1 %v10758_v2  ;;  %10034 = vmatpush3.bf16.msra.mxu0 %v10761_v5  ;;  %v9624_v2 = vcombine.low %v5112_v63, %v5112_v63  ;;  %v10827_v5 = vld [vmem:[%s12456_s30 + $0x230] sm:$0xff]   ;;  %v10890_v63 = vld [vmem:[%s13253_s0 + $0x38] ss:$144 sps:$4 sm:$0xff]  }
 0x1dc   : > { %10074 = vmatpush3.bf16.msra.mxu1 %v10762_v6  ;;  %10035 = vmatprep.subr.bf16.mxu0 %v10763_v7  ;;  %v10828_v6 = vld [vmem:[%s12456_s30 + $0x2b0] sm:$0xff]   ;;  %v10829_v7 = vld [vmem:[%s12456_s30 + $0x278] sm:$0xff]  }
 0x1dd   : > { %10075 = vmatprep.subr.bf16.mxu1 %v10764_v8  ;;  %8153 = vmatprep.mubr.bf16.mxu0 %v9619_v13  ;;  %v10830_v8 = vld [vmem:[%s12456_s30 + $0x2f8] sm:$0xff]  }
 0x1de   : > { %8217 = vmatprep.mubr.bf16.mxu1 %v9621_v14  ;;  %v10836_v13 = vld [vmem:[%s13253_s0 + $0x28] ss:$144 sps:$4 sm:$0xff]   ;;  %v10838_v14 = vld [vmem:[%s13253_s0 + $0x2c] ss:$144 sps:$4 sm:$0xff]  }
 0x1df   : > { %10036 = vmatpush3.bf16.msra.mxu0 %v10765_v9  ;;  %v10831_v9 = vld [vmem:[%s12456_s30 + $0x238] sm:$0xff]  }
 0x1e0   : > { %10076 = vmatpush3.bf16.msra.mxu1 %v10766_v10  ;;  %10037 = vmatprep.subr.bf16.mxu0 %v10771_v17  ;;  %v10832_v10 = vld [vmem:[%s12456_s30 + $0x2b8] sm:$0xff]   ;;  %v10841_v17 = vld [vmem:[%s12456_s30 + $0x300] sm:$0xff]  }
 0x1e1   : > { %10077 = vmatprep.subr.bf16.mxu1 %v10772_v18  ;;  %v10842_v18 = vld [vmem:[%s12456_s30 + $0x380] sm:$0xff]  }
 0x1e2   : > { %8154 = vmatmul.mubr.bf16.gmra.mrb[12].mxu0 %v9618_v15  ;;  %v10839_v15 = vld [vmem:[%s12456_s30 + $0x340] sm:$0xff]  }
 0x1e3   : > { %8218 = vmatmul.mubr.bf16.gmra.mrb[12].mxu1 %v9620_v16  ;;  %10038 = vmatpush3.bf16.msra.mxu0 %v10773_v19  ;;  %v10840_v16 = vld [vmem:[%s12456_s30 + $0x3c0] sm:$0xff]   ;;  %v10843_v19 = vld [vmem:[%s12456_s30 + $0x348] sm:$0xff]  }
 0x1e4   : > { %10078 = vmatpush3.bf16.msra.mxu1 %v10774_v20  ;;  %10039 = vmatprep.subr.bf16.mxu0 %v10775_v21  ;;  %v10844_v20 = vld [vmem:[%s12456_s30 + $0x3c8] sm:$0xff]  }
 0x1e5   : > { %10079 = vmatprep.subr.bf16.mxu1 %v10776_v22  ;;  %8257 = vmatprep.mubr.bf16.mxu0 %v10781_v26  ;;  %v10845_v21 = vld [vmem:[%s12456_s30 + $0x308] sm:$0xff]  }
 0x1e6   : > { %8321 = vmatprep.mubr.bf16.mxu1 %v10784_v28  ;;  %v10846_v22 = vld [vmem:[%s12456_s30 + $0x388] sm:$0xff]   ;;  %v10854_v28 = vld [vmem:[%s12456_s30 + $0x3d0] sm:$0xff]  }
 0x1e7   : > { %10040 = vmatpush3.bf16.msra.mxu0 %v10777_v23  ;;  %v10847_v23 = vld [vmem:[%s13253_s0 + $0x144] ss:$144 sps:$4 sm:$0xff]   ;;  %v10852_v26 = vld [vmem:[%s13253_s0 + $0x148] ss:$144 sps:$4 sm:$0xff]  }
 0x1e8   : > { %10080 = vmatpush3.bf16.msra.mxu1 %v10778_v24  ;;  %10105 = vmatprep.subr.bf16.mxu0 %v10785_v29  ;;  %v10849_v24 = vld [vmem:[%s13253_s0 + $0x14c] ss:$144 sps:$4 sm:$0xff]   ;;  %v10855_v29 = vld [vmem:[%s12456_s30 + $0x310] sm:$0xff]  }
 0x1e9   : > { %10145 = vmatprep.subr.bf16.mxu1 %v10786_v30  ;;  %v10856_v30 = vld [vmem:[%s12456_s30 + $0x390] sm:$0xff]  }
 0x1ea   : > { %8258 = vmatmul.mubr.bf16.vlgmr.msra.gmra.mrb[16].mxu0 %v10779_v25  ;;  %v10851_v25 = vld [vmem:[%s13253_s0 + $0x140] ss:$144 sps:$4 sm:$0xff]  }
 0x1eb   : > { %8322 = vmatmul.mubr.bf16.vlgmr.msra.gmra.mrb[16].mxu1 %v10782_v27  ;;  %10106 = vmatpush3.bf16.msra.mxu0 %v10787_v31  ;;  %v10853_v27 = vld [vmem:[%s12456_s30 + $0x350] sm:$0xff]   ;;  %v10857_v31 = vld [vmem:[%s12456_s30 + $0x358] sm:$0xff]  }
 0x1ec   : > { %10146 = vmatpush3.bf16.msra.mxu1 %v10788_v32  ;;  %10107 = vmatprep.subr.bf16.mxu0 %v10789_v33  ;;  %v10858_v32 = vld [vmem:[%s12456_s30 + $0x3d8] sm:$0xff]  }
 0x1ed   : > { %10147 = vmatprep.subr.bf16.mxu1 %v10790_v34  ;;  %8265 = vmatprep.mubr.bf16.mxu0 %v10793_v37  ;;  %v10859_v33 = vld [vmem:[%s12456_s30 + $0x318] sm:$0xff]   ;;  %v10865_v37 = vld [vmem:[%s13253_s0 + $0x260] ss:$144 sps:$4 sm:$0xff]  }
 0x1ee   : > { %8329 = vmatprep.mubr.bf16.mxu1 %v10795_v38  ;;  %v10860_v34 = vld [vmem:[%s12456_s30 + $0x398] sm:$0xff]  }
 0x1ef   : > { %10108 = vmatpush3.bf16.msra.mxu0 %v10791_v35  ;;  %v10861_v35 = vld [vmem:[%s13253_s0 + $0x264] ss:$144 sps:$4 sm:$0xff]   ;;  %v10866_v38 = vld [vmem:[%s13253_s0 + $0x268] ss:$144 sps:$4 sm:$0xff]  }
 0x1f0   : > { %10148 = vmatpush3.bf16.msra.mxu1 %v10792_v36  ;;  %10109 = vmatprep.subr.bf16.mxu0 %v10799_v41  ;;  %v10863_v36 = vld [vmem:[%s13253_s0 + $0x26c] ss:$144 sps:$4 sm:$0xff]   ;;  %v10869_v41 = vld [vmem:[%s12456_s30 + $0x320] sm:$0xff]  }
 0x1f1   : > { %10149 = vmatprep.subr.bf16.mxu1 %v10800_v42  ;;  %v10870_v42 = vld [vmem:[%s12456_s30 + $0x3a0] sm:$0xff]  }
 0x1f2   : > { %8266 = vmatmul.mubr.bf16.gmra.mrb[20].mxu0 %v10797_v39  ;;  %v10867_v39 = vld [vmem:[%s12456_s30 + $0x360] sm:$0xff]  }
 0x1f3   : > { %8330 = vmatmul.mubr.bf16.gmra.mrb[20].mxu1 %v10798_v40  ;;  %10110 = vmatpush3.bf16.msra.mxu0 %v10801_v43  ;;  %v10868_v40 = vld [vmem:[%s12456_s30 + $0x3e0] sm:$0xff]   ;;  %v10871_v43 = vld [vmem:[%s12456_s30 + $0x368] sm:$0xff]  }
 0x1f4   : > { %10150 = vmatpush3.bf16.msra.mxu1 %v10802_v44  ;;  %10111 = vmatprep.subr.bf16.mxu0 %v10803_v45  ;;  %v10872_v44 = vld [vmem:[%s12456_s30 + $0x3e8] sm:$0xff]  }
 0x1f5   : > { %10151 = vmatprep.subr.bf16.mxu1 %v10804_v46  ;;  %8273 = vmatprep.mubr.bf16.mxu0 %v10807_v49  ;;  %v10873_v45 = vld [vmem:[%s12456_s30 + $0x328] sm:$0xff]  }
 0x1f6   : > { %8337 = vmatprep.mubr.bf16.mxu1 %v10809_v50  ;;  %v10874_v46 = vld [vmem:[%s12456_s30 + $0x3a8] sm:$0xff]  }
 0x1f7   : > { %10112 = vmatpush3.bf16.msra.mxu0 %v10805_v47  ;;  %v5113_v47 = vld [vmem:[%s13253_s0 + $0x380] sm:$0xff] }
 0x1f8   : > { %10152 = vmatpush3.bf16.msra.mxu1 %v10806_v48  ;;  %10113 = vmatprep.subr.bf16.mxu0 %v10813_v53  ;;  %v5114_v48 = vld [vmem:[%s13253_s0 + $0x388] sm:$0xff]  ;;  %v9627_v49 = vcombine.high %v5113_v47, %v5113_v47  ;;  %v10879_v53 = vld [vmem:[%s12456_s30 + $0x370] sm:$0xff]  }
 0x1f9   : > { %10153 = vmatprep.subr.bf16.mxu1 %v10814_v54  ;;  %v9629_v50 = vcombine.high %v5114_v48, %v5114_v48  ;;  %v10880_v54 = vld [vmem:[%s12456_s30 + $0x3f0] sm:$0xff]  }
 0x1fa   : > { %8274 = vmatmul.mubr.bf16.gmra.mrb[24].mxu0 %v10811_v51  ;;  %v9626_v51 = vcombine.low %v5113_v47, %v5113_v47  ;;  %v10941_v47 = vld [vmem:[%s13253_s0 + $0x40] ss:$144 sps:$4 sm:$0xff]  }
 0x1fb   : > { %8338 = vmatmul.mubr.bf16.gmra.mrb[24].mxu1 %v10812_v52  ;;  %10114 = vmatpush3.bf16.msra.mxu0 %v10815_v55  ;;  %v9628_v52 = vcombine.low %v5114_v48, %v5114_v48  ;;  %v10881_v55 = vld [vmem:[%s12456_s30 + $0x330] sm:$0xff]  }
 0x1fc   : > { %10154 = vmatpush3.bf16.msra.mxu1 %v10816_v56  ;;  %10115 = vmatprep.subr.bf16.mxu0 %v10817_v57  ;;  %v10882_v56 = vld [vmem:[%s12456_s30 + $0x3b0] sm:$0xff]   ;;  %v10883_v57 = vld [vmem:[%s12456_s30 + $0x378] sm:$0xff]  }
 0x1fd   : > { %10155 = vmatprep.subr.bf16.mxu1 %v10818_v58  ;;  %8281 = vmatprep.mubr.bf16.mxu0 %v9623_v62  ;;  %v10884_v58 = vld [vmem:[%s12456_s30 + $0x3f8] sm:$0xff]   ;;  %v10889_v62 = vld [vmem:[%s13253_s0 + $0x34] ss:$144 sps:$4 sm:$0xff]  }
 0x1fe   : > { %8345 = vmatprep.mubr.bf16.mxu1 %v9625_v1  ;;  %v10893_v1 = vld [vmem:[%s12456_s30 + $0x440] sm:$0xff]  }
 0x1ff   : > { %10116 = vmatpush3.bf16.msra.mxu0 %v10819_v59  ;;  %v10885_v59 = vld [vmem:[%s12456_s30 + $0x338] sm:$0xff]   ;;  %v10943_v48 = vld [vmem:[%s13253_s0 + $0x44] ss:$144 sps:$4 sm:$0xff]  }
 0x200   : > { %10156 = vmatpush3.bf16.msra.mxu1 %v10820_v60  ;;  %10117 = vmatprep.subr.bf16.mxu0 %v10825_v3  ;;  %v10886_v60 = vld [vmem:[%s12456_s30 + $0x3b8] sm:$0xff]   ;;  %v10895_v3 = vld [vmem:[%s12456_s30 + $0x400] sm:$0xff]  }
 0x201   : > { %10157 = vmatprep.subr.bf16.mxu1 %v10826_v4  ;;  %v10896_v4 = vld [vmem:[%s12456_s30 + $0x480] sm:$0xff]  }
 0x202   : > { %8282 = vmatmul.mubr.bf16.gmra.mrb[28].mxu0 %v9622_v0  ;;  %v10892_v0 = vld [vmem:[%s13253_s0 + $0x3c] ss:$144 sps:$4 sm:$0xff]  }
 0x203   : > { %8346 = vmatmul.mubr.bf16.gmra.mrb[28].mxu1 %v9624_v2  ;;  %10118 = vmatpush3.bf16.msra.mxu0 %v10827_v5  ;;  %v10894_v2 = vld [vmem:[%s12456_s30 + $0x4c0] sm:$0xff]   ;;  %v10897_v5 = vld [vmem:[%s12456_s30 + $0x448] sm:$0xff]  }
 0x204   : > { %10158 = vmatpush3.bf16.msra.mxu1 %v10828_v6  ;;  %10119 = vmatprep.subr.bf16.mxu0 %v10829_v7  ;;  %v10898_v6 = vld [vmem:[%s12456_s30 + $0x4c8] sm:$0xff]  }
 0x205   : > { %10159 = vmatprep.subr.bf16.mxu1 %v10830_v8  ;;  %8385 = vmatprep.mubr.bf16.mxu0 %v10835_v12  ;;  %v10899_v7 = vld [vmem:[%s12456_s30 + $0x408] sm:$0xff]  }
 0x206   : > { %8449 = vmatprep.mubr.bf16.mxu1 %v10838_v14  ;;  %v10900_v8 = vld [vmem:[%s12456_s30 + $0x488] sm:$0xff]   ;;  %v10908_v14 = vld [vmem:[%s12456_s30 + $0x4d0] sm:$0xff]  }
 0x207   : > { %10120 = vmatpush3.bf16.msra.mxu0 %v10831_v9  ;;  %v10901_v9 = vld [vmem:[%s13253_s0 + $0x154] ss:$144 sps:$4 sm:$0xff]   ;;  %v10906_v12 = vld [vmem:[%s13253_s0 + $0x158] ss:$144 sps:$4 sm:$0xff]  }
 0x208   : > { %10160 = vmatpush3.bf16.msra.mxu1 %v10832_v10  ;;  %10185 = vmatprep.subr.bf16.mxu0 %v10839_v15  ;;  %v10903_v10 = vld [vmem:[%s13253_s0 + $0x15c] ss:$144 sps:$4 sm:$0xff]   ;;  %v10909_v15 = vld [vmem:[%s12456_s30 + $0x410] sm:$0xff]  }
 0x209   : > { %10225 = vmatprep.subr.bf16.mxu1 %v10840_v16  ;;  %v10910_v16 = vld [vmem:[%s12456_s30 + $0x490] sm:$0xff]  }
 0x20a   : > { %8386 = vmatmul.mubr.bf16.vlgmr.msra.gmra.mrb[32].mxu0 %v10833_v11  ;;  %v10905_v11 = vld [vmem:[%s13253_s0 + $0x150] ss:$144 sps:$4 sm:$0xff]  }
 0x20b   : > { %8450 = vmatmul.mubr.bf16.vlgmr.msra.gmra.mrb[32].mxu1 %v10836_v13  ;;  %10186 = vmatpush3.bf16.msra.mxu0 %v10841_v17  ;;  %v10907_v13 = vld [vmem:[%s12456_s30 + $0x450] sm:$0xff]   ;;  %v10911_v17 = vld [vmem:[%s12456_s30 + $0x458] sm:$0xff]  }
 0x20c   : > { %10226 = vmatpush3.bf16.msra.mxu1 %v10842_v18  ;;  %10187 = vmatprep.subr.bf16.mxu0 %v10843_v19  ;;  %v10912_v18 = vld [vmem:[%s12456_s30 + $0x4d8] sm:$0xff]  }
 0x20d   : > { %10227 = vmatprep.subr.bf16.mxu1 %v10844_v20  ;;  %8393 = vmatprep.mubr.bf16.mxu0 %v10847_v23  ;;  %v10913_v19 = vld [vmem:[%s12456_s30 + $0x418] sm:$0xff]   ;;  %v10919_v23 = vld [vmem:[%s13253_s0 + $0x270] ss:$144 sps:$4 sm:$0xff]  }
 0x20e   : > { %8457 = vmatprep.mubr.bf16.mxu1 %v10849_v24  ;;  %v10914_v20 = vld [vmem:[%s12456_s30 + $0x498] sm:$0xff]  }
 0x20f   : > { %10188 = vmatpush3.bf16.msra.mxu0 %v10845_v21  ;;  %v10915_v21 = vld [vmem:[%s13253_s0 + $0x274] ss:$144 sps:$4 sm:$0xff]   ;;  %v10920_v24 = vld [vmem:[%s13253_s0 + $0x278] ss:$144 sps:$4 sm:$0xff]  }
 0x210   : > { %10228 = vmatpush3.bf16.msra.mxu1 %v10846_v22  ;;  %10189 = vmatprep.subr.bf16.mxu0 %v10853_v27  ;;  %v10917_v22 = vld [vmem:[%s13253_s0 + $0x27c] ss:$144 sps:$4 sm:$0xff]   ;;  %v10923_v27 = vld [vmem:[%s12456_s30 + $0x420] sm:$0xff]  }
 0x211   : > { %10229 = vmatprep.subr.bf16.mxu1 %v10854_v28  ;;  %v10924_v28 = vld [vmem:[%s12456_s30 + $0x4a0] sm:$0xff]  }
 0x212   : > { %8394 = vmatmul.mubr.bf16.gmra.mrb[36].mxu0 %v10851_v25  ;;  %v10921_v25 = vld [vmem:[%s12456_s30 + $0x460] sm:$0xff]  }
 0x213   : > { %8458 = vmatmul.mubr.bf16.gmra.mrb[36].mxu1 %v10852_v26  ;;  %10190 = vmatpush3.bf16.msra.mxu0 %v10855_v29  ;;  %v10922_v26 = vld [vmem:[%s12456_s30 + $0x4e0] sm:$0xff]   ;;  %v10925_v29 = vld [vmem:[%s12456_s30 + $0x468] sm:$0xff]  }
 0x214   : > { %10230 = vmatpush3.bf16.msra.mxu1 %v10856_v30  ;;  %10191 = vmatprep.subr.bf16.mxu0 %v10857_v31  ;;  %v10926_v30 = vld [vmem:[%s12456_s30 + $0x4e8] sm:$0xff]  }
 0x215   : > { %10231 = vmatprep.subr.bf16.mxu1 %v10858_v32  ;;  %8401 = vmatprep.mubr.bf16.mxu0 %v10861_v35  ;;  %v10927_v31 = vld [vmem:[%s12456_s30 + $0x428] sm:$0xff]  }
 0x216   : > { %8465 = vmatprep.mubr.bf16.mxu1 %v10863_v36  ;;  %v10928_v32 = vld [vmem:[%s12456_s30 + $0x4a8] sm:$0xff]  }
 0x217   : > { %10192 = vmatpush3.bf16.msra.mxu0 %v10859_v33  ;;  %v5115_v33 = vld [vmem:[%s13253_s0 + $0x390] sm:$0xff] }
 0x218   : > { %10232 = vmatpush3.bf16.msra.mxu1 %v10860_v34  ;;  %10193 = vmatprep.subr.bf16.mxu0 %v10867_v39  ;;  %v5116_v34 = vld [vmem:[%s13253_s0 + $0x398] sm:$0xff]  ;;  %v9631_v35 = vcombine.high %v5115_v33, %v5115_v33  ;;  %v10933_v39 = vld [vmem:[%s12456_s30 + $0x470] sm:$0xff]  }
 0x219   : > { %10233 = vmatprep.subr.bf16.mxu1 %v10868_v40  ;;  %v9633_v36 = vcombine.high %v5116_v34, %v5116_v34  ;;  %v10934_v40 = vld [vmem:[%s12456_s30 + $0x4f0] sm:$0xff]  }
 0x21a   : > { %8402 = vmatmul.mubr.bf16.gmra.mrb[40].mxu0 %v10865_v37  ;;  %v9630_v37 = vcombine.low %v5115_v33, %v5115_v33  ;;  %v10995_v33 = vld [vmem:[%s13253_s0 + $0x50] ss:$144 sps:$4 sm:$0xff]  }
 0x21b   : > { %8466 = vmatmul.mubr.bf16.gmra.mrb[40].mxu1 %v10866_v38  ;;  %10194 = vmatpush3.bf16.msra.mxu0 %v10869_v41  ;;  %v9632_v38 = vcombine.low %v5116_v34, %v5116_v34  ;;  %v10935_v41 = vld [vmem:[%s12456_s30 + $0x430] sm:$0xff]  }
 0x21c   : > { %10234 = vmatpush3.bf16.msra.mxu1 %v10870_v42  ;;  %10195 = vmatprep.subr.bf16.mxu0 %v10871_v43  ;;  %v10936_v42 = vld [vmem:[%s12456_s30 + $0x4b0] sm:$0xff]   ;;  %v10937_v43 = vld [vmem:[%s12456_s30 + $0x478] sm:$0xff]  }
 0x21d   : > { %10235 = vmatprep.subr.bf16.mxu1 %v10872_v44  ;;  %8409 = vmatprep.mubr.bf16.mxu0 %v9627_v49  ;;  %v10938_v44 = vld [vmem:[%s12456_s30 + $0x4f8] sm:$0xff]   ;;  %v10997_v34 = vld [vmem:[%s13253_s0 + $0x54] ss:$144 sps:$4 sm:$0xff]  }
 0x21e   : > { %8473 = vmatprep.mubr.bf16.mxu1 %v9629_v50  ;;  %v10944_v49 = vld [vmem:[%s13253_s0 + $0x48] ss:$144 sps:$4 sm:$0xff]   ;;  %v10946_v50 = vld [vmem:[%s13253_s0 + $0x4c] ss:$144 sps:$4 sm:$0xff]  }
 0x21f   : > { %10196 = vmatpush3.bf16.msra.mxu0 %v10873_v45  ;;  %v10939_v45 = vld [vmem:[%s12456_s30 + $0x438] sm:$0xff]  }
 0x220   : > { %10236 = vmatpush3.bf16.msra.mxu1 %v10874_v46  ;;  %10197 = vmatprep.subr.bf16.mxu0 %v10879_v53  ;;  %v10940_v46 = vld [vmem:[%s12456_s30 + $0x4b8] sm:$0xff]   ;;  %v10949_v53 = vld [vmem:[%s12456_s30 + $0x500] sm:$0xff]  }
 0x221   : > { %10237 = vmatprep.subr.bf16.mxu1 %v10880_v54  ;;  %v10950_v54 = vld [vmem:[%s12456_s30 + $0x580] sm:$0xff]  }
 0x222   : > { %8410 = vmatmul.mubr.bf16.gmra.mrb[44].mxu0 %v9626_v51  ;;  %v10947_v51 = vld [vmem:[%s12456_s30 + $0x540] sm:$0xff]  }
 0x223   : > { %8474 = vmatmul.mubr.bf16.gmra.mrb[44].mxu1 %v9628_v52  ;;  %10198 = vmatpush3.bf16.msra.mxu0 %v10881_v55  ;;  %v10948_v52 = vld [vmem:[%s12456_s30 + $0x5c0] sm:$0xff]   ;;  %v10951_v55 = vld [vmem:[%s12456_s30 + $0x548] sm:$0xff]  }
 0x224   : > { %10238 = vmatpush3.bf16.msra.mxu1 %v10882_v56  ;;  %10199 = vmatprep.subr.bf16.mxu0 %v10883_v57  ;;  %v10952_v56 = vld [vmem:[%s12456_s30 + $0x5c8] sm:$0xff]  }
 0x225   : > { %10239 = vmatprep.subr.bf16.mxu1 %v10884_v58  ;;  %8513 = vmatprep.mubr.bf16.mxu0 %v10889_v62  ;;  %v10953_v57 = vld [vmem:[%s12456_s30 + $0x508] sm:$0xff]  }
 0x226   : > { %8577 = vmatprep.mubr.bf16.mxu1 %v10892_v0  ;;  %v10954_v58 = vld [vmem:[%s12456_s30 + $0x588] sm:$0xff]   ;;  %v10962_v0 = vld [vmem:[%s12456_s30 + $0x5d0] sm:$0xff]  }
 0x227   : > { %10200 = vmatpush3.bf16.msra.mxu0 %v10885_v59  ;;  %v10955_v59 = vld [vmem:[%s13253_s0 + $0x164] ss:$144 sps:$4 sm:$0xff]   ;;  %v10960_v62 = vld [vmem:[%s13253_s0 + $0x168] ss:$144 sps:$4 sm:$0xff]  }
 0x228   : > { %10240 = vmatpush3.bf16.msra.mxu1 %v10886_v60  ;;  %10265 = vmatprep.subr.bf16.mxu0 %v10893_v1  ;;  %v10957_v60 = vld [vmem:[%s13253_s0 + $0x16c] ss:$144 sps:$4 sm:$0xff]   ;;  %v10963_v1 = vld [vmem:[%s12456_s30 + $0x510] sm:$0xff]  }
 0x229   : > { %10305 = vmatprep.subr.bf16.mxu1 %v10894_v2  ;;  %v10964_v2 = vld [vmem:[%s12456_s30 + $0x590] sm:$0xff]  }
 0x22a   : > { %8514 = vmatmul.mubr.bf16.vlgmr.msra.gmra.mrb[48].mxu0 %v10887_v61  ;;  %v10959_v61 = vld [vmem:[%s13253_s0 + $0x160] ss:$144 sps:$4 sm:$0xff]  }
 0x22b   : > { %8578 = vmatmul.mubr.bf16.vlgmr.msra.gmra.mrb[48].mxu1 %v10890_v63  ;;  %10266 = vmatpush3.bf16.msra.mxu0 %v10895_v3  ;;  %v10961_v63 = vld [vmem:[%s12456_s30 + $0x550] sm:$0xff]   ;;  %v10965_v3 = vld [vmem:[%s12456_s30 + $0x558] sm:$0xff]  }
 0x22c   : > { %10306 = vmatpush3.bf16.msra.mxu1 %v10896_v4  ;;  %10267 = vmatprep.subr.bf16.mxu0 %v10897_v5  ;;  %v10966_v4 = vld [vmem:[%s12456_s30 + $0x5d8] sm:$0xff]  }
 0x22d   : > { %10307 = vmatprep.subr.bf16.mxu1 %v10898_v6  ;;  %8521 = vmatprep.mubr.bf16.mxu0 %v10901_v9  ;;  %v10967_v5 = vld [vmem:[%s12456_s30 + $0x518] sm:$0xff]   ;;  %v10973_v9 = vld [vmem:[%s13253_s0 + $0x280] ss:$144 sps:$4 sm:$0xff]  }
 0x22e   : > { %8585 = vmatprep.mubr.bf16.mxu1 %v10903_v10  ;;  %v10968_v6 = vld [vmem:[%s12456_s30 + $0x598] sm:$0xff]  }
 0x22f   : > { %10268 = vmatpush3.bf16.msra.mxu0 %v10899_v7  ;;  %v10969_v7 = vld [vmem:[%s13253_s0 + $0x284] ss:$144 sps:$4 sm:$0xff]   ;;  %v10974_v10 = vld [vmem:[%s13253_s0 + $0x288] ss:$144 sps:$4 sm:$0xff]  }
 0x230   : > { %10308 = vmatpush3.bf16.msra.mxu1 %v10900_v8  ;;  %10269 = vmatprep.subr.bf16.mxu0 %v10907_v13  ;;  %v10971_v8 = vld [vmem:[%s13253_s0 + $0x28c] ss:$144 sps:$4 sm:$0xff]   ;;  %v10977_v13 = vld [vmem:[%s12456_s30 + $0x520] sm:$0xff]  }
 0x231   : > { %10309 = vmatprep.subr.bf16.mxu1 %v10908_v14  ;;  %v10978_v14 = vld [vmem:[%s12456_s30 + $0x5a0] sm:$0xff]  }
 0x232   : > { %8522 = vmatmul.mubr.bf16.gmra.mrb[52].mxu0 %v10905_v11  ;;  %v10975_v11 = vld [vmem:[%s12456_s30 + $0x560] sm:$0xff]  }
 0x233   : > { %8586 = vmatmul.mubr.bf16.gmra.mrb[52].mxu1 %v10906_v12  ;;  %10270 = vmatpush3.bf16.msra.mxu0 %v10909_v15  ;;  %v10976_v12 = vld [vmem:[%s12456_s30 + $0x5e0] sm:$0xff]   ;;  %v10979_v15 = vld [vmem:[%s12456_s30 + $0x568] sm:$0xff]  }
 0x234   : > { %10310 = vmatpush3.bf16.msra.mxu1 %v10910_v16  ;;  %10271 = vmatprep.subr.bf16.mxu0 %v10911_v17  ;;  %v10980_v16 = vld [vmem:[%s12456_s30 + $0x5e8] sm:$0xff]  }
 0x235   : > { %10311 = vmatprep.subr.bf16.mxu1 %v10912_v18  ;;  %8529 = vmatprep.mubr.bf16.mxu0 %v10915_v21  ;;  %v10981_v17 = vld [vmem:[%s12456_s30 + $0x528] sm:$0xff]  }
 0x236   : > { %8593 = vmatprep.mubr.bf16.mxu1 %v10917_v22  ;;  %v10982_v18 = vld [vmem:[%s12456_s30 + $0x5a8] sm:$0xff]  }
 0x237   : > { %10272 = vmatpush3.bf16.msra.mxu0 %v10913_v19  ;;  %v5117_v19 = vld [vmem:[%s13253_s0 + $0x3a0] sm:$0xff]  ;;  %v5118_v21 = vld [vmem:[%s13253_s0 + $0x3a8] sm:$0xff] }
 0x238   : > { %10312 = vmatpush3.bf16.msra.mxu1 %v10914_v20  ;;  %10273 = vmatprep.subr.bf16.mxu0 %v10921_v25  ;;  %v9635_v20 = vcombine.high %v5117_v19, %v5117_v19  ;;  %v9634_v22 = vcombine.low %v5117_v19, %v5117_v19  ;;  %v10987_v25 = vld [vmem:[%s12456_s30 + $0x570] sm:$0xff]   ;;  %v11032_v19 = vld [vmem:[%s12456_s30 + $0x6a0] sm:$0xff]  }
 0x239   : > { %10313 = vmatprep.subr.bf16.mxu1 %v10922_v26  ;;  %v10988_v26 = vld [vmem:[%s12456_s30 + $0x5f0] sm:$0xff]  }
 0x23a   : > { %8530 = vmatmul.mubr.bf16.gmra.mrb[56].mxu0 %v10919_v23  ;;  %v9637_v23 = vcombine.high %v5118_v21, %v5118_v21 }
 0x23b   : > { %8594 = vmatmul.mubr.bf16.gmra.mrb[56].mxu1 %v10920_v24  ;;  %10274 = vmatpush3.bf16.msra.mxu0 %v10923_v27  ;;  %v9636_v24 = vcombine.low %v5118_v21, %v5118_v21  ;;  %v10989_v27 = vld [vmem:[%s12456_s30 + $0x530] sm:$0xff]  }
 0x23c   : > { %10314 = vmatpush3.bf16.msra.mxu1 %v10924_v28  ;;  %10275 = vmatprep.subr.bf16.mxu0 %v10925_v29  ;;  %v10990_v28 = vld [vmem:[%s12456_s30 + $0x5b0] sm:$0xff]   ;;  %v10991_v29 = vld [vmem:[%s12456_s30 + $0x578] sm:$0xff]  }
 0x23d   : > { %10315 = vmatprep.subr.bf16.mxu1 %v10926_v30  ;;  %8537 = vmatprep.mubr.bf16.mxu0 %v9631_v35  ;;  %v10992_v30 = vld [vmem:[%s12456_s30 + $0x5f8] sm:$0xff]  }
 0x23e   : > { %8601 = vmatprep.mubr.bf16.mxu1 %v9633_v36  ;;  %v10998_v35 = vld [vmem:[%s13253_s0 + $0x58] ss:$144 sps:$4 sm:$0xff]   ;;  %v11000_v36 = vld [vmem:[%s13253_s0 + $0x5c] ss:$144 sps:$4 sm:$0xff]  }
 0x23f   : > { %10276 = vmatpush3.bf16.msra.mxu0 %v10927_v31  ;;  %v10993_v31 = vld [vmem:[%s12456_s30 + $0x538] sm:$0xff]  }
 0x240   : > { %10316 = vmatpush3.bf16.msra.mxu1 %v10928_v32  ;;  %10277 = vmatprep.subr.bf16.mxu0 %v10933_v39  ;;  %v10994_v32 = vld [vmem:[%s12456_s30 + $0x5b8] sm:$0xff]   ;;  %v11003_v39 = vld [vmem:[%s12456_s30 + $0x600] sm:$0xff]  }
 0x241   : > { %10317 = vmatprep.subr.bf16.mxu1 %v10934_v40  ;;  %v11004_v40 = vld [vmem:[%s12456_s30 + $0x680] sm:$0xff]  }
 0x242   : > { %8538 = vmatmul.mubr.bf16.gmra.mrb[60].mxu0 %v9630_v37  ;;  %v11001_v37 = vld [vmem:[%s12456_s30 + $0x640] sm:$0xff]  }
 0x243   : > { %8602 = vmatmul.mubr.bf16.gmra.mrb[60].mxu1 %v9632_v38  ;;  %10278 = vmatpush3.bf16.msra.mxu0 %v10935_v41  ;;  %v11002_v38 = vld [vmem:[%s12456_s30 + $0x6c0] sm:$0xff]   ;;  %v11005_v41 = vld [vmem:[%s12456_s30 + $0x648] sm:$0xff]  }
 0x244   : > { %10318 = vmatpush3.bf16.msra.mxu1 %v10936_v42  ;;  %10279 = vmatprep.subr.bf16.mxu0 %v10937_v43  ;;  %v11006_v42 = vld [vmem:[%s12456_s30 + $0x6c8] sm:$0xff]  }
 0x245   : > { %10319 = vmatprep.subr.bf16.mxu1 %v10938_v44  ;;  %8641 = vmatprep.mubr.bf16.mxu0 %v10943_v48  ;;  %v11007_v43 = vld [vmem:[%s12456_s30 + $0x608] sm:$0xff]  }
 0x246   : > { %8705 = vmatprep.mubr.bf16.mxu1 %v10946_v50  ;;  %v11008_v44 = vld [vmem:[%s12456_s30 + $0x688] sm:$0xff]   ;;  %v11016_v50 = vld [vmem:[%s12456_s30 + $0x6d0] sm:$0xff]  }
 0x247   : > { %10280 = vmatpush3.bf16.msra.mxu0 %v10939_v45  ;;  %v11009_v45 = vld [vmem:[%s13253_s0 + $0x174] ss:$144 sps:$4 sm:$0xff]   ;;  %v11014_v48 = vld [vmem:[%s13253_s0 + $0x178] ss:$144 sps:$4 sm:$0xff]  }
 0x248   : > { %10320 = vmatpush3.bf16.msra.mxu1 %v10940_v46  ;;  %10345 = vmatprep.subr.bf16.mxu0 %v10947_v51  ;;  %v11011_v46 = vld [vmem:[%s13253_s0 + $0x17c] ss:$144 sps:$4 sm:$0xff]  }
 0x249   : > { %10385 = vmatprep.subr.bf16.mxu1 %v10948_v52  ;;  %v11017_v52 = vld [vmem:[%s12456_s30 + $0x610] sm:$0xff]  }
 0x24a   : > { %8642 = vmatmul.mubr.bf16.vlgmr.msra.gmra.mrb[64].mxu0 %v10941_v47  ;;  %v11013_v47 = vld [vmem:[%s13253_s0 + $0x170] ss:$144 sps:$4 sm:$0xff]  }
 0x24b   : > { %8706 = vmatmul.mubr.bf16.vlgmr.msra.gmra.mrb[64].mxu1 %v10944_v49  ;;  %10346 = vmatpush3.bf16.msra.mxu0 %v10949_v53  ;;  %v11015_v49 = vld [vmem:[%s12456_s30 + $0x650] sm:$0xff]  }
 0x24c   : > { %10386 = vmatpush3.bf16.msra.mxu1 %v10950_v54  ;;  %10347 = vmatprep.subr.bf16.mxu0 %v10951_v55  ;;  %v11018_v54 = vld [vmem:[%s12456_s30 + $0x690] sm:$0xff]  }
 0x24d   : > { %10387 = vmatprep.subr.bf16.mxu1 %v10952_v56  ;;  %8649 = vmatprep.mubr.bf16.mxu0 %v10955_v59  ;;  %v11019_v56 = vld [vmem:[%s12456_s30 + $0x658] sm:$0xff]  }
 0x24e   : > { %8713 = vmatprep.mubr.bf16.mxu1 %v10957_v60  ;;  %v11020_v59 = vld [vmem:[%s12456_s30 + $0x6d8] sm:$0xff]  }
 0x24f   : > { %10348 = vmatpush3.bf16.msra.mxu0 %v10953_v57 }
 0x250   : > { %10388 = vmatpush3.bf16.msra.mxu1 %v10954_v58  ;;  %10349 = vmatprep.subr.bf16.mxu0 %v10961_v63 }
 0x251   : > { %10389 = vmatprep.subr.bf16.mxu1 %v10962_v0  ;;  %v11022_v0 = vld [vmem:[%s12456_s30 + $0x698] sm:$0xff]  }
 0x252   : > { %8650 = vmatmul.mubr.bf16.gmra.mrb[68].mxu0 %v10959_v61 }
 0x253   : > { %8714 = vmatmul.mubr.bf16.gmra.mrb[68].mxu1 %v10960_v62  ;;  %10350 = vmatpush3.bf16.msra.mxu0 %v10963_v1  ;;  %v11021_v62 = vld [vmem:[%s12456_s30 + $0x618] sm:$0xff]  }
 0x254   : > { %10390 = vmatpush3.bf16.msra.mxu1 %v10964_v2  ;;  %10351 = vmatprep.subr.bf16.mxu0 %v10965_v3 }
 0x255   : > { %10391 = vmatprep.subr.bf16.mxu1 %v10966_v4  ;;  %8657 = vmatprep.mubr.bf16.mxu0 %v10969_v7  ;;  %v11023_v4 = vld [vmem:[%s13253_s0 + $0x294] ss:$144 sps:$4 sm:$0xff]   ;;  %v11025_v7 = vld [vmem:[%s13253_s0 + $0x29c] ss:$144 sps:$4 sm:$0xff]  }
 0x256   : > { %8721 = vmatprep.mubr.bf16.mxu1 %v10971_v8  ;;  %v11027_v8 = vld [vmem:[%s13253_s0 + $0x290] ss:$144 sps:$4 sm:$0xff]  }
 0x257   : > { %10352 = vmatpush3.bf16.msra.mxu0 %v10967_v5 }
 0x258   : > { %10392 = vmatpush3.bf16.msra.mxu1 %v10968_v6  ;;  %10353 = vmatprep.subr.bf16.mxu0 %v10975_v11 }
 0x259   : > { %10393 = vmatprep.subr.bf16.mxu1 %v10976_v12  ;;  %v11029_v12 = vld [vmem:[%s12456_s30 + $0x660] sm:$0xff]  }
 0x25a   : > { %8658 = vmatmul.mubr.bf16.gmra.mrb[72].mxu0 %v10973_v9 }
 0x25b   : > { %8722 = vmatmul.mubr.bf16.gmra.mrb[72].mxu1 %v10974_v10  ;;  %10354 = vmatpush3.bf16.msra.mxu0 %v10977_v13  ;;  %v11028_v10 = vld [vmem:[%s13253_s0 + $0x298] ss:$144 sps:$4 sm:$0xff]  }
 0x25c   : > { %10394 = vmatpush3.bf16.msra.mxu1 %v10978_v14  ;;  %10355 = vmatprep.subr.bf16.mxu0 %v10979_v15  ;;  %v11030_v14 = vld [vmem:[%s12456_s30 + $0x6e0] sm:$0xff]  }
 0x25d   : > { %10395 = vmatprep.subr.bf16.mxu1 %v10980_v16  ;;  %8665 = vmatprep.mubr.bf16.mxu0 %v9635_v20  ;;  %v11031_v16 = vld [vmem:[%s12456_s30 + $0x620] sm:$0xff]  }
 0x25e   : > { %8729 = vmatprep.mubr.bf16.mxu1 %v9637_v23 }
 0x25f   : > { %10356 = vmatpush3.bf16.msra.mxu0 %v10981_v17 }
 0x260   : > { %10396 = vmatpush3.bf16.msra.mxu1 %v10982_v18  ;;  %10357 = vmatprep.subr.bf16.mxu0 %v10987_v25 }
 0x261   : > { %10397 = vmatprep.subr.bf16.mxu1 %v10988_v26 }
 0x262   : > { %8666 = vmatmul.mubr.bf16.gmra.mrb[76].mxu0 %v9634_v22  ;;  %v11033_v22 = vld [vmem:[%s12456_s30 + $0x668] sm:$0xff]  }
 0x263   : > { %8730 = vmatmul.mubr.bf16.gmra.mrb[76].mxu1 %v9636_v24  ;;  %10358 = vmatpush3.bf16.msra.mxu0 %v10989_v27  ;;  %v11034_v24 = vld [vmem:[%s12456_s30 + $0x6e8] sm:$0xff]  }
 0x264   : > { %10398 = vmatpush3.bf16.msra.mxu1 %v10990_v28  ;;  %10359 = vmatprep.subr.bf16.mxu0 %v10991_v29  ;;  %v11035_v27 = vld [vmem:[%s12456_s30 + $0x628] sm:$0xff]  }
 0x265   : > { %10399 = vmatprep.subr.bf16.mxu1 %v10992_v30  ;;  %8769 = vmatprep.mubr.bf16.mxu0 %v10997_v34  ;;  %v11036_v30 = vld [vmem:[%s12456_s30 + $0x6a8] sm:$0xff]  }
 0x266   : > { %8833 = vmatprep.mubr.bf16.mxu1 %v11000_v36 }
 0x267   : > { %10360 = vmatpush3.bf16.msra.mxu0 %v10993_v31  ;;  %v5119_v31 = vld [vmem:[%s13253_s0 + $0x3b0] sm:$0xff] }
 0x268   : > { %10400 = vmatpush3.bf16.msra.mxu1 %v10994_v32  ;;  %10425 = vmatprep.subr.bf16.mxu0 %v11001_v37  ;;  %v5120_v32 = vld [vmem:[%s13253_s0 + $0x3b8] sm:$0xff]  ;;  %v9639_v34 = vcombine.high %v5119_v31, %v5119_v31  ;;  %v9638_v36 = vcombine.low %v5119_v31, %v5119_v31 }
 0x269   : > { %10465 = vmatprep.subr.bf16.mxu1 %v11002_v38  ;;  %v9640_v37 = vcombine.low %v5120_v32, %v5120_v32  ;;  %v11041_v38 = vld [vmem:[%s12456_s30 + $0x670] sm:$0xff]  }
 0x26a   : > { %8770 = vmatmul.mubr.bf16.vlgmr.msra.gmra.mrb[80].mxu0 %v10995_v33 }
 0x26b   : > { %8834 = vmatmul.mubr.bf16.vlgmr.msra.gmra.mrb[80].mxu1 %v10998_v35  ;;  %10426 = vmatpush3.bf16.msra.mxu0 %v11003_v39  ;;  %v9641_v35 = vcombine.high %v5120_v32, %v5120_v32  ;;  %v11071_v32 = vld [vmem:[%s12456_s30 + $0x710] sm:$0xff]  }
 0x26c   : > { %10466 = vmatpush3.bf16.msra.mxu1 %v11004_v40  ;;  %10427 = vmatprep.subr.bf16.mxu0 %v11005_v41  ;;  %v11042_v40 = vld [vmem:[%s12456_s30 + $0x6f0] sm:$0xff]  }
 0x26d   : > { %10467 = vmatprep.subr.bf16.mxu1 %v11006_v42  ;;  %8777 = vmatprep.mubr.bf16.mxu0 %v11009_v45  ;;  %v11044_v45 = vld [vmem:[%s12456_s30 + $0x6b0] sm:$0xff]  }
 0x26e   : > { %8841 = vmatprep.mubr.bf16.mxu1 %v11011_v46 }
 0x26f   : > { %10428 = vmatpush3.bf16.msra.mxu0 %v11007_v43  ;;  %v11043_v43 = vld [vmem:[%s12456_s30 + $0x630] sm:$0xff]  }
 0x270   : > { %10468 = vmatpush3.bf16.msra.mxu1 %v11008_v44  ;;  %10429 = vmatprep.subr.bf16.mxu0 %v11015_v49 }
 0x271   : > { %10469 = vmatprep.subr.bf16.mxu1 %v11016_v50 }
 0x272   : > { %8778 = vmatmul.mubr.bf16.gmra.mrb[84].mxu0 %v11013_v47 }
 0x273   : > { %8842 = vmatmul.mubr.bf16.gmra.mrb[84].mxu1 %v11014_v48  ;;  %10430 = vmatpush3.bf16.msra.mxu0 %v11017_v52  ;;  %v11045_v48 = vld [vmem:[%s12456_s30 + $0x678] sm:$0xff]  }
 0x274   : > { %10470 = vmatpush3.bf16.msra.mxu1 %v11018_v54  ;;  %10431 = vmatprep.subr.bf16.mxu0 %v11019_v56  ;;  %v11048_v56 = vld [vmem:[%s12456_s30 + $0x6b8] sm:$0xff]  }
 0x275   : > { %10471 = vmatprep.subr.bf16.mxu1 %v11020_v59  ;;  %8785 = vmatprep.mubr.bf16.mxu0 %v11023_v4  ;;  %v11049_v59 = vld [vmem:[%s13253_s0 + $0x60] ss:$144 sps:$4 sm:$0xff]  }
 0x276   : > { %8849 = vmatprep.mubr.bf16.mxu1 %v11025_v7  ;;  %v11056_v4 = vld [vmem:[%s12456_s30 + $0x7c0] sm:$0xff]  }
 0x277   : > { %10432 = vmatpush3.bf16.msra.mxu0 %v11021_v62  ;;  %v11052_v62 = vld [vmem:[%s13253_s0 + $0x68] ss:$144 sps:$4 sm:$0xff]  }
 0x278   : > { %10472 = vmatpush3.bf16.msra.mxu1 %v11022_v0  ;;  %10433 = vmatprep.subr.bf16.mxu0 %v11029_v12  ;;  %v11059_v12 = vld [vmem:[%s12456_s30 + $0x748] sm:$0xff]  }
 0x279   : > { %10473 = vmatprep.subr.bf16.mxu1 %v11030_v14 }
 0x27a   : > { %8786 = vmatmul.mubr.bf16.gmra.mrb[88].mxu0 %v11027_v8  ;;  %v11058_v8 = vld [vmem:[%s12456_s30 + $0x780] sm:$0xff]  }
 0x27b   : > { %8850 = vmatmul.mubr.bf16.gmra.mrb[88].mxu1 %v11028_v10  ;;  %10434 = vmatpush3.bf16.msra.mxu0 %v11031_v16 }
 0x27c   : > { %10474 = vmatpush3.bf16.msra.mxu1 %v11032_v19  ;;  %10435 = vmatprep.subr.bf16.mxu0 %v11033_v22  ;;  %v11063_v22 = vld [vmem:[%s13253_s0 + $0x184] ss:$144 sps:$4 sm:$0xff]  }
 0x27d   : > { %10475 = vmatprep.subr.bf16.mxu1 %v11034_v24  ;;  %8793 = vmatprep.mubr.bf16.mxu0 %v9639_v34  ;;  %v11067_v24 = vld [vmem:[%s13253_s0 + $0x180] ss:$144 sps:$4 sm:$0xff]  }
 0x27e   : > { %8857 = vmatprep.mubr.bf16.mxu1 %v9641_v35  ;;  %v11072_v35 = vld [vmem:[%s12456_s30 + $0x790] sm:$0xff]  }
 0x27f   : > { %10436 = vmatpush3.bf16.msra.mxu0 %v11035_v27  ;;  %v11068_v27 = vld [vmem:[%s13253_s0 + $0x188] ss:$144 sps:$4 sm:$0xff]  }
 0x280   : > { %10476 = vmatpush3.bf16.msra.mxu1 %v11036_v30  ;;  %10437 = vmatprep.subr.bf16.mxu0 %v11041_v38  ;;  %v11070_v30 = vld [vmem:[%s12456_s30 + $0x7d0] sm:$0xff]   ;;  %v11073_v38 = vld [vmem:[%s12456_s30 + $0x758] sm:$0xff]  }
 0x281   : > { %10477 = vmatprep.subr.bf16.mxu1 %v11042_v40 }
 0x282   : > { %8794 = vmatmul.mubr.bf16.gmra.mrb[92].mxu0 %v9638_v36 }
 0x283   : > { %8858 = vmatmul.mubr.bf16.gmra.mrb[92].mxu1 %v9640_v37  ;;  %10438 = vmatpush3.bf16.msra.mxu0 %v11043_v43 }
 0x284   : > { %10478 = vmatpush3.bf16.msra.mxu1 %v11044_v45  ;;  %10439 = vmatprep.subr.bf16.mxu0 %v11045_v48  ;;  %v11076_v48 = vld [vmem:[%s12456_s30 + $0x798] sm:$0xff]  }
 0x29d   : > { %v9961_v51 = vpop.f32.mrb[0].mxu0 }
 0x29e   : > { %v10001_v53 = vpop.f32.mrb[0].mxu1  ;;  %v9962_v55 = vpop.f32.mrb[1].mxu0 }
 0x29f   : > { %v9963_v57 = vadd.f32 %v9962_v55, %v9961_v51  ;;  %v10002_v58 = vpop.f32.mrb[1].mxu1  ;;  %v9964_v61 = vpop.f32.mrb[2].mxu0  ;;  %v11046_v51 = vld [vmem:[%s12456_s30 + $0x6f8] sm:$0xff]  }
 0x2a0   : > { %v10003_v60 = vadd.f32 %v10002_v58, %v10001_v53  ;;  %v10004_v63 = vpop.f32.mrb[2].mxu1  ;;  %v9965_v2 = vpop.f32.mrb[3].mxu0  ;;  %v11047_v53 = vld [vmem:[%s12456_s30 + $0x638] sm:$0xff]   ;;  %10479 = vmatprep.subr.bf16.mxu1 %v11046_v51 }
 0x2a1   : > { %v10005_v3 = vpop.f32.mrb[3].mxu1  ;;  %v9966_v5 = vadd.f32 %v9965_v2, %v9964_v61  ;;  %10440 = vmatpush3.bf16.msra.mxu0 %v11047_v53  ;;  %10480 = vmatpush3.bf16.msra.mxu1 %v11048_v56  ;;  %v11051_v61 = vld [vmem:[%s13253_s0 + $0x64] ss:$144 sps:$4 sm:$0xff]   ;;  %v11081_v53 = vld [vmem:[%s13253_s0 + $0x2a0] ss:$144 sps:$4 sm:$0xff]  }
 0x2a2   : > { %v12894_v1 = vadd.f32 %v10003_v60, %v9963_v57  ;;  %v10006_v6 = vadd.f32 %v10005_v3, %v10004_v63  ;;  %v11054_v63 = vld [vmem:[%s13253_s0 + $0x6c] ss:$144 sps:$4 sm:$0xff]   ;;  %8897 = vmatprep.mubr.bf16.mxu0 %v11051_v61  ;;  %v11055_v2 = vld [vmem:[%s12456_s30 + $0x740] sm:$0xff]   ;;  %10545 = vmatprep.subr.bf16.mxu1 %v11056_v4 }
 0x2a3   : > { %8961 = vmatprep.mubr.bf16.mxu1 %v11054_v63  ;;  %10505 = vmatprep.subr.bf16.mxu0 %v11055_v2  ;;  %v11083_v56 = vld [vmem:[%s12456_s30 + $0x760] sm:$0xff]   ;;  %v11087_v4 = vld [vmem:[%s12456_s30 + $0x768] sm:$0xff]  }
 0x2a4   : > { %v12908_v11 = vadd.f32 %v10006_v6, %v9966_v5  ;;  %8898 = vmatmul.mubr.bf16.vlgmr.msra.gmra.mrb[96].mxu0 %v11049_v59  ;;  %8962 = vmatmul.mubr.bf16.vlgmr.msra.gmra.mrb[96].mxu1 %v11052_v62  ;;  %v11057_v6 = vld [vmem:[%s12456_s30 + $0x700] sm:$0xff]  }
 0x2a5   : > { %v9967_v9 = vpop.f32.mrb[4].mxu0  ;;  %10506 = vmatpush3.bf16.msra.mxu0 %v11057_v6  ;;  %10546 = vmatpush3.bf16.msra.mxu1 %v11058_v8  ;;  %v11086_v63 = vld [vmem:[%s12456_s30 + $0x7a0] sm:$0xff]  }
 0x2a6   : > { %v10007_v13 = vpop.f32.mrb[4].mxu1  ;;  %v9968_v15 = vpop.f32.mrb[5].mxu0  ;;  %10507 = vmatprep.subr.bf16.mxu0 %v11059_v12  ;;  %8905 = vmatprep.mubr.bf16.mxu0 %v11063_v22 }
 0x2a7   : > { %v9969_v17 = vadd.f32 %v9968_v15, %v9967_v9  ;;  %v10008_v18 = vpop.f32.mrb[5].mxu1  ;;  %v9970_v21 = vpop.f32.mrb[6].mxu0  ;;  %v11060_v15 = vld [vmem:[%s12456_s30 + $0x7c8] sm:$0xff]  }
 0x2a8   : > { %v10009_v20 = vadd.f32 %v10008_v18, %v10007_v13  ;;  %v10010_v23 = vpop.f32.mrb[6].mxu1  ;;  %v9971_v26 = vpop.f32.mrb[7].mxu0  ;;  %10547 = vmatprep.subr.bf16.mxu1 %v11060_v15 }
 0x2a9   : > { %v9972_v28 = vadd.f32 %v9971_v26, %v9970_v21  ;;  %v10011_v29 = vpop.f32.mrb[7].mxu1 }
 0x2aa   : > { %v12916_v25 = vadd.f32 %v10009_v20, %v9969_v17  ;;  %v10012_v33 = vadd.f32 %v10011_v29, %v10010_v23  ;;  %v11061_v17 = vld [vmem:[%s12456_s30 + $0x708] sm:$0xff]  }
 0x2ab   : > { %v11062_v20 = vld [vmem:[%s12456_s30 + $0x788] sm:$0xff]   ;;  %10508 = vmatpush3.bf16.msra.mxu0 %v11061_v17 }
 0x2ac   : > { %v12928_v41 = vadd.f32 %v10012_v33, %v9972_v28  ;;  %10548 = vmatpush3.bf16.msra.mxu1 %v11062_v20  ;;  %v11065_v23 = vld [vmem:[%s13253_s0 + $0x18c] ss:$144 sps:$4 sm:$0xff]   ;;  %8906 = vmatmul.mubr.bf16.gmra.mrb[100].mxu0 %v11067_v24  ;;  %v11069_v28 = vld [vmem:[%s12456_s30 + $0x750] sm:$0xff]  }
 0x2ad   : > { %v9973_v39 = vpop.f32.mrb[8].mxu0  ;;  %8969 = vmatprep.mubr.bf16.mxu1 %v11065_v23  ;;  %10509 = vmatprep.subr.bf16.mxu0 %v11069_v28  ;;  %v11095_v23 = vld [vmem:[%s12456_s30 + $0x770] sm:$0xff]  }
 0x2ae   : > { %v10013_v42 = vpop.f32.mrb[8].mxu1  ;;  %v9974_v44 = vpop.f32.mrb[9].mxu0  ;;  %8970 = vmatmul.mubr.bf16.gmra.mrb[100].mxu1 %v11068_v27  ;;  %10549 = vmatprep.subr.bf16.mxu1 %v11070_v30 }
 0x2af   : > { %v9975_v46 = vadd.f32 %v9974_v44, %v9973_v39  ;;  %v10014_v47 = vpop.f32.mrb[9].mxu1  ;;  %v9976_v50 = vpop.f32.mrb[10].mxu0  ;;  %10510 = vmatpush3.bf16.msra.mxu0 %v11071_v32  ;;  %v11075_v44 = vld [vmem:[%s12456_s30 + $0x718] sm:$0xff]  }
 0x2b0   : > { %v10015_v49 = vadd.f32 %v10014_v47, %v10013_v42  ;;  %v10016_v52 = vpop.f32.mrb[10].mxu1  ;;  %v9977_v55 = vpop.f32.mrb[11].mxu0  ;;  %10550 = vmatpush3.bf16.msra.mxu1 %v11072_v35  ;;  %v11074_v42 = vld [vmem:[%s12456_s30 + $0x7d8] sm:$0xff]   ;;  %10511 = vmatprep.subr.bf16.mxu0 %v11073_v38 }
 0x2b1   : > { %v9978_v57 = vadd.f32 %v9977_v55, %v9976_v50  ;;  %v10017_v58 = vpop.f32.mrb[11].mxu1  ;;  %10551 = vmatprep.subr.bf16.mxu1 %v11074_v42  ;;  %v11082_v55 = vld [vmem:[%s13253_s0 + $0x2a8] ss:$144 sps:$4 sm:$0xff]  }
 0x2b2   : > { %v12935_v54 = vadd.f32 %v10015_v49, %v9975_v46  ;;  %v10018_v60 = vadd.f32 %v10017_v58, %v10016_v52  ;;  %v11079_v52 = vld [vmem:[%s13253_s0 + $0x2ac] ss:$144 sps:$4 sm:$0xff]   ;;  %v11084_v58 = vld [vmem:[%s12456_s30 + $0x7e0] sm:$0xff]  }
 0x2b3   : > { %10512 = vmatpush3.bf16.msra.mxu0 %v11075_v44  ;;  %8977 = vmatprep.mubr.bf16.mxu1 %v11079_v52  ;;  %v11102_v42 = vld [vmem:[%s12456_s30 + $0x7b8] sm:$0xff]  }
 0x2b4   : > { %v12950_v0 = vadd.f32 %v10018_v60, %v9978_v57  ;;  %10552 = vmatpush3.bf16.msra.mxu1 %v11076_v48  ;;  %10513 = vmatprep.subr.bf16.mxu0 %v11083_v56  ;;  %v11085_v60 = vld [vmem:[%s12456_s30 + $0x720] sm:$0xff]  }
 0x2b5   : > { %v9979_v3 = vpop.f32.mrb[12].mxu0  ;;  %10553 = vmatprep.subr.bf16.mxu1 %v11084_v58  ;;  %v11112_v58 = vld [vmem:[%s12456_s30 + $0x880] sm:$0xff]  }
 0x2b6   : > { %v10019_v5 = vpop.f32.mrb[12].mxu1  ;;  %v9980_v7 = vpop.f32.mrb[13].mxu0  ;;  %8978 = vmatmul.mubr.bf16.gmra.mrb[104].mxu1 %v11082_v55  ;;  %v11110_v55 = vld [vmem:[%s12456_s30 + $0x8c0] sm:$0xff]  }
 0x2b7   : > { %v9981_v9 = vadd.f32 %v9980_v7, %v9979_v3  ;;  %v10020_v10 = vpop.f32.mrb[13].mxu1  ;;  %v9982_v14 = vpop.f32.mrb[14].mxu0  ;;  %10514 = vmatpush3.bf16.msra.mxu0 %v11085_v60  ;;  %v11088_v7 = vld [vmem:[%s12456_s30 + $0x7e8] sm:$0xff]  }
 0x2b8   : > { %v10021_v13 = vadd.f32 %v10020_v10, %v10019_v5  ;;  %v10022_v16 = vpop.f32.mrb[14].mxu1  ;;  %v9983_v19 = vpop.f32.mrb[15].mxu0  ;;  %10554 = vmatpush3.bf16.msra.mxu1 %v11086_v63  ;;  %10515 = vmatprep.subr.bf16.mxu0 %v11087_v4  ;;  %v11090_v14 = vld [vmem:[%s12456_s30 + $0x7a8] sm:$0xff]  }
 0x2b9   : > { %v10023_v21 = vpop.f32.mrb[15].mxu1  ;;  %10555 = vmatprep.subr.bf16.mxu1 %v11088_v7  ;;  %v5122_v16 = vld [vmem:[%s13253_s0 + $0x3c8] sm:$0xff] }
 0x2ba   : > { %v12959_v18 = vadd.f32 %v10021_v13, %v9981_v9  ;;  %v11089_v9 = vld [vmem:[%s12456_s30 + $0x728] sm:$0xff]   ;;  %v9645_v20 = vcombine.high %v5122_v16, %v5122_v16  ;;  %v9644_v22 = vcombine.low %v5122_v16, %v5122_v16 }
 0x2bb   : > { %10516 = vmatpush3.bf16.msra.mxu0 %v11089_v9  ;;  %v11116_v7 = vld [vmem:[%s12456_s30 + $0x888] sm:$0xff]  }
 0x2bc   : > { %10556 = vmatpush3.bf16.msra.mxu1 %v11090_v14  ;;  %8985 = vmatprep.mubr.bf16.mxu1 %v9645_v20  ;;  %v11121_v14 = vld [vmem:[%s13253_s0 + $0x190] ss:$144 sps:$4 sm:$0xff]  }
 0x2bd   : > { %v10041_v26 = vpop.f32.mrb[16].mxu0  ;;  %10517 = vmatprep.subr.bf16.mxu0 %v11095_v23  ;;  %v11125_v20 = vld [vmem:[%s12456_s30 + $0x810] sm:$0xff]  }
 0x2be   : > { %v10081_v29 = vpop.f32.mrb[16].mxu1  ;;  %v10042_v31 = vpop.f32.mrb[17].mxu0  ;;  %8986 = vmatmul.mubr.bf16.gmra.mrb[108].mxu1 %v9644_v22  ;;  %v11126_v23 = vld [vmem:[%s12456_s30 + $0x890] sm:$0xff]  }
 0x2bf   : > { %v10043_v33 = vadd.f32 %v10042_v31, %v10041_v26  ;;  %v10082_v34 = vpop.f32.mrb[17].mxu1  ;;  %v10044_v37 = vpop.f32.mrb[18].mxu0  ;;  %v11096_v26 = vld [vmem:[%s12456_s30 + $0x7f0] sm:$0xff]  }
 0x2c0   : > { %v10083_v36 = vadd.f32 %v10082_v34, %v10081_v29  ;;  %v10084_v40 = vpop.f32.mrb[18].mxu1  ;;  %v10045_v43 = vpop.f32.mrb[19].mxu0  ;;  %v11097_v29 = vld [vmem:[%s12456_s30 + $0x730] sm:$0xff]   ;;  %10557 = vmatprep.subr.bf16.mxu1 %v11096_v26 }
 0x2c1   : > { %v8260_v39 = vadd.f32 %v10043_v33, %v12894_v1  ;;  %v10046_v46 = vadd.f32 %v10045_v43, %v10044_v37  ;;  %v10085_v47 = vpop.f32.mrb[19].mxu1  ;;  %v11077_v1 = vld [vmem:[%s13253_s0 + $0x2a4] ss:$144 sps:$4 sm:$0xff]   ;;  %v11099_v33 = vld [vmem:[%s12456_s30 + $0x778] sm:$0xff]   ;;  %10518 = vmatpush3.bf16.msra.mxu0 %v11097_v29 }
 0x2c2   : > { %v10086_v49 = vadd.f32 %v10085_v47, %v10084_v40  ;;  %8913 = vmatprep.mubr.bf16.mxu0 %v11077_v1  ;;  %10519 = vmatprep.subr.bf16.mxu0 %v11099_v33  ;;  %v11103_v47 = vld [vmem:[%s13253_s0 + $0x70] ss:$144 sps:$4 sm:$0xff]  }
 0x2c3   : > { %v12982_v45 = vadd.f32 %v10083_v36, %v8260_v39  ;;  %v8263_v50 = vadd.f32 %v10046_v46, %v12908_v11  ;;  %8914 = vmatmul.mubr.bf16.gmra.mrb[104].mxu0 %v11081_v53  ;;  %v11100_v36 = vld [vmem:[%s12456_s30 + $0x7f8] sm:$0xff]  }
 0x2c4   : > { %v11101_v39 = vld [vmem:[%s12456_s30 + $0x738] sm:$0xff]  }
 0x2c5   : > { %v10047_v51 = vpop.f32.mrb[20].mxu0  ;;  %v12999_v57 = vadd.f32 %v10086_v49, %v8263_v50  ;;  %10520 = vmatpush3.bf16.msra.mxu0 %v11101_v39  ;;  %v11106_v49 = vld [vmem:[%s13253_s0 + $0x78] ss:$144 sps:$4 sm:$0xff]   ;;  %v11108_v50 = vld [vmem:[%s13253_s0 + $0x7c] ss:$144 sps:$4 sm:$0xff]  }
 0x2c6   : > { %v10087_v11 = vpop.f32.mrb[20].mxu1  ;;  %v10048_v59 = vpop.f32.mrb[21].mxu0  ;;  %9089 = vmatprep.mubr.bf16.mxu1 %v11108_v50  ;;  %v11133_v39 = vld [vmem:[%s13253_s0 + $0x2bc] ss:$144 sps:$4 sm:$0xff]   ;;  %v11139_v50 = vld [vmem:[%s12456_s30 + $0x820] sm:$0xff]  }
 0x2c7   : > { %v10049_v61 = vadd.f32 %v10048_v59, %v10047_v51  ;;  %v10088_v62 = vpop.f32.mrb[21].mxu1  ;;  %v10050_v3 = vpop.f32.mrb[22].mxu0  ;;  %v11109_v51 = vld [vmem:[%s12456_s30 + $0x840] sm:$0xff]  }
 0x2c8   : > { %v10089_v2 = vadd.f32 %v10088_v62, %v10087_v11  ;;  %v10090_v6 = vpop.f32.mrb[22].mxu1  ;;  %v10051_v8 = vpop.f32.mrb[23].mxu0  ;;  %10585 = vmatprep.subr.bf16.mxu0 %v11109_v51  ;;  %v11111_v11 = vld [vmem:[%s12456_s30 + $0x800] sm:$0xff]  }
 0x2c9   : > { %v8268_v5 = vadd.f32 %v10049_v61, %v12916_v25  ;;  %v10052_v12 = vadd.f32 %v10051_v8, %v10050_v3  ;;  %v10091_v13 = vpop.f32.mrb[23].mxu1  ;;  %v5121_v25 = vld [vmem:[%s13253_s0 + $0x3c0] sm:$0xff]  ;;  %v11113_v61 = vld [vmem:[%s12456_s30 + $0x848] sm:$0xff]  }
 0x2ca   : > { %v10092_v15 = vadd.f32 %v10091_v13, %v10090_v6  ;;  %v9643_v19 = vcombine.high %v5121_v25, %v5121_v25  ;;  %v9642_v21 = vcombine.low %v5121_v25, %v5121_v25  ;;  %v11123_v25 = vld [vmem:[%s12456_s30 + $0x850] sm:$0xff]  }
 0x2cb   : > { %v13008_v10 = vadd.f32 %v10089_v2, %v8268_v5  ;;  %v8271_v17 = vadd.f32 %v10052_v12, %v12928_v41  ;;  %v11098_v41 = vld [vmem:[%s12456_s30 + $0x7b0] sm:$0xff]   ;;  %v11114_v2 = vld [vmem:[%s12456_s30 + $0x8c8] sm:$0xff]  }
 0x2cc   : > { %8921 = vmatprep.mubr.bf16.mxu0 %v9643_v19  ;;  %10558 = vmatpush3.bf16.msra.mxu1 %v11098_v41  ;;  %v11115_v5 = vld [vmem:[%s12456_s30 + $0x808] sm:$0xff]   ;;  %v11117_v12 = vld [vmem:[%s13253_s0 + $0x194] ss:$144 sps:$4 sm:$0xff]   ;;  %v11128_v41 = vld [vmem:[%s12456_s30 + $0x8d8] sm:$0xff]  }
 0x2cd   : > { %v10053_v24 = vpop.f32.mrb[24].mxu0  ;;  %v13020_v27 = vadd.f32 %v10092_v15, %v8271_v17  ;;  %8922 = vmatmul.mubr.bf16.gmra.mrb[108].mxu0 %v9642_v21  ;;  %10559 = vmatprep.subr.bf16.mxu1 %v11100_v36  ;;  %v11122_v15 = vld [vmem:[%s13253_s0 + $0x198] ss:$144 sps:$4 sm:$0xff]   ;;  %v11124_v17 = vld [vmem:[%s12456_s30 + $0x8d0] sm:$0xff]  }
 0x2ce   : > { %v10093_v28 = vpop.f32.mrb[24].mxu1  ;;  %v10054_v30 = vpop.f32.mrb[25].mxu0  ;;  %v11130_v36 = vld [vmem:[%s12456_s30 + $0x898] sm:$0xff]  }
 0x2cf   : > { %v10055_v31 = vadd.f32 %v10054_v30, %v10053_v24  ;;  %v10094_v32 = vpop.f32.mrb[25].mxu1  ;;  %v10056_v35 = vpop.f32.mrb[26].mxu0 }
 0x2d0   : > { %v10095_v34 = vadd.f32 %v10094_v32, %v10093_v28  ;;  %v10096_v38 = vpop.f32.mrb[26].mxu1  ;;  %v10057_v40 = vpop.f32.mrb[27].mxu0  ;;  %10560 = vmatpush3.bf16.msra.mxu1 %v11102_v42  ;;  %v11127_v28 = vld [vmem:[%s12456_s30 + $0x858] sm:$0xff]  }
 0x2d1   : > { %v8276_v37 = vadd.f32 %v10055_v31, %v12935_v54  ;;  %v10058_v44 = vadd.f32 %v10057_v40, %v10056_v35  ;;  %v10097_v46 = vpop.f32.mrb[27].mxu1  ;;  %v11105_v54 = vld [vmem:[%s13253_s0 + $0x74] ss:$144 sps:$4 sm:$0xff]   ;;  %10625 = vmatprep.subr.bf16.mxu1 %v11110_v55  ;;  %v11129_v32 = vld [vmem:[%s12456_s30 + $0x818] sm:$0xff]  }
 0x2d2   : > { %v10098_v48 = vadd.f32 %v10097_v46, %v10096_v38  ;;  %9025 = vmatprep.mubr.bf16.mxu0 %v11105_v54  ;;  %v11136_v46 = vld [vmem:[%s13253_s0 + $0x2b8] ss:$144 sps:$4 sm:$0xff]   ;;  %v11140_v55 = vld [vmem:[%s12456_s30 + $0x8a0] sm:$0xff]  }
 0x2d3   : > { %v13029_v43 = vadd.f32 %v10095_v34, %v8276_v37  ;;  %v8279_v1 = vadd.f32 %v10058_v44, %v12950_v0  ;;  %9090 = vmatmul.mubr.bf16.vlgmr.msra.gmra.mrb[112].mxu1 %v11106_v49  ;;  %v11135_v44 = vld [vmem:[%s13253_s0 + $0x2b0] ss:$144 sps:$4 sm:$0xff]  }
 0x2d4   : > { %10626 = vmatpush3.bf16.msra.mxu1 %v11112_v58 }
 0x2d5   : > { %v13045_v52 = vadd.f32 %v10098_v48, %v8279_v1  ;;  %v10059_v53 = vpop.f32.mrb[28].mxu0  ;;  %9026 = vmatmul.mubr.bf16.vlgmr.msra.gmra.mrb[112].mxu0 %v11103_v47  ;;  %10627 = vmatprep.subr.bf16.mxu1 %v11114_v2  ;;  %v11138_v48 = vld [vmem:[%s12456_s30 + $0x8e0] sm:$0xff]  }
 0x2d6   : > { %v10099_v56 = vpop.f32.mrb[28].mxu1  ;;  %v10060_v0 = vpop.f32.mrb[29].mxu0  ;;  %10586 = vmatpush3.bf16.msra.mxu0 %v11111_v11  ;;  %9033 = vmatprep.mubr.bf16.mxu0 %v11117_v12 }
 0x2d7   : > { %v10061_v59 = vadd.f32 %v10060_v0, %v10059_v53  ;;  %v10100_v60 = vpop.f32.mrb[29].mxu1  ;;  %v10062_v63 = vpop.f32.mrb[30].mxu0  ;;  %10587 = vmatprep.subr.bf16.mxu0 %v11113_v61  ;;  %v11141_v0 = vld [vmem:[%s12456_s30 + $0x868] sm:$0xff]  }
 0x2d8   : > { %v10101_v62 = vadd.f32 %v10100_v60, %v10099_v56  ;;  %v10102_v4 = vpop.f32.mrb[30].mxu1  ;;  %v10063_v6 = vpop.f32.mrb[31].mxu0  ;;  %10628 = vmatpush3.bf16.msra.mxu1 %v11116_v7  ;;  %v11143_v63 = vld [vmem:[%s12456_s30 + $0x828] sm:$0xff]  }
 0x2d9   : > { %v8284_v3 = vadd.f32 %v10061_v59, %v12959_v18  ;;  %v10103_v9 = vpop.f32.mrb[31].mxu1  ;;  %v11119_v18 = vld [vmem:[%s13253_s0 + $0x19c] ss:$144 sps:$4 sm:$0xff]   ;;  %10629 = vmatprep.subr.bf16.mxu1 %v11124_v17 }
 0x2da   : > { %10588 = vmatpush3.bf16.msra.mxu0 %v11115_v5  ;;  %9097 = vmatprep.mubr.bf16.mxu1 %v11119_v18  ;;  %v11142_v59 = vld [vmem:[%s12456_s30 + $0x8e8] sm:$0xff]   ;;  %v5124_v6 = vld [vmem:[%s13253_s0 + $0x3d8] sm:$0xff]  ;;  %v11149_v18 = vld [vmem:[%s12456_s30 + $0x870] sm:$0xff]  }
 0x2db   : > { %v13055_v8 = vadd.f32 %v10101_v62, %v8284_v3  ;;  %9098 = vmatmul.mubr.bf16.gmra.mrb[116].mxu1 %v11122_v15  ;;  %10589 = vmatprep.subr.bf16.mxu0 %v11123_v25  ;;  %v11144_v3 = vld [vmem:[%s12456_s30 + $0x8a8] sm:$0xff]   ;;  %v9649_v12 = vcombine.high %v5124_v6, %v5124_v6 }
 0x2dc   : > { %10630 = vmatpush3.bf16.msra.mxu1 %v11126_v23  ;;  %9105 = vmatprep.mubr.bf16.mxu1 %v11133_v39  ;;  %v11153_v23 = vld [vmem:[%s12456_s30 + $0x878] sm:$0xff]   ;;  %v11163_v39 = vld [vmem:[%s13253_s0 + $0x1a4] ss:$144 sps:$4 sm:$0xff]  }
 0x2dd   : > { %v10121_v13 = vpop.f32.mrb[32].mxu0  ;;  %9034 = vmatmul.mubr.bf16.gmra.mrb[116].mxu0 %v11121_v14  ;;  %10631 = vmatprep.subr.bf16.mxu1 %v11128_v41 }
 0x2de   : > { %v10161_v16 = vpop.f32.mrb[32].mxu1  ;;  %v10122_v19 = vpop.f32.mrb[33].mxu0  ;;  %10590 = vmatpush3.bf16.msra.mxu0 %v11125_v20  ;;  %v11152_v20 = vld [vmem:[%s12456_s30 + $0x8b0] sm:$0xff]  }
 0x2df   : > { %v10123_v21 = vadd.f32 %v10122_v19, %v10121_v13  ;;  %v10162_v22 = vpop.f32.mrb[33].mxu1  ;;  %v10124_v26 = vpop.f32.mrb[34].mxu0  ;;  %10591 = vmatprep.subr.bf16.mxu0 %v11127_v28  ;;  %v9648_v13 = vcombine.low %v5124_v6, %v5124_v6  ;;  %v11154_v28 = vld [vmem:[%s12456_s30 + $0x8f8] sm:$0xff]  }
 0x2e0   : > { %v10163_v24 = vadd.f32 %v10162_v22, %v10161_v16  ;;  %v10164_v30 = vpop.f32.mrb[34].mxu1  ;;  %v10125_v31 = vpop.f32.mrb[35].mxu0  ;;  %10632 = vmatpush3.bf16.msra.mxu1 %v11130_v36  ;;  %v11151_v16 = vld [vmem:[%s12456_s30 + $0x830] sm:$0xff]  }
 0x2e1   : > { %v8388_v29 = vadd.f32 %v10123_v21, %v12982_v45  ;;  %v10126_v34 = vadd.f32 %v10125_v31, %v10124_v26  ;;  %v10165_v35 = vpop.f32.mrb[35].mxu1  ;;  %v11131_v45 = vld [vmem:[%s13253_s0 + $0x2b4] ss:$144 sps:$4 sm:$0xff]   ;;  %10633 = vmatprep.subr.bf16.mxu1 %v11138_v48  ;;  %v11157_v36 = vld [vmem:[%s13253_s0 + $0x80] ss:$144 sps:$4 sm:$0xff]  }
 0x2e2   : > { %v10166_v37 = vadd.f32 %v10165_v35, %v10164_v30  ;;  %10592 = vmatpush3.bf16.msra.mxu0 %v11129_v32  ;;  %9041 = vmatprep.mubr.bf16.mxu0 %v11131_v45  ;;  %v11155_v30 = vld [vmem:[%s12456_s30 + $0x838] sm:$0xff]  }
 0x2e3   : > { %v13077_v33 = vadd.f32 %v10163_v24, %v8388_v29  ;;  %v8391_v38 = vadd.f32 %v10126_v34, %v12999_v57  ;;  %v11137_v57 = vld [vmem:[%s12456_s30 + $0x860] sm:$0xff]   ;;  %9106 = vmatmul.mubr.bf16.gmra.mrb[120].mxu1 %v11136_v46  ;;  %v11156_v34 = vld [vmem:[%s12456_s30 + $0x8b8] sm:$0xff]  }
 0x2e4   : > { %10593 = vmatprep.subr.bf16.mxu0 %v11137_v57  ;;  %10634 = vmatpush3.bf16.msra.mxu1 %v11140_v55  ;;  %v11160_v45 = vld [vmem:[%s13253_s0 + $0x88] ss:$144 sps:$4 sm:$0xff]   ;;  %v11167_v55 = vld [vmem:[%s13253_s0 + $0x1a0] ss:$144 sps:$4 sm:$0xff]  }
 0x2e5   : > { %v10127_v40 = vpop.f32.mrb[36].mxu0  ;;  %v13093_v47 = vadd.f32 %v10166_v37, %v8391_v38  ;;  %9042 = vmatmul.mubr.bf16.gmra.mrb[120].mxu0 %v11135_v44  ;;  %10635 = vmatprep.subr.bf16.mxu1 %v11142_v59  ;;  %v11162_v38 = vld [vmem:[%s13253_s0 + $0x8c] ss:$144 sps:$4 sm:$0xff]  }
 0x2e6   : > { %v10167_v42 = vpop.f32.mrb[36].mxu1  ;;  %v10128_v54 = vpop.f32.mrb[37].mxu0  ;;  %10594 = vmatpush3.bf16.msra.mxu0 %v11139_v50  ;;  %9113 = vmatprep.mubr.bf16.mxu1 %v9649_v12 }
 0x2e7   : > { %v10129_v49 = vadd.f32 %v10128_v54, %v10127_v40  ;;  %v10168_v1 = vpop.f32.mrb[37].mxu1  ;;  %v10130_v53 = vpop.f32.mrb[38].mxu0  ;;  %10595 = vmatprep.subr.bf16.mxu0 %v11141_v0  ;;  %v11171_v0 = vld [vmem:[%s13253_s0 + $0x2cc] ss:$144 sps:$4 sm:$0xff]  }
 0x2e8   : > { %v10169_v51 = vadd.f32 %v10168_v1, %v10167_v42  ;;  %v10170_v11 = vpop.f32.mrb[38].mxu1  ;;  %v10131_v58 = vpop.f32.mrb[39].mxu0  ;;  %10636 = vmatpush3.bf16.msra.mxu1 %v11144_v3 }
 0x2e9   : > { %v8396_v56 = vadd.f32 %v10129_v49, %v13008_v10  ;;  %v10132_v61 = vadd.f32 %v10131_v58, %v10130_v53  ;;  %v10171_v62 = vpop.f32.mrb[39].mxu1  ;;  %v5123_v10 = vld [vmem:[%s13253_s0 + $0x3d0] sm:$0xff] }
 0x2ea   : > { %v10172_v2 = vadd.f32 %v10171_v62, %v10170_v11  ;;  %10596 = vmatpush3.bf16.msra.mxu0 %v11143_v63  ;;  %v9647_v5 = vcombine.high %v5123_v10, %v5123_v10  ;;  %v9646_v7 = vcombine.low %v5123_v10, %v5123_v10  ;;  %v11169_v11 = vld [vmem:[%s13253_s0 + $0x2c4] ss:$144 sps:$4 sm:$0xff]   ;;  %v5126_v10 = vld [vmem:[%s13253_s0 + $0x3e8] sm:$0xff] }
 0x2eb   : > { %v13102_v60 = vadd.f32 %v10169_v51, %v8396_v56  ;;  %v8399_v4 = vadd.f32 %v10132_v61, %v13020_v27  ;;  %v11150_v27 = vld [vmem:[%s12456_s30 + $0x8f0] sm:$0xff]   ;;  %9114 = vmatmul.mubr.bf16.gmra.mrb[124].mxu1 %v9648_v13  ;;  %10597 = vmatprep.subr.bf16.mxu0 %v11149_v18  ;;  %v11168_v56 = vld [vmem:[%s13253_s0 + $0x1a8] ss:$144 sps:$4 sm:$0xff]   ;;  %v5125_v62 = vld [vmem:[%s13253_s0 + $0x3e0] sm:$0xff] }
 0x2ec   : > { %9049 = vmatprep.mubr.bf16.mxu0 %v9647_v5  ;;  %10637 = vmatprep.subr.bf16.mxu1 %v11150_v27  ;;  %v11174_v18 = vld [vmem:[%s13253_s0 + $0x2c8] ss:$144 sps:$4 sm:$0xff]  }
 0x2ed   : > { %v10133_v9 = vpop.f32.mrb[40].mxu0  ;;  %v13114_v14 = vadd.f32 %v10172_v2, %v8399_v4  ;;  %9050 = vmatmul.mubr.bf16.gmra.mrb[124].mxu0 %v9646_v7  ;;  %10638 = vmatpush3.bf16.msra.mxu1 %v11152_v20  ;;  %v11173_v7 = vld [vmem:[%s13253_s0 + $0x2c0] ss:$144 sps:$4 sm:$0xff]  }
 0x2ee   : > { %v10173_v15 = vpop.f32.mrb[40].mxu1  ;;  %v10134_v25 = vpop.f32.mrb[41].mxu0  ;;  %10598 = vmatpush3.bf16.msra.mxu0 %v11151_v16  ;;  %10639 = vmatprep.subr.bf16.mxu1 %v11154_v28  ;;  %v9652_v28 = vcombine.low %v5126_v10, %v5126_v10 }
 0x2ef   : > { %v10135_v17 = vadd.f32 %v10134_v25, %v10133_v9  ;;  %v10174_v19 = vpop.f32.mrb[41].mxu1  ;;  %v10136_v22 = vpop.f32.mrb[42].mxu0  ;;  %10599 = vmatprep.subr.bf16.mxu0 %v11153_v23  ;;  %9217 = vmatprep.mubr.bf16.mxu1 %v11162_v38  ;;  %v9653_v25 = vcombine.high %v5126_v10, %v5126_v10 }
 0x2f0   : > { %v10175_v21 = vadd.f32 %v10174_v19, %v10173_v15  ;;  %v10176_v26 = vpop.f32.mrb[42].mxu1  ;;  %v10137_v29 = vpop.f32.mrb[43].mxu0  ;;  %v9651_v15 = vcombine.high %v5125_v62, %v5125_v62 }
 0x2f1   : > { %v8404_v24 = vadd.f32 %v10135_v17, %v13029_v43  ;;  %v10138_v31 = vadd.f32 %v10137_v29, %v10136_v22  ;;  %v10177_v32 = vpop.f32.mrb[43].mxu1  ;;  %v11159_v43 = vld [vmem:[%s13253_s0 + $0x84] ss:$144 sps:$4 sm:$0xff]   ;;  %10640 = vmatpush3.bf16.msra.mxu1 %v11156_v34  ;;  %v9650_v22 = vcombine.low %v5125_v62, %v5125_v62 }
 0x2f2   : > { %v10178_v35 = vadd.f32 %v10177_v32, %v10176_v26  ;;  %10600 = vmatpush3.bf16.msra.mxu0 %v11155_v30  ;;  %9153 = vmatprep.mubr.bf16.mxu0 %v11159_v43 }
 0x2f3   : > { %v13123_v41 = vadd.f32 %v10175_v21, %v8404_v24  ;;  %v8407_v37 = vadd.f32 %v10138_v31, %v13045_v52  ;;  %v11165_v52 = vld [vmem:[%s13253_s0 + $0x1ac] ss:$144 sps:$4 sm:$0xff]  }
 0x2f4   : > { %9218 = vmatmul.mubr.bf16.vlgmr.msra.gmra.mrb[128].mxu1 %v11160_v45 }
 0x2f5   : > { %v13142_v40 = vadd.f32 %v10178_v35, %v8407_v37  ;;  %v10139_v42 = vpop.f32.mrb[44].mxu0  ;;  %9154 = vmatmul.mubr.bf16.vlgmr.msra.gmra.mrb[128].mxu0 %v11157_v36  ;;  %9225 = vmatprep.mubr.bf16.mxu1 %v11165_v52 }
 0x2f6   : > { %v10179_v44 = vpop.f32.mrb[44].mxu1  ;;  %v10140_v46 = vpop.f32.mrb[45].mxu0  ;;  %9161 = vmatprep.mubr.bf16.mxu0 %v11163_v39 }
 0x2f7   : > { %v10180_v57 = vpop.f32.mrb[45].mxu1  ;;  %v10141_v54 = vadd.f32 %v10140_v46, %v10139_v42  ;;  %v10142_v49 = vpop.f32.mrb[46].mxu0 }
 0x2f8   : > { %v10181_v48 = vadd.f32 %v10180_v57, %v10179_v44  ;;  %v10182_v1 = vpop.f32.mrb[46].mxu1  ;;  %v10143_v50 = vpop.f32.mrb[47].mxu0 }
 0x2f9   : > { %v8412_v51 = vadd.f32 %v10141_v54, %v13055_v8  ;;  %v10183_v53 = vpop.f32.mrb[47].mxu1 }
 0x2fb   : > { %v13160_v58 = vadd.f32 %v10181_v48, %v8412_v51 }
 0x2fc   : > { %9226 = vmatmul.mubr.bf16.gmra.mrb[132].mxu1 %v11168_v56 }
 0x2fd   : > { %9162 = vmatmul.mubr.bf16.gmra.mrb[132].mxu0 %v11167_v55  ;;  %v10201_v8 = vpop.f32.mrb[48].mxu0  ;;  %9233 = vmatprep.mubr.bf16.mxu1 %v11171_v0 }
 0x2fe   : > { %9169 = vmatprep.mubr.bf16.mxu0 %v11169_v11  ;;  %v10241_v59 = vpop.f32.mrb[48].mxu1  ;;  %v10202_v61 = vpop.f32.mrb[49].mxu0 }
 0x2ff   : > { %v10203_v63 = vadd.f32 %v10202_v61, %v10201_v8  ;;  %v10242_v2 = vpop.f32.mrb[49].mxu1  ;;  %v10204_v3 = vpop.f32.mrb[50].mxu0 }
 0x300   : > { %v10243_v4 = vadd.f32 %v10242_v2, %v10241_v59  ;;  %v10244_v5 = vpop.f32.mrb[50].mxu1  ;;  %v10205_v6 = vpop.f32.mrb[51].mxu0 }
 0x301   : > { %v8516_v9 = vadd.f32 %v10203_v63, %v13077_v33  ;;  %v10206_v12 = vadd.f32 %v10205_v6, %v10204_v3  ;;  %v10245_v13 = vpop.f32.mrb[51].mxu1 }
 0x302   : > { %v10246_v27 = vadd.f32 %v10245_v13, %v10244_v5 }
 0x303   : > { %v13175_v16 = vadd.f32 %v10243_v4, %v8516_v9  ;;  %v8519_v17 = vadd.f32 %v10206_v12, %v13093_v47 }
 0x304   : > { %9234 = vmatmul.mubr.bf16.gmra.mrb[136].mxu1 %v11174_v18 }
 0x305   : > { %9170 = vmatmul.mubr.bf16.gmra.mrb[136].mxu0 %v11173_v7  ;;  %v13178_v19 = vadd.f32 %v10246_v27, %v8519_v17  ;;  %9241 = vmatprep.mubr.bf16.mxu1 %v9653_v25  ;;  %v10207_v33 = vpop.f32.mrb[52].mxu0 }
 0x306   : > { %9177 = vmatprep.mubr.bf16.mxu0 %v9651_v15  ;;  %v10247_v20 = vpop.f32.mrb[52].mxu1  ;;  %v10208_v21 = vpop.f32.mrb[53].mxu0 }
 0x307   : > { %v10209_v23 = vadd.f32 %v10208_v21, %v10207_v33  ;;  %v10248_v24 = vpop.f32.mrb[53].mxu1  ;;  %v10210_v26 = vpop.f32.mrb[54].mxu0 }
 0x308   : > { %v10249_v29 = vadd.f32 %v10248_v24, %v10247_v20  ;;  %v10250_v30 = vpop.f32.mrb[54].mxu1  ;;  %v10211_v31 = vpop.f32.mrb[55].mxu0 }
 0x309   : > { %v8524_v32 = vadd.f32 %v10209_v23, %v13102_v60  ;;  %v10212_v47 = vadd.f32 %v10211_v31, %v10210_v26  ;;  %v10251_v34 = vpop.f32.mrb[55].mxu1 }
 0x30a   : > { %v10252_v35 = vadd.f32 %v10251_v34, %v10250_v30 }
 0x30b   : > { %v8588_v36 = vadd.f32 %v10249_v29, %v8524_v32  ;;  %v8527_v43 = vadd.f32 %v10212_v47, %v13114_v14 }
 0x30c   : > { %9242 = vmatmul.mubr.bf16.gmra.mrb[140].mxu1 %v9652_v28 }
 0x30d   : > { %9178 = vmatmul.mubr.bf16.gmra.mrb[140].mxu0 %v9650_v22  ;;  %v8591_v37 = vadd.f32 %v10252_v35, %v8527_v43  ;;  %v10213_v45 = vpop.f32.mrb[56].mxu0 }
 0x30e   : > { %v10253_v38 = vpop.f32.mrb[56].mxu1  ;;  %v10214_v39 = vpop.f32.mrb[57].mxu0 }
 0x30f   : > { %v10215_v42 = vadd.f32 %v10214_v39, %v10213_v45  ;;  %v10254_v44 = vpop.f32.mrb[57].mxu1  ;;  %v10216_v52 = vpop.f32.mrb[58].mxu0 }
 0x310   : > { %v10255_v46 = vadd.f32 %v10254_v44, %v10253_v38  ;;  %v10256_v57 = vpop.f32.mrb[58].mxu1  ;;  %v10217_v54 = vpop.f32.mrb[59].mxu0 }
 0x311   : > { %v8532_v60 = vadd.f32 %v10215_v42, %v13123_v41  ;;  %v10218_v48 = vadd.f32 %v10217_v54, %v10216_v52  ;;  %v10257_v49 = vpop.f32.mrb[59].mxu1 }
 0x312   : > { %v10258_v1 = vadd.f32 %v10257_v49, %v10256_v57 }
 0x313   : > { %v8596_v50 = vadd.f32 %v10255_v46, %v8532_v60  ;;  %v8535_v51 = vadd.f32 %v10218_v48, %v13142_v40 }
 0x315   : > { %v8599_v14 = vadd.f32 %v10258_v1, %v8535_v51  ;;  %v10219_v53 = vpop.f32.mrb[60].mxu0 }
 0x316   : > { %v10259_v55 = vpop.f32.mrb[60].mxu1  ;;  %v10220_v56 = vpop.f32.mrb[61].mxu0 }
 0x317   : > { %v10260_v11 = vpop.f32.mrb[61].mxu1  ;;  %v10221_v0 = vadd.f32 %v10220_v56, %v10219_v53  ;;  %v10222_v59 = vpop.f32.mrb[62].mxu0 }
 0x318   : > { %v10261_v8 = vadd.f32 %v10260_v11, %v10259_v55  ;;  %v10262_v61 = vpop.f32.mrb[62].mxu1  ;;  %v10223_v62 = vpop.f32.mrb[63].mxu0 }
 0x319   : > { %v10263_v63 = vpop.f32.mrb[63].mxu1  ;;  %v8540_v2 = vadd.f32 %v10221_v0, %v13160_v58 }
 0x31b   : > { %v8604_v41 = vadd.f32 %v10261_v8, %v8540_v2 }
 0x31d   : > { %v10281_v3 = vpop.f32.mrb[64].mxu0 }
 0x31e   : > { %v10321_v10 = vpop.f32.mrb[64].mxu1  ;;  %v10282_v4 = vpop.f32.mrb[65].mxu0 }
 0x31f   : > { %v10283_v5 = vadd.f32 %v10282_v4, %v10281_v3  ;;  %v10322_v6 = vpop.f32.mrb[65].mxu1  ;;  %v10284_v40 = vpop.f32.mrb[66].mxu0 }
 0x320   : > { %v10323_v7 = vadd.f32 %v10322_v6, %v10321_v10  ;;  %v10324_v9 = vpop.f32.mrb[66].mxu1  ;;  %v10285_v12 = vpop.f32.mrb[67].mxu0 }
 0x321   : > { %v8644_v13 = vadd.f32 %v10283_v5, %v13175_v16  ;;  %v10286_v18 = vadd.f32 %v10285_v12, %v10284_v40  ;;  %v10325_v15 = vpop.f32.mrb[67].mxu1 }
 0x322   : > { %v10326_v27 = vadd.f32 %v10325_v15, %v10324_v9 }
 0x323   : > { %v8708_v25 = vadd.f32 %v10323_v7, %v8644_v13  ;;  %v8647_v17 = vadd.f32 %v10286_v18, %v13178_v19 }
 0x325   : > { %v8711_v33 = vadd.f32 %v10326_v27, %v8647_v17  ;;  %v10287_v58 = vpop.f32.mrb[68].mxu0 }
 0x326   : > { %v10327_v20 = vpop.f32.mrb[68].mxu1  ;;  %v10288_v21 = vpop.f32.mrb[69].mxu0 }
 0x327   : > { %v10289_v22 = vadd.f32 %v10288_v21, %v10287_v58  ;;  %v10328_v23 = vpop.f32.mrb[69].mxu1  ;;  %v10290_v24 = vpop.f32.mrb[70].mxu0 }
 0x328   : > { %v10329_v26 = vadd.f32 %v10328_v23, %v10327_v20  ;;  %v10330_v28 = vpop.f32.mrb[70].mxu1  ;;  %v10291_v29 = vpop.f32.mrb[71].mxu0 }
 0x329   : > { %v8652_v30 = vadd.f32 %v10289_v22, %v8588_v36  ;;  %v10292_v31 = vadd.f32 %v10291_v29, %v10290_v24  ;;  %v10331_v32 = vpop.f32.mrb[71].mxu1 }
 0x32a   : > { %v10332_v16 = vadd.f32 %v10331_v32, %v10330_v28 }
 0x32b   : > { %v8716_v47 = vadd.f32 %v10329_v26, %v8652_v30  ;;  %v8655_v34 = vadd.f32 %v10292_v31, %v8591_v37 }
 0x32d   : > { %v8719_v35 = vadd.f32 %v10332_v16, %v8655_v34  ;;  %v10293_v43 = vpop.f32.mrb[72].mxu0 }
 0x32e   : > { %v10333_v45 = vpop.f32.mrb[72].mxu1  ;;  %v10294_v19 = vpop.f32.mrb[73].mxu0 }
 0x32f   : > { %v10334_v38 = vpop.f32.mrb[73].mxu1  ;;  %v10295_v39 = vadd.f32 %v10294_v19, %v10293_v43  ;;  %v10296_v44 = vpop.f32.mrb[74].mxu0 }
 0x330   : > { %v10335_v42 = vadd.f32 %v10334_v38, %v10333_v45  ;;  %v10336_v52 = vpop.f32.mrb[74].mxu1  ;;  %v10297_v46 = vpop.f32.mrb[75].mxu0 }
 0x331   : > { %v10337_v57 = vpop.f32.mrb[75].mxu1  ;;  %v8660_v54 = vadd.f32 %v10295_v39, %v8596_v50  ;;  %v10298_v60 = vadd.f32 %v10297_v46, %v10296_v44 }
 0x332   : > { %v10338_v48 = vadd.f32 %v10337_v57, %v10336_v52 }
 0x333   : > { %v8724_v36 = vadd.f32 %v10335_v42, %v8660_v54  ;;  %v8663_v49 = vadd.f32 %v10298_v60, %v8599_v14 }
 0x335   : > { %v8727_v1 = vadd.f32 %v10338_v48, %v8663_v49  ;;  %v10299_v51 = vpop.f32.mrb[76].mxu0 }
 0x336   : > { %v10339_v53 = vpop.f32.mrb[76].mxu1  ;;  %v10300_v37 = vpop.f32.mrb[77].mxu0 }
 0x337   : > { %v10301_v55 = vadd.f32 %v10300_v37, %v10299_v51  ;;  %v10340_v56 = vpop.f32.mrb[77].mxu1  ;;  %v10302_v11 = vpop.f32.mrb[78].mxu0 }
 0x338   : > { %v10341_v0 = vadd.f32 %v10340_v56, %v10339_v53  ;;  %v10342_v8 = vpop.f32.mrb[78].mxu1  ;;  %v10303_v59 = vpop.f32.mrb[79].mxu0 }
 0x339   : > { %v8668_v61 = vadd.f32 %v10301_v55, %v8604_v41  ;;  %v10343_v62 = vpop.f32.mrb[79].mxu1 }
 0x33b   : > { %v8732_v63 = vadd.f32 %v10341_v0, %v8668_v61 }
 0x33d   : > { %v10361_v2 = vpop.f32.mrb[80].mxu0 }
 0x33e   : > { %v10401_v3 = vpop.f32.mrb[80].mxu1  ;;  %v10362_v50 = vpop.f32.mrb[81].mxu0 }
 0x33f   : > { %v10363_v10 = vadd.f32 %v10362_v50, %v10361_v2  ;;  %v10402_v4 = vpop.f32.mrb[81].mxu1  ;;  %v10364_v5 = vpop.f32.mrb[82].mxu0 }
 0x340   : > { %v10403_v14 = vadd.f32 %v10402_v4, %v10401_v3  ;;  %v10404_v6 = vpop.f32.mrb[82].mxu1  ;;  %v10365_v40 = vpop.f32.mrb[83].mxu0 }
 0x341   : > { %v8772_v7 = vadd.f32 %v10363_v10, %v8708_v25  ;;  %v10366_v9 = vadd.f32 %v10365_v40, %v10364_v5  ;;  %v10405_v12 = vpop.f32.mrb[83].mxu1 }
 0x342   : > { %v10406_v13 = vadd.f32 %v10405_v12, %v10404_v6 }
 0x343   : > { %v8836_v18 = vadd.f32 %v10403_v14, %v8772_v7  ;;  %v8775_v15 = vadd.f32 %v10366_v9, %v8711_v33 }
 0x345   : > { %v8839_v27 = vadd.f32 %v10406_v13, %v8775_v15  ;;  %v10367_v17 = vpop.f32.mrb[84].mxu0 }
 0x346   : > { %v10407_v41 = vpop.f32.mrb[84].mxu1  ;;  %v10368_v58 = vpop.f32.mrb[85].mxu0 }
 0x347   : > { %v10408_v20 = vpop.f32.mrb[85].mxu1  ;;  %v10369_v21 = vadd.f32 %v10368_v58, %v10367_v17  ;;  %v10370_v23 = vpop.f32.mrb[86].mxu0 }
 0x348   : > { %v10409_v22 = vadd.f32 %v10408_v20, %v10407_v41  ;;  %v10410_v24 = vpop.f32.mrb[86].mxu1  ;;  %v10371_v26 = vpop.f32.mrb[87].mxu0 }
 0x349   : > { %v10411_v28 = vpop.f32.mrb[87].mxu1  ;;  %v8780_v29 = vadd.f32 %v10369_v21, %v8716_v47  ;;  %v10372_v30 = vadd.f32 %v10371_v26, %v10370_v23 }
 0x34a   : > { %v10412_v31 = vadd.f32 %v10411_v28, %v10410_v24 }
 0x34b   : > { %v8844_v25 = vadd.f32 %v10409_v22, %v8780_v29  ;;  %v8783_v32 = vadd.f32 %v10372_v30, %v8719_v35 }
 0x34d   : > { %v8847_v16 = vadd.f32 %v10412_v31, %v8783_v32  ;;  %v10373_v34 = vpop.f32.mrb[88].mxu0 }
 0x34e   : > { %v10413_v43 = vpop.f32.mrb[88].mxu1  ;;  %v10374_v33 = vpop.f32.mrb[89].mxu0 }
 0x34f   : > { %v10375_v45 = vadd.f32 %v10374_v33, %v10373_v34  ;;  %v10414_v19 = vpop.f32.mrb[89].mxu1  ;;  %v10376_v38 = vpop.f32.mrb[90].mxu0 }
 0x350   : > { %v10415_v39 = vadd.f32 %v10414_v19, %v10413_v43  ;;  %v10416_v42 = vpop.f32.mrb[90].mxu1  ;;  %v10377_v44 = vpop.f32.mrb[91].mxu0 }
 0x351   : > { %v8788_v52 = vadd.f32 %v10375_v45, %v8724_v36  ;;  %v10378_v46 = vadd.f32 %v10377_v44, %v10376_v38  ;;  %v10417_v57 = vpop.f32.mrb[91].mxu1 }
 0x352   : > { %v10418_v54 = vadd.f32 %v10417_v57, %v10416_v42 }
 0x353   : > { %v8852_v60 = vadd.f32 %v10415_v39, %v8788_v52  ;;  %v8791_v47 = vadd.f32 %v10378_v46, %v8727_v1 }
 0x355   : > { %v8855_v48 = vadd.f32 %v10418_v54, %v8791_v47  ;;  %v10379_v49 = vpop.f32.mrb[92].mxu0 }
 0x356   : > { %v10419_v51 = vpop.f32.mrb[92].mxu1  ;;  %v10380_v35 = vpop.f32.mrb[93].mxu0 }
 0x357   : > { %v10420_v53 = vpop.f32.mrb[93].mxu1  ;;  %v10381_v37 = vadd.f32 %v10380_v35, %v10379_v49  ;;  %v10382_v56 = vpop.f32.mrb[94].mxu0 }
 0x358   : > { %v10421_v55 = vadd.f32 %v10420_v53, %v10419_v51  ;;  %v10422_v11 = vpop.f32.mrb[94].mxu1  ;;  %v10383_v0 = vpop.f32.mrb[95].mxu0 }
 0x359   : > { %v10423_v8 = vpop.f32.mrb[95].mxu1  ;;  %v8796_v59 = vadd.f32 %v10381_v37, %v8732_v63 }
 0x35b   : > { %v8860_v61 = vadd.f32 %v10421_v55, %v8796_v59 }
 0x377   : > { %v10441_v62 = vpop.f32.mrb[96].mxu0  ;;  %v10481_v36 = vpop.f32.mrb[96].mxu1 }
 0x378   : > { %v10442_v2 = vpop.f32.mrb[97].mxu0  ;;  %v10482_v50 = vpop.f32.mrb[97].mxu1 }
 0x379   : > { %v10443_v3 = vadd.f32 %v10442_v2, %v10441_v62  ;;  %v10444_v10 = vpop.f32.mrb[98].mxu0  ;;  %v10483_v1 = vadd.f32 %v10482_v50, %v10481_v36  ;;  %v10484_v4 = vpop.f32.mrb[98].mxu1 }
 0x37a   : > { %v10445_v5 = vpop.f32.mrb[99].mxu0  ;;  %v10485_v40 = vpop.f32.mrb[99].mxu1 }
 0x37b   : > { %v8900_v14 = vadd.f32 %v10443_v3, %v8836_v18  ;;  %v10446_v6 = vadd.f32 %v10445_v5, %v10444_v10  ;;  %v10486_v7 = vadd.f32 %v10485_v40, %v10484_v4 }
 0x37d   : > { %v8964_v9 = vadd.f32 %v10483_v1, %v8900_v14  ;;  %v8903_v12 = vadd.f32 %v10446_v6, %v8839_v27 }
 0x37f   : > { %v8967_v13 = vadd.f32 %v10486_v7, %v8903_v12  ;;  %v10447_v15 = vpop.f32.mrb[100].mxu0 }
 0x380   : > { %v10448_v63 = vpop.f32.mrb[101].mxu0 }
 0x381   : > { %v10487_v17 = vpop.f32.mrb[100].mxu1  ;;  %v10449_v41 = vadd.f32 %v10448_v63, %v10447_v15  ;;  %v10450_v20 = vpop.f32.mrb[102].mxu0 }
 0x382   : > { %v10488_v58 = vpop.f32.mrb[101].mxu1  ;;  %v10451_v23 = vpop.f32.mrb[103].mxu0 }
 0x383   : > { %v10489_v21 = vadd.f32 %v10488_v58, %v10487_v17  ;;  %v10490_v22 = vpop.f32.mrb[102].mxu1  ;;  %v8908_v24 = vadd.f32 %v10449_v41, %v8844_v25  ;;  %v10452_v26 = vadd.f32 %v10451_v23, %v10450_v20 }
 0x384   : > { %v10491_v28 = vpop.f32.mrb[103].mxu1 }
 0x385   : > { %v10492_v29 = vadd.f32 %v10491_v28, %v10490_v22  ;;  %v8972_v18 = vadd.f32 %v10489_v21, %v8908_v24  ;;  %v8911_v30 = vadd.f32 %v10452_v26, %v8847_v16 }
 0x387   : > { %v8975_v31 = vadd.f32 %v10492_v29, %v8911_v30 }
 0x389   : > { %v10493_v34 = vpop.f32.mrb[104].mxu1 }
 0x38a   : > { %v10494_v33 = vpop.f32.mrb[105].mxu1 }
 0x38b   : > { %v10495_v19 = vadd.f32 %v10494_v33, %v10493_v34  ;;  %v10496_v38 = vpop.f32.mrb[106].mxu1 }
 0x38c   : > { %v10497_v52 = vpop.f32.mrb[107].mxu1 }
 0x38d   : > { %v10498_v46 = vadd.f32 %v10497_v52, %v10496_v38 }
 0x391   : > { %v10499_v49 = vpop.f32.mrb[108].mxu1 }
 0x392   : > { %v10500_v51 = vpop.f32.mrb[109].mxu1 }
 0x393   : > { %v10501_v53 = vadd.f32 %v10500_v51, %v10499_v49  ;;  %v10502_v55 = vpop.f32.mrb[110].mxu1 }
 0x394   : > { %v10503_v11 = vpop.f32.mrb[111].mxu1 }
 0x396   : > { %v10453_v32 = vpop.f32.mrb[104].mxu0 }
 0x397   : > { %v10454_v27 = vpop.f32.mrb[105].mxu0 }
 0x398   : > { %v10455_v43 = vadd.f32 %v10454_v27, %v10453_v32  ;;  %v10456_v45 = vpop.f32.mrb[106].mxu0 }
 0x399   : > { %v10457_v39 = vpop.f32.mrb[107].mxu0 }
 0x39a   : > { %v8916_v42 = vadd.f32 %v10455_v43, %v8852_v60  ;;  %v10458_v44 = vadd.f32 %v10457_v39, %v10456_v45 }
 0x39c   : > { %v8980_v25 = vadd.f32 %v10495_v19, %v8916_v42  ;;  %v8919_v57 = vadd.f32 %v10458_v44, %v8855_v48 }
 0x39e   : > { %v8983_v54 = vadd.f32 %v10498_v46, %v8919_v57 }
 0x3a0   : > { %v10459_v47 = vpop.f32.mrb[108].mxu0 }
 0x3a1   : > { %v10460_v16 = vpop.f32.mrb[109].mxu0 }
 0x3a2   : > { %v10461_v35 = vadd.f32 %v10460_v16, %v10459_v47  ;;  %v10462_v37 = vpop.f32.mrb[110].mxu0 }
 0x3a3   : > { %v10463_v56 = vpop.f32.mrb[111].mxu0 }
 0x3a4   : > { %v8924_v0 = vadd.f32 %v10461_v35, %v8860_v61 }
 0x3a6   : > { %v8988_v8 = vadd.f32 %v10501_v53, %v8924_v0  ;;  %v10561_v60 = vpop.f32.mrb[112].mxu1 }
 0x3a7   : > { %v10562_v2 = vpop.f32.mrb[113].mxu1 }
 0x3a8   : > { %v10521_v59 = vpop.f32.mrb[112].mxu0  ;;  %v10563_v48 = vadd.f32 %v10562_v2, %v10561_v60  ;;  %v10564_v50 = vpop.f32.mrb[114].mxu1 }
 0x3a9   : > { %v10522_v62 = vpop.f32.mrb[113].mxu0  ;;  %v10565_v5 = vpop.f32.mrb[115].mxu1 }
 0x3aa   : > { %v10523_v36 = vadd.f32 %v10522_v62, %v10521_v59  ;;  %v10524_v3 = vpop.f32.mrb[114].mxu0  ;;  %v10566_v14 = vadd.f32 %v10565_v5, %v10564_v50 }
 0x3ab   : > { %v10525_v10 = vpop.f32.mrb[115].mxu0 }
 0x3ac   : > { %v9028_v1 = vadd.f32 %v10523_v36, %v8964_v9  ;;  %v10526_v4 = vadd.f32 %v10525_v10, %v10524_v3 }
 0x3ae   : > { %v9092_v6 = vadd.f32 %v10563_v48, %v9028_v1  ;;  %v9031_v40 = vadd.f32 %v10526_v4, %v8967_v13  ;;  %v10567_v15 = vpop.f32.mrb[116].mxu1 }
 0x3af   : > { %v10568_v63 = vpop.f32.mrb[117].mxu1 }
 0x3b0   : > { %v9095_v7 = vadd.f32 %v10566_v14, %v9031_v40  ;;  %v10527_v12 = vpop.f32.mrb[116].mxu0  ;;  %v10569_v58 = vadd.f32 %v10568_v63, %v10567_v15  ;;  %v10570_v20 = vpop.f32.mrb[118].mxu1 }
 0x3b1   : > { %v10528_v61 = vpop.f32.mrb[117].mxu0  ;;  %v10571_v24 = vpop.f32.mrb[119].mxu1 }
 0x3b2   : > { %v10529_v17 = vadd.f32 %v10528_v61, %v10527_v12  ;;  %v10530_v41 = vpop.f32.mrb[118].mxu0  ;;  %v10572_v26 = vadd.f32 %v10571_v24, %v10570_v20 }
 0x3b3   : > { %v10531_v21 = vpop.f32.mrb[119].mxu0 }
 0x3b4   : > { %v9036_v22 = vadd.f32 %v10529_v17, %v8972_v18  ;;  %v10532_v23 = vadd.f32 %v10531_v21, %v10530_v41 }
 0x3b6   : > { %v9100_v9 = vadd.f32 %v10569_v58, %v9036_v22  ;;  %v9039_v28 = vadd.f32 %v10532_v23, %v8975_v31  ;;  %v10573_v13 = vpop.f32.mrb[120].mxu1 }
 0x3b7   : > { %v10574_v34 = vpop.f32.mrb[121].mxu1 }
 0x3b8   : > { %v13187_v29 = vadd.f32 %v10572_v26, %v9039_v28  ;;  %v10533_v30 = vpop.f32.mrb[120].mxu0  ;;  %v10575_v43 = vadd.f32 %v10574_v34, %v10573_v13  ;;  %v10576_v45 = vpop.f32.mrb[122].mxu1 }
 0x3b9   : > { %v10534_v32 = vpop.f32.mrb[121].mxu0  ;;  %v10577_v38 = vpop.f32.mrb[123].mxu1 }
 0x3ba   : > { %v10535_v27 = vadd.f32 %v10534_v32, %v10533_v30  ;;  %v10536_v33 = vpop.f32.mrb[122].mxu0  ;;  %v10578_v18 = vadd.f32 %v10577_v38, %v10576_v45 }
 0x3bb   : > { %v10537_v19 = vpop.f32.mrb[123].mxu0 }
 0x3bc   : > { %v9044_v39 = vadd.f32 %v10535_v27, %v8980_v25  ;;  %v10538_v42 = vadd.f32 %v10537_v19, %v10536_v33 }
 0x3be   : > { %v13189_v44 = vadd.f32 %v10575_v43, %v9044_v39  ;;  %v9047_v52 = vadd.f32 %v10538_v42, %v8983_v54  ;;  %v10579_v57 = vpop.f32.mrb[124].mxu1 }
 0x3bf   : > { %v10580_v16 = vpop.f32.mrb[125].mxu1 }
 0x3c0   : > { %v13191_v46 = vadd.f32 %v10578_v18, %v9047_v52  ;;  %v10539_v31 = vpop.f32.mrb[124].mxu0  ;;  %v10581_v35 = vadd.f32 %v10580_v16, %v10579_v57  ;;  %v10582_v53 = vpop.f32.mrb[126].mxu1 }
 0x3c1   : > { %v10540_v47 = vpop.f32.mrb[125].mxu0  ;;  %v10583_v56 = vpop.f32.mrb[127].mxu1 }
 0x3c2   : > { %v10541_v49 = vadd.f32 %v10540_v47, %v10539_v31  ;;  %v10542_v51 = vpop.f32.mrb[126].mxu0 }
 0x3c3   : > { %v10543_v37 = vpop.f32.mrb[127].mxu0 }
 0x3c4   : > { %v9052_v55 = vadd.f32 %v10541_v49, %v8988_v8 }
 0x3c6   : > { %v13193_v11 = vadd.f32 %v10581_v35, %v9052_v55 }
 0x3c7   : > { %v10641_v0 = vpop.f32.mrb[128].mxu1 }
 0x3c8   : > { %v10601_v25 = vpop.f32.mrb[128].mxu0  ;;  %v10642_v54 = vpop.f32.mrb[129].mxu1 }
 0x3c9   : > { %v10602_v59 = vpop.f32.mrb[129].mxu0  ;;  %v10643_v36 = vadd.f32 %v10642_v54, %v10641_v0  ;;  %v10644_v2 = vpop.f32.mrb[130].mxu1 }
 0x3ca   : > { %v10603_v60 = vadd.f32 %v10602_v59, %v10601_v25  ;;  %v10604_v62 = vpop.f32.mrb[130].mxu0  ;;  %v10645_v10 = vpop.f32.mrb[131].mxu1 }
 0x3cb   : > { %v10605_v3 = vpop.f32.mrb[131].mxu0  ;;  %v10646_v1 = vadd.f32 %v10645_v10, %v10644_v2 }
 0x3cc   : > { %v9156_v48 = vadd.f32 %v10603_v60, %v9092_v6  ;;  %v10606_v50 = vadd.f32 %v10605_v3, %v10604_v62 }
 0x3ce   : > { %v13195_v4 = vadd.f32 %v10643_v36, %v9156_v48  ;;  %v9159_v5 = vadd.f32 %v10606_v50, %v9095_v7 }
 0x3cf   : > { %v10647_v40 = vpop.f32.mrb[132].mxu1 }
 0x3d0   : > { %v13197_v8 = vadd.f32 %v10646_v1, %v9159_v5  ;;  %v10607_v14 = vpop.f32.mrb[132].mxu0  ;;  %v9261_v15 = vmul.f32 %v13195_v4, %v13195_v4  ;;  %v10648_v63 = vpop.f32.mrb[133].mxu1 }
 0x3d1   : > { %v10608_v12 = vpop.f32.mrb[133].mxu0  ;;  %v10649_v58 = vadd.f32 %v10648_v63, %v10647_v40  ;;  %v10650_v20 = vpop.f32.mrb[134].mxu1 }
 0x3d2   : > { %v9249_v61 = vadd.f32 %v13197_v8, %v13195_v4  ;;  %v9262_v6 = vmul.f32 %v13197_v8, %v13197_v8  ;;  %v10609_v17 = vadd.f32 %v10608_v12, %v10607_v14  ;;  %v10610_v41 = vpop.f32.mrb[134].mxu0  ;;  %v10651_v24 = vpop.f32.mrb[135].mxu1 }
 0x3d3   : > { %v10611_v7 = vpop.f32.mrb[135].mxu0  ;;  %v10652_v26 = vadd.f32 %v10651_v24, %v10650_v20 }
 0x3d4   : > { %v9268_v21 = vadd.f32 %v9262_v6, %v9261_v15  ;;  %v9164_v22 = vadd.f32 %v10609_v17, %v9100_v9  ;;  %v10612_v23 = vadd.f32 %v10611_v7, %v10610_v41 }
 0x3d6   : > { %v13205_v28 = vadd.f32 %v10649_v58, %v9164_v22  ;;  %v9167_v30 = vadd.f32 %v10612_v23, %v13187_v29 }
 0x3d7   : > { %v10653_v43 = vpop.f32.mrb[136].mxu1 }
 0x3d8   : > { %v9250_v13 = vadd.f32 %v9249_v61, %v13205_v28  ;;  %v9263_v32 = vmul.f32 %v13205_v28, %v13205_v28  ;;  %v13211_v34 = vadd.f32 %v10652_v26, %v9167_v30  ;;  %v10613_v27 = vpop.f32.mrb[136].mxu0  ;;  %v10654_v39 = vpop.f32.mrb[137].mxu1 }
 0x3d9   : > { %v10614_v33 = vpop.f32.mrb[137].mxu0  ;;  %v10655_v29 = vadd.f32 %v10654_v39, %v10653_v43  ;;  %v10656_v18 = vpop.f32.mrb[138].mxu1 }
 0x3da   : > { %v9269_v45 = vadd.f32 %v9268_v21, %v9263_v32  ;;  %v9251_v9 = vadd.f32 %v9250_v13, %v13211_v34  ;;  %v9264_v19 = vmul.f32 %v13211_v34, %v13211_v34  ;;  %v10615_v38 = vadd.f32 %v10614_v33, %v10613_v27  ;;  %v10616_v42 = vpop.f32.mrb[138].mxu0  ;;  %v10657_v49 = vpop.f32.mrb[139].mxu1  ;;  %v9286_v27 = vld [vmem:[%s4996_s16] sm:$0x1] }
 0x3db   : > { %v10617_v52 = vpop.f32.mrb[139].mxu0  ;;  %v10658_v16 = vadd.f32 %v10657_v49, %v10656_v18  ;;  %v9292_v13 = vlaneseq }
 0x3dc   : > { %v9270_v31 = vadd.f32 %v9269_v45, %v9264_v19  ;;  %v9172_v57 = vadd.f32 %v10615_v38, %v13189_v44  ;;  %v10618_v47 = vadd.f32 %v10617_v52, %v10616_v42 }
 0x3dd   : > { %v9293_v32 = vshrl.u32 %v9292_v13, 7 }
 0x3de   : > { %v9236_v51 = vadd.f32 %v10655_v29, %v9172_v57  ;;  %v9175_v35 = vadd.f32 %v10618_v47, %v13191_v46 }
 0x3df   : > { %v10659_v25 = vpop.f32.mrb[140].mxu1  ;;  %v9294_v43 = vsub.s32 0, %v9293_v32 }
 0x3e0   : > { %v9252_v53 = vadd.f32 %v9251_v9, %v9236_v51  ;;  %v9265_v37 = vmul.f32 %v9236_v51, %v9236_v51  ;;  %v9239_v55 = vadd.f32 %v10658_v16, %v9175_v35  ;;  %v10619_v56 = vpop.f32.mrb[140].mxu0  ;;  %v10660_v36 = vpop.f32.mrb[141].mxu1  ;;  %v9288_v9 = vld [vmem:[%s4999_s26] sm:$0x1] }
 0x3e1   : > { %v10620_v0 = vpop.f32.mrb[141].mxu0  ;;  %v10661_v3 = vadd.f32 %v10660_v36, %v10659_v25  ;;  %v10662_v44 = vpop.f32.mrb[142].mxu1  ;;  %v9317_v16 = vld [vmem:[%s4960_s18] sm:$0xff]  ;;  %v9318_v35 = vld [vmem:[%s4960_s18 + $0x8] sm:$0xff] }
 0x3e2   : > { %v9271_v59 = vadd.f32 %v9270_v31, %v9265_v37  ;;  %v9253_v60 = vadd.f32 %v9252_v53, %v9239_v55  ;;  %v9266_v54 = vmul.f32 %v9239_v55, %v9239_v55  ;;  %v10621_v62 = vadd.f32 %v10620_v0, %v10619_v56  ;;  %v10622_v2 = vpop.f32.mrb[142].mxu0  ;;  %v10663_v1 = vpop.f32.mrb[143].mxu1  ;;  %v9319_v53 = vld [vmem:[%s4960_s18 + $0x10] sm:$0xff]  ;;  %v9320_v37 = vld [vmem:[%s4960_s18 + $0x18] sm:$0xff] }
 0x3e3   : > { %v10623_v48 = vpop.f32.mrb[143].mxu0 }
 0x3e4   : > { %v9272_v50 = vadd.f32 %v9271_v59, %v9266_v54  ;;  %v9180_v10 = vadd.f32 %v10621_v62, %v13193_v11  ;;  %v9321_v59 = vld [vmem:[%s4960_s18 + $0x20] sm:$0xff] }
 0x3e6   : > { %v9244_v46 = vadd.f32 %v10661_v3, %v9180_v10 }
 0x3e8   : > { %v9254_v5 = vadd.f32 %v9253_v60, %v9244_v46  ;;  %v9267_v14 = vmul.f32 %v9244_v46, %v9244_v46  ;;  %v9323_v60 = vld [vmem:[%s4960_s18 + $0x30] sm:$0xff] }
 0x3ea   : > { %v9255_v40 = vrot.slane %v9254_v5, 4  ;;  %v9273_v12 = vadd.f32 %v9272_v50, %v9267_v14 }
 0x3ec   : > { %v9256_v15 = vadd.f32 %v9255_v40, %v9254_v5  ;;  %v9274_v61 = vrot.slane %v9273_v12, 4 }
 0x3ee   : > { %v9257_v6 = vrot.slane %v9256_v15, 2  ;;  %v9275_v17 = vadd.f32 %v9274_v61, %v9273_v12 }
 0x3f0   : > { %v9258_v63 = vadd.f32 %v9257_v6, %v9256_v15  ;;  %v9276_v41 = vrot.slane %v9275_v17, 2 }
 0x3f2   : > { %v9259_v58 = vrot.slane %v9258_v63, 1  ;;  %v9277_v20 = vadd.f32 %v9276_v41, %v9275_v17 }
 0x3f4   : > { %v9260_v7 = vadd.f32 %v9259_v58, %v9258_v63  ;;  %v9278_v21 = vrot.slane %v9277_v20, 1 }
 0x3f6   : > { %v9279_v22 = vadd.f32 %v9278_v21, %v9277_v20  ;;  %v9280_v11 = vmul.f32 0.020408163, %v9260_v7 }
 0x3f8   : > { %v9281_v23 = vmul.f32 0.020408163, %v9279_v22  ;;  %v9282_v24 = vmul.f32 %v9280_v11, %v9280_v11 }
 0x3fa   : > { %v9283_v26 = vsub.f32 %v9281_v23, %v9282_v24 }
 0x3fc   : > { %v9284_v30 = vadd.f32 1e-05, %v9283_v26 }
 0x3fe   : > { %11179 = vrsqrt.f32 %v9284_v30 }
 0x408   : > { %v11180_v33 = vpop.eup %11179 }
 0x409   : > { %v9287_v45 = vmul.f32 %v11180_v33, %v9286_v27 }
 0x40b   : > { %v9289_v19 = vmul.f32 %v9287_v45, %v9280_v11  ;;  %v9295_v38 = vrot.slane %v9287_v45, %v9294_v43 }
 0x40d   : > { %v9290_v39 = vsub.f32 %v9288_v9, %v9289_v19  ;;  %v9297_v42 = vmul.f32 %v9295_v38, %v13195_v4  ;;  %v9298_v29 = vmul.f32 %v9295_v38, %v13197_v8  ;;  %v9299_v18 = vmul.f32 %v9295_v38, %v13205_v28  ;;  %v9322_v8 = vld [vmem:[%s4960_s18 + $0x28] sm:$0xff] }
 0x40e   : > { %v9300_v52 = vmul.f32 %v9295_v38, %v13211_v34  ;;  %v9301_v31 = vmul.f32 %v9295_v38, %v9236_v51  ;;  %v9302_v57 = vmul.f32 %v9295_v38, %v9239_v55  ;;  %v9303_v47 = vmul.f32 %v9295_v38, %v9244_v46 }
 0x40f   : > { %v9308_v49 = vrot.slane %v9290_v39, %v9294_v43 }
 0x411   : > { %v9310_v56 = vadd.f32 %v9308_v49, %v9297_v42  ;;  %v9311_v25 = vadd.f32 %v9308_v49, %v9298_v29  ;;  %v9312_v0 = vadd.f32 %v9308_v49, %v9299_v18  ;;  %v9313_v4 = vadd.f32 %v9308_v49, %v9300_v52 }
 0x412   : > { %v9314_v28 = vadd.f32 %v9308_v49, %v9301_v31  ;;  %v9315_v54 = vadd.f32 %v9308_v49, %v9302_v57  ;;  %v9316_v34 = vadd.f32 %v9308_v49, %v9303_v47  ;;  %9344 = sbr.rel (!%p11270_p5) target bundleno = 1057 (0x421), region = 134 }
 0x413   : > { %v9324_v51 = vadd.f32 %v9317_v16, %v9310_v56  ;;  %v9325_v55 = vadd.f32 %v9318_v35, %v9311_v25  ;;  %v9326_v62 = vadd.f32 %v9319_v53, %v9312_v0  ;;  %v9327_v36 = vadd.f32 %v9320_v37, %v9313_v4 }
 0x414   : > { %v9328_v2 = vadd.f32 %v9321_v59, %v9314_v28  ;;  %v9329_v3 = vadd.f32 %v9322_v8, %v9315_v54  ;;  %v9330_v44 = vadd.f32 %v9323_v60, %v9316_v34 }
 0x415   : > { %9331 = vst [vmem:[%s4993_s17] sm:$0xff] %v9324_v51  ;;  %9332 = vst [vmem:[%s4993_s17 + $0x8] sm:$0xff] %v9325_v55 }
 0x416   : > { %9333 = vst [vmem:[%s4993_s17 + $0x10] sm:$0xff] %v9326_v62  ;;  %9334 = vst [vmem:[%s4993_s17 + $0x18] sm:$0xff] %v9327_v36 }
 0x417   : > { %9335 = vst [vmem:[%s4993_s17 + $0x20] sm:$0xff] %v9328_v2  ;;  %9336 = vst [vmem:[%s4993_s17 + $0x28] sm:$0xff] %v9329_v3 }
 0x418   : > { %9337 = vst [vmem:[%s4993_s17 + $0x30] sm:$0xff] %v9330_v44 }
 0x41c   : > { %v9386_v48 = vld [vmem:[%s4993_s17] sm:$0xff]  ;;  %v9388_v50 = vld [vmem:[%s4993_s17 + $0x8] sm:$0xff] }
 0x41d   : > { %v9390_v10 = vld [vmem:[%s4993_s17 + $0x10] sm:$0xff]  ;;  %v9392_v1 = vld [vmem:[%s4993_s17 + $0x18] sm:$0xff]  ;;  %9387 = vst [vmem:[%s9346_s7] sm:$0xff] %v9386_v48  ;;  %9389 = vst [vmem:[%s9346_s7 + $0x20] sm:$0xff] %v9388_v50 }
 0x41e   : > { %v9394_v46 = vld [vmem:[%s4993_s17 + $0x20] sm:$0xff]  ;;  %v9396_v5 = vld [vmem:[%s4993_s17 + $0x28] sm:$0xff]  ;;  %9391 = vst [vmem:[%s9346_s7 + $0x40] sm:$0xff] %v9390_v10  ;;  %9393 = vst [vmem:[%s9346_s7 + $0x60] sm:$0xff] %v9392_v1 }
 0x41f   : > { %9395 = vst [vmem:[%s9346_s7 + $0x80] sm:$0xff] %v9394_v46  ;;  %9397 = vst [vmem:[%s9346_s7 + $0xa0] sm:$0xff] %v9396_v5  ;;  %v9398_v14 = vld [vmem:[%s4993_s17 + $0x30] sm:$0xff] }
 0x420   : > { %9399 = vst [vmem:[%s9346_s7 + $0xc0] sm:$0xff] %v9398_v14 }
 0x421 PF: > { %p12_p11 = scmp.ge.s32.totalorder %s11254_s22, 6   ;;  %s13261_s18 = smov %s11199_s19 }
 0x422   : > { %s13262_s19 = smov %s11264_s25  ;;  %s13263_s20 = smov %s11254_s22 }
 0x423   :  { %14 = sbr.rel (!%p12_p11) target bundleno = 2 (0x2), region = 221 }

</bundles_post_ra>
